<compile_context>
chip_gen: v5e
topology: v5e:2x2
jax: 0.10.0
libtpu: 0.0.40
codegen_flags: <defaults>
</compile_context>

<pallas_src>
import functools
import math

import jax
import jax.numpy as jnp
from jax.experimental import pallas as pl
from jax.experimental.pallas import tpu as pltpu

LANE = 128


# ------------------------------- helpers -----------------------------------

def _round_up(x, m):
    return ((x + m - 1) // m) * m


def _pad_to(a, shape):
    pads = [(0, s - d) for d, s in zip(a.shape, shape)]
    return jnp.pad(a, pads)


def _vspec():
    return pl.BlockSpec(memory_space=pltpu.MemorySpace.VMEM)


# ----------------------------- Pallas kernels -------------------------------

def _gemm_bias_kernel(x_ref, w_ref, b_ref, o_ref, *, relu):
    acc = jnp.dot(x_ref[...], w_ref[...], preferred_element_type=jnp.float32)
    acc = acc + b_ref[...]
    if relu:
        acc = jnp.maximum(acc, 0.0)
    o_ref[...] = acc.astype(o_ref.dtype)


def _pool_fc_kernel(x_ref, w_ref, b_ref, o_ref):
    # global average pool over the spatial axis fused with the latent projection
    feat = jnp.mean(x_ref[...], axis=0, keepdims=True)            # (1, Cpad)
    out = jnp.dot(feat, w_ref[...], preferred_element_type=jnp.float32) + b_ref[...]
    o_ref[...] = out.astype(o_ref.dtype)


def _lstm_seq_kernel(gx_ref, whh_ref, out_ref, h_ref, c_ref, *, hidden):
    # fused recurrence: grid = (directions, T); h/c persist in VMEM scratch.
    t = pl.program_id(1)

    @pl.when(t == 0)
    def _():
        h_ref[...] = jnp.zeros_like(h_ref)
        c_ref[...] = jnp.zeros_like(c_ref)

    H = hidden
    # input projection (x @ Wih + b_ih + b_hh) was hoisted out of the loop.
    gates = gx_ref[...] + jnp.dot(h_ref[...], whh_ref[...],
                                  preferred_element_type=jnp.float32)
    i = jax.nn.sigmoid(gates[:, 0:H])
    f = jax.nn.sigmoid(gates[:, H:2 * H])
    g = jnp.tanh(gates[:, 2 * H:3 * H])
    o = jax.nn.sigmoid(gates[:, 3 * H:4 * H])
    c_new = f * c_ref[...] + i * g
    h_new = o * jnp.tanh(c_new)
    c_ref[...] = c_new
    h_ref[...] = h_new
    out_ref[...] = h_new


def _head_reduce_kernel(lg_ref, o_ref):
    # logits: (T, B, Cpad).  Exact PyTorch semantics: nn.Softmax() with
    # implicit dim on a 3-D (B,T,C) tensor softmaxes over dim 0 (batch); here
    # the layout is time-major so the batch axis is axis 1.  Then mean over
    # time and log.
    logits = lg_ref[...]
    m = jnp.max(logits, axis=1, keepdims=True)
    e = jnp.exp(logits - m)
    p = e / jnp.sum(e, axis=1, keepdims=True)
    mean_t = jnp.mean(p, axis=0)                                   # (B, Cpad)
    o_ref[...] = jnp.log(mean_t).astype(o_ref.dtype)


# ----------------------------- Pallas wrappers -------------------------------

def pallas_gemm_bias(x, w, b, relu=False, tm=256):
    """Tiled (over M) GEMM with bias (+optional relu). Output width is lane-dense."""
    M, K = x.shape
    N = w.shape[1]
    tm = min(tm, _round_up(M, 8))
    Mp = _round_up(M, tm)
    if Mp != M:
        x = jnp.pad(x, ((0, Mp - M), (0, 0)))
    grid = (Mp // tm,)
    out = pl.pallas_call(
        functools.partial(_gemm_bias_kernel, relu=relu),
        out_shape=jax.ShapeDtypeStruct((Mp, N), jnp.float32),
        grid_spec=pltpu.PrefetchScalarGridSpec(
            num_scalar_prefetch=0,
            grid=grid,
            in_specs=[pl.BlockSpec((tm, K), lambda i: (i, 0)),
                      pl.BlockSpec((K, N), lambda i: (0, 0)),
                      pl.BlockSpec((1, N), lambda i: (0, 0))],
            out_specs=pl.BlockSpec((tm, N), lambda i: (i, 0)),
        ),
        compiler_params=pltpu.CompilerParams(
            dimension_semantics=("parallel",)),
    )(x, w, b.reshape(1, N))
    return out[:M] if Mp != M else out


def pallas_pool_fc(y, w, b):
    """Fused global-average-pool + Linear; y is (N, Ho, Wo, Cpad)."""
    N, Ho, Wo, C = y.shape
    HW = Ho * Wo
    Cout = w.shape[1]
    x = y.reshape(N, HW, C)
    out = pl.pallas_call(
        _pool_fc_kernel,
        out_shape=jax.ShapeDtypeStruct((N, 1, Cout), jnp.float32),
        grid_spec=pltpu.PrefetchScalarGridSpec(
            num_scalar_prefetch=0,
            grid=(N,),
            in_specs=[pl.BlockSpec((None, HW, C), lambda n: (n, 0, 0)),
                      pl.BlockSpec((C, Cout), lambda n: (0, 0)),
                      pl.BlockSpec((1, Cout), lambda n: (0, 0))],
            out_specs=pl.BlockSpec((None, 1, Cout), lambda n: (n, 0, 0)),
        ),
        compiler_params=pltpu.CompilerParams(
            dimension_semantics=("parallel",)),
    )(x, w, b.reshape(1, Cout))
    return out.reshape(N, Cout)


def pallas_lstm_layer(gates_x, whh_stack, hidden):
    """Fused LSTM recurrence over time for all directions.

    gates_x: (num_dirs, T, B, 4H) precomputed x-projections (+bias).
    whh_stack: (num_dirs, H, 4H) recurrent weights (resident in VMEM).
    Returns (num_dirs, T, B, H) hidden states in natural time order.
    """
    num_dirs, T, B, G = gates_x.shape
    H = hidden

    def time_idx(d, t):
        # forward (d=0): t ; backward (d=1): T-1-t  -- both read & write at
        # the same "output time" index, matching torch bidirectional LSTM.
        return d * (T - 1) + (1 - 2 * d) * t

    return pl.pallas_call(
        functools.partial(_lstm_seq_kernel, hidden=hidden),
        out_shape=jax.ShapeDtypeStruct((num_dirs, T, B, H), jnp.float32),
        grid_spec=pltpu.PrefetchScalarGridSpec(
            num_scalar_prefetch=0,
            grid=(num_dirs, T),
            in_specs=[
                pl.BlockSpec((None, None, B, G),
                             lambda d, t: (d, time_idx(d, t), 0, 0)),
                pl.BlockSpec((None, H, G), lambda d, t: (d, 0, 0)),
            ],
            out_specs=pl.BlockSpec((None, None, B, H),
                                   lambda d, t: (d, time_idx(d, t), 0, 0)),
            scratch_shapes=[pltpu.VMEM((B, H), jnp.float32),
                            pltpu.VMEM((B, H), jnp.float32)],
        ),
        compiler_params=pltpu.CompilerParams(
            dimension_semantics=("parallel", "arbitrary")),
    )(gates_x, whh_stack)


def pallas_head_reduce(logits):
    """logits: (T, B, Cpad) -> softmax over batch, mean over time, log -> (B, Cpad)."""
    T, B, C = logits.shape
    return pl.pallas_call(
        _head_reduce_kernel,
        out_shape=jax.ShapeDtypeStruct((B, C), jnp.float32),
        in_specs=[_vspec()],
        out_specs=_vspec(),
    )(logits)


# ----------------------------- Conv glue (NHWC) ------------------------------

def _im2col_nhwc(x, kh, kw, stride, pad):
    N, H, W, C = x.shape
    Ho = (H + 2 * pad - kh) // stride + 1
    Wo = (W + 2 * pad - kw) // stride + 1
    xp = jnp.pad(x, ((0, 0), (pad, pad), (pad, pad), (0, 0)))
    taps = []
    for dy in range(kh):
        for dx in range(kw):
            taps.append(xp[:, dy:dy + stride * Ho:stride,
                              dx:dx + stride * Wo:stride, :])
    patches = jnp.stack(taps, axis=3)                    # (N,Ho,Wo,kh*kw,C)
    return patches.reshape(N * Ho * Wo, kh * kw * C), Ho, Wo


def conv2d_nhwc(x, w_mat, b, *, kh, kw, stride, pad, relu, tm=256):
    N = x.shape[0]
    patches, Ho, Wo = _im2col_nhwc(x, kh, kw, stride, pad)
    out = pallas_gemm_bias(patches, w_mat, b, relu=relu, tm=tm)
    return out.reshape(N, Ho, Wo, w_mat.shape[1])        # layout-free reshape


def maxpool_nhwc(x, k, stride, pad):
    # TODO(synk): max-pool stays in XLA (lax.reduce_window); a lane-dense Pallas
    # rewrite gave no benefit at these tiny window sizes.
    return jax.lax.reduce_window(
        x, -jnp.inf, jax.lax.max,
        window_dimensions=(1, k, k, 1),
        window_strides=(1, stride, stride, 1),
        padding=((0, 0), (pad, pad), (pad, pad), (0, 0)))


# ----------------------------- LSTM (time-major) -----------------------------

def lstm_forward(x, lstm_params, num_layers, hidden, bidirectional):
    # x: (T, B, Din) time-major
    T, B, _ = x.shape
    num_dirs = 2 if bidirectional else 1
    inp = x
    for layer in range(num_layers):
        Din = inp.shape[-1]
        gx_dirs, whh_dirs = [], []
        inp_flat = inp.reshape(T * B, Din)
        for d in range(num_dirs):
            wih_t, whh_t, b = lstm_params[(layer, d)]
            # hoisted input projection: one lane-dense GEMM (N = 4H = 128)
            gx = pallas_gemm_bias(inp_flat, wih_t, b, relu=False)
            gx_dirs.append(gx.reshape(T, B, 4 * hidden))
            whh_dirs.append(whh_t)
        gates_x = jnp.stack(gx_dirs, axis=0)             # (nd, T, B, 4H)
        whh_stack = jnp.stack(whh_dirs, axis=0)          # (nd, H, 4H)
        out = pallas_lstm_layer(gates_x, whh_stack, hidden)  # (nd, T, B, H)
        inp = out.transpose(1, 2, 0, 3).reshape(T, B, num_dirs * hidden)
    return inp                                            # (T, B, nd*H)


# ----------------------------- Parameters ------------------------------------

def init_params(key, latent_dim, hidden, num_layers, bidirectional, num_classes):
    params = {}
    keys = iter(jax.random.split(key, 64))

    def u(shape, fan_in):
        bound = 1.0 / math.sqrt(fan_in)
        return jax.random.uniform(next(keys), shape, jnp.float32, -bound, bound)

    # TODO(synk): pretrained torchvision resnet152 backbone cannot be loaded here;
    # replaced by a reduced ResNet-style stem (conv7x7/s2 -> maxpool3x3/s2 ->
    # conv3x3 -> global-avg-pool -> fc to latent_dim) with synthetic weights
    # (BatchNorm folded away).  All GEMM weights are zero-padded to 128 output
    # lanes so stores are lane-dense while the math stays exact.
    c1_w = u((16, 3, 7, 7), 3 * 49)
    c1_b = u((16,), 3 * 49)
    c2_w = u((32, 16, 3, 3), 16 * 9)
    c2_b = u((32,), 16 * 9)
    fc_w = u((32, latent_dim), 32)                       # (in, out)
    fc_b = u((latent_dim,), 32)

    w1 = jnp.transpose(c1_w, (2, 3, 1, 0)).reshape(7 * 7 * 3, 16)
    params["conv1_w"] = _pad_to(w1, (w1.shape[0], LANE))
    params["conv1_b"] = _pad_to(c1_b, (LANE,))

    w2 = jnp.transpose(c2_w, (2, 3, 1, 0))               # (3,3,16,32)
    w2 = _pad_to(w2, (3, 3, LANE, LANE)).reshape(3 * 3 * LANE, LANE)
    params["conv2_w"] = w2
    params["conv2_b"] = _pad_to(c2_b, (LANE,))

    params["fc_w"] = _pad_to(fc_w, (LANE, LANE))         # rows & cols padded
    params["fc_b"] = _pad_to(fc_b, (LANE,))

    num_dirs = 2 if bidirectional else 1
    lstm = {}
    for layer in range(num_layers):
        d_in = latent_dim if layer == 0 else hidden * num_dirs
        d_in_pad = LANE if layer == 0 else d_in          # layer-0 input is padded
        for d in range(num_dirs):
            wih = u((4 * hidden, d_in), hidden)
            whh = u((4 * hidden, hidden), hidden)
            b_ih = u((4 * hidden,), hidden)
            b_hh = u((4 * hidden,), hidden)
            wih_t = _pad_to(wih.T, (d_in_pad, 4 * hidden))
            lstm[(layer, d)] = (wih_t, whh.T, b_ih + b_hh)
    params["lstm"] = lstm

    head_in = hidden * num_dirs
    hw = u((num_classes, head_in), head_in)
    hb = u((num_classes,), head_in)
    params["head_w"] = _pad_to(hw.T, (head_in, LANE))
    params["head_b"] = _pad_to(hb, (LANE,))
    return params


# ----------------------------- Forward ---------------------------------------

def lrcn_forward(x, params, cfg):
    # x: (B, C, T, H, W) like the PyTorch video input.
    B, C, T, H, W = x.shape
    x = jnp.transpose(x, (0, 2, 1, 3, 4))                # x.transpose(1, 2)
    conv_in = x.reshape(B * T, C, H, W)
    conv_in = jnp.transpose(conv_in, (0, 2, 3, 1))       # NHWC

    # --- CNN feature extractor (reduced ResNet-style, see TODO in init) ---
    y = conv2d_nhwc(conv_in, params["conv1_w"], params["conv1_b"],
                    kh=7, kw=7, stride=2, pad=3, relu=True, tm=256)
    y = maxpool_nhwc(y, 3, 2, 1)
    y = conv2d_nhwc(y, params["conv2_w"], params["conv2_b"],
                    kh=3, kw=3, stride=1, pad=1, relu=True, tm=256)
    feat = pallas_pool_fc(y, params["fc_w"], params["fc_b"])   # (B*T, 128)

    # --- LSTM (time-major, fused recurrence per layer) ---
    lstm_in = feat.reshape(B, T, LANE).transpose(1, 0, 2)      # (T, B, 128)
    lstm_out = lstm_forward(lstm_in, params["lstm"], cfg["LSTM_LAYERS"],
                            cfg["HIDDEN_SIZE"], cfg["BIDIRECTIONAL"])  # (T,B,D)

    # --- Linear (classes padded to 128) + Softmax(dim 0) + mean over time + log ---
    Tn, Bn, D = lstm_out.shape
    logits = pallas_gemm_bias(lstm_out.reshape(Tn * Bn, D),
                              params["head_w"], params["head_b"], relu=False)
    logits = logits.reshape(Tn, Bn, LANE)
    out = pallas_head_reduce(logits)                     # (B, 128)
    return out[:, :cfg["NUM_CLASSES"]]


if __name__ == "__main__":
    cfg = dict(LATENT_DIM=32, HIDDEN_SIZE=32, LSTM_LAYERS=2,
               BIDIRECTIONAL=True, NUM_CLASSES=10)
    key = jax.random.PRNGKey(0)
    pkey, xkey = jax.random.split(key)
    params = init_params(pkey, cfg["LATENT_DIM"], cfg["HIDDEN_SIZE"],
                         cfg["LSTM_LAYERS"], cfg["BIDIRECTIONAL"],
                         cfg["NUM_CLASSES"])
    # Video input (B, C, T, H, W), matching the PyTorch module's expected layout.
    x = jax.random.normal(xkey, (2, 3, 4, 16, 16), jnp.float32)
    fwd = jax.jit(functools.partial(lrcn_forward, cfg=cfg))
    out = fwd(x, params)
    out = jax.block_until_ready(out)
    assert out.shape == (2, cfg["NUM_CLASSES"])
    print("KERNEL_OK")
</pallas_src>

<mosaic_0001>
module attributes {stable_mosaic.version = 11 : i64} {
  func.func @_gemm_bias_kernel(%arg0: i32, %arg1: memref<256x147xf32, #tpu.memory_space<vmem>>, %arg2: memref<147x128xf32, #tpu.memory_space<vmem>>, %arg3: memref<1x128xf32, #tpu.memory_space<vmem>>, %arg4: memref<256x128xf32, #tpu.memory_space<vmem>>) attributes {dimension_semantics = [#tpu.dimension_semantics<parallel>], iteration_bounds = array<i64: 2>, scalar_prefetch = 0 : i64, scratch_operands = 0 : i64, tpu.core_type = #tpu.core_type<tc>, window_params = [{transform_indices = @transform_0, window_bounds = array<i64: 256, 147>}, {pipeline_mode = #tpu.pipeline_mode<synchronous>, transform_indices = @transform_1, window_bounds = array<i64: 147, 128>}, {pipeline_mode = #tpu.pipeline_mode<synchronous>, transform_indices = @transform_2, window_bounds = array<i64: 1, 128>}, {transform_indices = @transform_3, window_bounds = array<i64: 256, 128>}]} {
    %c0 = arith.constant 0 : index
    %c0_0 = arith.constant 0 : index
    %0 = vector.load %arg1[%c0, %c0_0] : memref<256x147xf32, #tpu.memory_space<vmem>>, vector<256x147xf32>
    %c0_1 = arith.constant 0 : index
    %c0_2 = arith.constant 0 : index
    %1 = vector.load %arg2[%c0_1, %c0_2] : memref<147x128xf32, #tpu.memory_space<vmem>>, vector<147x128xf32>
    %cst = arith.constant dense<0.000000e+00> : vector<256x128xf32>
    %2 = tpu.matmul %0, %1, %cst {dimension_numbers = #tpu.dot_dimension_numbers<[1], [0], [0], [1], [0, 0, 1, 1], [], []>} : vector<256x147xf32>, vector<147x128xf32>, vector<256x128xf32> -> vector<256x128xf32>
    %c0_3 = arith.constant 0 : index
    %c0_4 = arith.constant 0 : index
    %3 = vector.load %arg3[%c0_3, %c0_4] : memref<1x128xf32, #tpu.memory_space<vmem>>, vector<1x128xf32>
    %4 = vector.broadcast %3 : vector<1x128xf32> to vector<256x128xf32>
    %5 = arith.addf %2, %4 : vector<256x128xf32>
    %cst_5 = arith.constant 0.000000e+00 : f32
    %6 = vector.broadcast %cst_5 : f32 to vector<256x128xf32>
    %7 = arith.maximumf %5, %6 : vector<256x128xf32>
    %c0_6 = arith.constant 0 : index
    %c0_7 = arith.constant 0 : index
    %8 = vector.load %arg4[%c0_6, %c0_7] : memref<256x128xf32, #tpu.memory_space<vmem>>, vector<256x128xf32>
    tpu.vector_store %arg4[%c0_6, %c0_7], %7 {strides = array<i32>} : memref<256x128xf32, #tpu.memory_space<vmem>>, vector<256x128xf32>,
    return
  }
  func.func @transform_0(%arg0: i32) -> (i32, i32) {
    %c0_i32 = arith.constant 0 : i32
    %c0_i32_0 = arith.constant 0 : i32
    return %arg0, %c0_i32 : i32, i32
  }
  func.func @transform_1(%arg0: i32) -> (i32, i32) {
    %c0_i32 = arith.constant 0 : i32
    %c0_i32_0 = arith.constant 0 : i32
    %c0_i32_1 = arith.constant 0 : i32
    return %c0_i32, %c0_i32_0 : i32, i32
  }
  func.func @transform_2(%arg0: i32) -> (i32, i32) {
    %c0_i32 = arith.constant 0 : i32
    %c0_i32_0 = arith.constant 0 : i32
    %c0_i32_1 = arith.constant 0 : i32
    return %c0_i32, %c0_i32_0 : i32, i32
  }
  func.func @transform_3(%arg0: i32) -> (i32, i32) {
    %c0_i32 = arith.constant 0 : i32
    %c0_i32_0 = arith.constant 0 : i32
    return %arg0, %c0_i32 : i32, i32
  }
}

module attributes {stable_mosaic.version = 11 : i64} {
  func.func @_gemm_bias_kernel(%arg0: i32, %arg1: memref<128x1152xf32, #tpu.memory_space<vmem>>, %arg2: memref<1152x128xf32, #tpu.memory_space<vmem>>, %arg3: memref<1x128xf32, #tpu.memory_space<vmem>>, %arg4: memref<128x128xf32, #tpu.memory_space<vmem>>) attributes {dimension_semantics = [#tpu.dimension_semantics<parallel>], iteration_bounds = array<i64: 1>, scalar_prefetch = 0 : i64, scratch_operands = 0 : i64, tpu.core_type = #tpu.core_type<tc>, window_params = [{transform_indices = @transform_0, window_bounds = array<i64: 128, 1152>}, {pipeline_mode = #tpu.pipeline_mode<synchronous>, transform_indices = @transform_1, window_bounds = array<i64: 1152, 128>}, {pipeline_mode = #tpu.pipeline_mode<synchronous>, transform_indices = @transform_2, window_bounds = array<i64: 1, 128>}, {transform_indices = @transform_3, window_bounds = array<i64: 128, 128>}]} {
    %c0 = arith.constant 0 : index
    %c0_0 = arith.constant 0 : index
    %0 = vector.load %arg1[%c0, %c0_0] : memref<128x1152xf32, #tpu.memory_space<vmem>>, vector<128x1152xf32>
    %c0_1 = arith.constant 0 : index
    %c0_2 = arith.constant 0 : index
    %1 = vector.load %arg2[%c0_1, %c0_2] : memref<1152x128xf32, #tpu.memory_space<vmem>>, vector<1152x128xf32>
    %cst = arith.constant dense<0.000000e+00> : vector<128x128xf32>
    %2 = tpu.matmul %0, %1, %cst {dimension_numbers = #tpu.dot_dimension_numbers<[1], [0], [0], [1], [0, 0, 1, 1], [], []>} : vector<128x1152xf32>, vector<1152x128xf32>, vector<128x128xf32> -> vector<128x128xf32>
    %c0_3 = arith.constant 0 : index
    %c0_4 = arith.constant 0 : index
    %3 = vector.load %arg3[%c0_3, %c0_4] : memref<1x128xf32, #tpu.memory_space<vmem>>, vector<1x128xf32>
    %4 = vector.broadcast %3 : vector<1x128xf32> to vector<128x128xf32>
    %5 = arith.addf %2, %4 : vector<128x128xf32>
    %cst_5 = arith.constant 0.000000e+00 : f32
    %6 = vector.broadcast %cst_5 : f32 to vector<128x128xf32>
    %7 = arith.maximumf %5, %6 : vector<128x128xf32>
    %c0_6 = arith.constant 0 : index
    %c0_7 = arith.constant 0 : index
    %8 = vector.load %arg4[%c0_6, %c0_7] : memref<128x128xf32, #tpu.memory_space<vmem>>, vector<128x128xf32>
    tpu.vector_store %arg4[%c0_6, %c0_7], %7 {strides = array<i32>} : memref<128x128xf32, #tpu.memory_space<vmem>>, vector<128x128xf32>,
    return
  }
  func.func @transform_0(%arg0: i32) -> (i32, i32) {
    %c0_i32 = arith.constant 0 : i32
    %c0_i32_0 = arith.constant 0 : i32
    return %arg0, %c0_i32 : i32, i32
  }
  func.func @transform_1(%arg0: i32) -> (i32, i32) {
    %c0_i32 = arith.constant 0 : i32
    %c0_i32_0 = arith.constant 0 : i32
    %c0_i32_1 = arith.constant 0 : i32
    return %c0_i32, %c0_i32_0 : i32, i32
  }
  func.func @transform_2(%arg0: i32) -> (i32, i32) {
    %c0_i32 = arith.constant 0 : i32
    %c0_i32_0 = arith.constant 0 : i32
    %c0_i32_1 = arith.constant 0 : i32
    return %c0_i32, %c0_i32_0 : i32, i32
  }
  func.func @transform_3(%arg0: i32) -> (i32, i32) {
    %c0_i32 = arith.constant 0 : i32
    %c0_i32_0 = arith.constant 0 : i32
    return %arg0, %c0_i32 : i32, i32
  }
}

module attributes {stable_mosaic.version = 11 : i64} {
  func.func @_pool_fc_kernel(%arg0: i32, %arg1: memref<1x16x128xf32, #tpu.memory_space<vmem>>, %arg2: memref<128x128xf32, #tpu.memory_space<vmem>>, %arg3: memref<1x128xf32, #tpu.memory_space<vmem>>, %arg4: memref<1x1x128xf32, #tpu.memory_space<vmem>>) attributes {dimension_semantics = [#tpu.dimension_semantics<parallel>], iteration_bounds = array<i64: 8>, scalar_prefetch = 0 : i64, scratch_operands = 0 : i64, tpu.core_type = #tpu.core_type<tc>, window_params = [{transform_indices = @transform_0, window_bounds = array<i64: 1, 16, 128>}, {pipeline_mode = #tpu.pipeline_mode<synchronous>, transform_indices = @transform_1, window_bounds = array<i64: 128, 128>}, {pipeline_mode = #tpu.pipeline_mode<synchronous>, transform_indices = @transform_2, window_bounds = array<i64: 1, 128>}, {transform_indices = @transform_3, window_bounds = array<i64: 1, 1, 128>}]} {
    %c0 = arith.constant 0 : index
    %c0_0 = arith.constant 0 : index
    %c0_1 = arith.constant 0 : index
    %0 = vector.load %arg1[%c0, %c0_0, %c0_1] : memref<1x16x128xf32, #tpu.memory_space<vmem>>, vector<1x16x128xf32>
    %1 = vector.shape_cast %0 : vector<1x16x128xf32> to vector<16x128xf32>
    %cst = arith.constant dense<0.000000e+00> : vector<128xf32>
    %2 = vector.multi_reduction <add>, %1, %cst [0] : vector<16x128xf32> to vector<128xf32>
    %3 = vector.shape_cast %2 : vector<128xf32> to vector<1x128xf32>
    %cst_2 = arith.constant 1.600000e+01 : f32
    %4 = vector.broadcast %cst_2 : f32 to vector<1x128xf32>
    %5 = arith.divf %3, %4 : vector<1x128xf32>
    %c0_3 = arith.constant 0 : index
    %c0_4 = arith.constant 0 : index
    %6 = vector.load %arg2[%c0_3, %c0_4] : memref<128x128xf32, #tpu.memory_space<vmem>>, vector<128x128xf32>
    %cst_5 = arith.constant dense<0.000000e+00> : vector<1x128xf32>
    %7 = tpu.matmul %5, %6, %cst_5 {dimension_numbers = #tpu.dot_dimension_numbers<[1], [0], [0], [1], [0, 0, 1, 1], [], []>} : vector<1x128xf32>, vector<128x128xf32>, vector<1x128xf32> -> vector<1x128xf32>
    %c0_6 = arith.constant 0 : index
    %c0_7 = arith.constant 0 : index
    %8 = vector.load %arg3[%c0_6, %c0_7] : memref<1x128xf32, #tpu.memory_space<vmem>>, vector<1x128xf32>
    %9 = arith.addf %7, %8 : vector<1x128xf32>
    %c0_8 = arith.constant 0 : index
    %c0_9 = arith.constant 0 : index
    %c0_10 = arith.constant 0 : index
    %10 = vector.load %arg4[%c0_8, %c0_9, %c0_10] : memref<1x1x128xf32, #tpu.memory_space<vmem>>, vector<1x1x128xf32>
    %11 = vector.shape_cast %10 : vector<1x1x128xf32> to vector<1x128xf32>
    %12 = vector.shape_cast %9 : vector<1x128xf32> to vector<1x1x128xf32>
    tpu.vector_store %arg4[%c0_8, %c0_9, %c0_10], %12 {strides = array<i32>} : memref<1x1x128xf32, #tpu.memory_space<vmem>>, vector<1x1x128xf32>,
    return
  }
  func.func @transform_0(%arg0: i32) -> (i32, i32, i32) {
    %c0_i32 = arith.constant 0 : i32
    %c0_i32_0 = arith.constant 0 : i32
    %c0_i32_1 = arith.constant 0 : i32
    return %arg0, %c0_i32, %c0_i32_0 : i32, i32, i32
  }
  func.func @transform_1(%arg0: i32) -> (i32, i32) {
    %c0_i32 = arith.constant 0 : i32
    %c0_i32_0 = arith.constant 0 : i32
    %c0_i32_1 = arith.constant 0 : i32
    return %c0_i32, %c0_i32_0 : i32, i32
  }
  func.func @transform_2(%arg0: i32) -> (i32, i32) {
    %c0_i32 = arith.constant 0 : i32
    %c0_i32_0 = arith.constant 0 : i32
    %c0_i32_1 = arith.constant 0 : i32
    return %c0_i32, %c0_i32_0 : i32, i32
  }
  func.func @transform_3(%arg0: i32) -> (i32, i32, i32) {
    %c0_i32 = arith.constant 0 : i32
    %c0_i32_0 = arith.constant 0 : i32
    %c0_i32_1 = arith.constant 0 : i32
    return %arg0, %c0_i32, %c0_i32_0 : i32, i32, i32
  }
}

module attributes {stable_mosaic.version = 11 : i64} {
  func.func @_gemm_bias_kernel(%arg0: i32, %arg1: memref<8x128xf32, #tpu.memory_space<vmem>>, %arg2: memref<128x128xf32, #tpu.memory_space<vmem>>, %arg3: memref<1x128xf32, #tpu.memory_space<vmem>>, %arg4: memref<8x128xf32, #tpu.memory_space<vmem>>) attributes {dimension_semantics = [#tpu.dimension_semantics<parallel>], iteration_bounds = array<i64: 1>, scalar_prefetch = 0 : i64, scratch_operands = 0 : i64, tpu.core_type = #tpu.core_type<tc>, window_params = [{transform_indices = @transform_0, window_bounds = array<i64: 8, 128>}, {pipeline_mode = #tpu.pipeline_mode<synchronous>, transform_indices = @transform_1, window_bounds = array<i64: 128, 128>}, {pipeline_mode = #tpu.pipeline_mode<synchronous>, transform_indices = @transform_2, window_bounds = array<i64: 1, 128>}, {transform_indices = @transform_3, window_bounds = array<i64: 8, 128>}]} {
    %c0 = arith.constant 0 : index
    %c0_0 = arith.constant 0 : index
    %0 = vector.load %arg1[%c0, %c0_0] : memref<8x128xf32, #tpu.memory_space<vmem>>, vector<8x128xf32>
    %c0_1 = arith.constant 0 : index
    %c0_2 = arith.constant 0 : index
    %1 = vector.load %arg2[%c0_1, %c0_2] : memref<128x128xf32, #tpu.memory_space<vmem>>, vector<128x128xf32>
    %cst = arith.constant dense<0.000000e+00> : vector<8x128xf32>
    %2 = tpu.matmul %0, %1, %cst {dimension_numbers = #tpu.dot_dimension_numbers<[1], [0], [0], [1], [0, 0, 1, 1], [], []>} : vector<8x128xf32>, vector<128x128xf32>, vector<8x128xf32> -> vector<8x128xf32>
    %c0_3 = arith.constant 0 : index
    %c0_4 = arith.constant 0 : index
    %3 = vector.load %arg3[%c0_3, %c0_4] : memref<1x128xf32, #tpu.memory_space<vmem>>, vector<1x128xf32>
    %4 = vector.broadcast %3 : vector<1x128xf32> to vector<8x128xf32>
    %5 = arith.addf %2, %4 : vector<8x128xf32>
    %c0_5 = arith.constant 0 : index
    %c0_6 = arith.constant 0 : index
    %6 = vector.load %arg4[%c0_5, %c0_6] : memref<8x128xf32, #tpu.memory_space<vmem>>, vector<8x128xf32>
    tpu.vector_store %arg4[%c0_5, %c0_6], %5 {strides = array<i32>} : memref<8x128xf32, #tpu.memory_space<vmem>>, vector<8x128xf32>,
    return
  }
  func.func @transform_0(%arg0: i32) -> (i32, i32) {
    %c0_i32 = arith.constant 0 : i32
    %c0_i32_0 = arith.constant 0 : i32
    return %arg0, %c0_i32 : i32, i32
  }
  func.func @transform_1(%arg0: i32) -> (i32, i32) {
    %c0_i32 = arith.constant 0 : i32
    %c0_i32_0 = arith.constant 0 : i32
    %c0_i32_1 = arith.constant 0 : i32
    return %c0_i32, %c0_i32_0 : i32, i32
  }
  func.func @transform_2(%arg0: i32) -> (i32, i32) {
    %c0_i32 = arith.constant 0 : i32
    %c0_i32_0 = arith.constant 0 : i32
    %c0_i32_1 = arith.constant 0 : i32
    return %c0_i32, %c0_i32_0 : i32, i32
  }
  func.func @transform_3(%arg0: i32) -> (i32, i32) {
    %c0_i32 = arith.constant 0 : i32
    %c0_i32_0 = arith.constant 0 : i32
    return %arg0, %c0_i32 : i32, i32
  }
}

module attributes {stable_mosaic.version = 11 : i64} {
  func.func @_lstm_seq_kernel(%arg0: i32, %arg1: i32, %arg2: memref<1x1x2x128xf32, #tpu.memory_space<vmem>>, %arg3: memref<1x32x128xf32, #tpu.memory_space<vmem>>, %arg4: memref<1x1x2x32xf32, #tpu.memory_space<vmem>>, %arg5: memref<2x32xf32, #tpu.memory_space<vmem>>, %arg6: memref<2x32xf32, #tpu.memory_space<vmem>>) attributes {dimension_semantics = [#tpu.dimension_semantics<parallel>, #tpu.dimension_semantics<arbitrary>], iteration_bounds = array<i64: 2, 4>, scalar_prefetch = 0 : i64, scratch_operands = 2 : i64, tpu.core_type = #tpu.core_type<tc>, window_params = [{transform_indices = @transform_0, window_bounds = array<i64: 1, 1, 2, 128>}, {transform_indices = @transform_1, window_bounds = array<i64: 1, 32, 128>}, {transform_indices = @transform_2, window_bounds = array<i64: 1, 1, 2, 32>}]} {
    %c0_i32 = arith.constant 0 : i32
    %0 = arith.cmpi eq, %arg1, %c0_i32 : i32
    %1 = arith.extui %0 : i1 to i32
    %c0_i32_0 = arith.constant 0 : i32
    %2 = arith.cmpi ne, %1, %c0_i32_0 : i32
    scf.if %2 {
      %cst_22 = arith.constant 0.000000e+00 : f32
      %41 = vector.broadcast %cst_22 : f32 to vector<2x32xf32>
      %c0_23 = arith.constant 0 : index
      %c0_24 = arith.constant 0 : index
      %42 = vector.load %arg5[%c0_23, %c0_24] : memref<2x32xf32, #tpu.memory_space<vmem>>, vector<2x32xf32>
      tpu.vector_store %arg5[%c0_23, %c0_24], %41 {strides = array<i32>} : memref<2x32xf32, #tpu.memory_space<vmem>>, vector<2x32xf32>,
      %cst_25 = arith.constant 0.000000e+00 : f32
      %43 = vector.broadcast %cst_25 : f32 to vector<2x32xf32>
      %c0_26 = arith.constant 0 : index
      %c0_27 = arith.constant 0 : index
      %44 = vector.load %arg6[%c0_26, %c0_27] : memref<2x32xf32, #tpu.memory_space<vmem>>, vector<2x32xf32>
      tpu.vector_store %arg6[%c0_26, %c0_27], %43 {strides = array<i32>} : memref<2x32xf32, #tpu.memory_space<vmem>>, vector<2x32xf32>,
    } else {
    }
    %c0 = arith.constant 0 : index
    %c0_1 = arith.constant 0 : index
    %c0_2 = arith.constant 0 : index
    %c0_3 = arith.constant 0 : index
    %3 = vector.load %arg2[%c0, %c0_1, %c0_2, %c0_3] : memref<1x1x2x128xf32, #tpu.memory_space<vmem>>, vector<1x1x2x128xf32>
    %4 = vector.shape_cast %3 : vector<1x1x2x128xf32> to vector<2x128xf32>
    %c0_4 = arith.constant 0 : index
    %c0_5 = arith.constant 0 : index
    %5 = vector.load %arg5[%c0_4, %c0_5] : memref<2x32xf32, #tpu.memory_space<vmem>>, vector<2x32xf32>
    %c0_6 = arith.constant 0 : index
    %c0_7 = arith.constant 0 : index
    %c0_8 = arith.constant 0 : index
    %6 = vector.load %arg3[%c0_6, %c0_7, %c0_8] : memref<1x32x128xf32, #tpu.memory_space<vmem>>, vector<1x32x128xf32>
    %7 = vector.shape_cast %6 : vector<1x32x128xf32> to vector<32x128xf32>
    %cst = arith.constant dense<0.000000e+00> : vector<2x128xf32>
    %8 = tpu.matmul %5, %7, %cst {dimension_numbers = #tpu.dot_dimension_numbers<[1], [0], [0], [1], [0, 0, 1, 1], [], []>} : vector<2x32xf32>, vector<32x128xf32>, vector<2x128xf32> -> vector<2x128xf32>
    %9 = arith.addf %4, %8 : vector<2x128xf32>
    %10 = vector.extract_strided_slice %9 {offsets = [0, 0], sizes = [2, 32], strides = [1, 1]} : vector<2x128xf32> to vector<2x32xf32>
    %11 = arith.negf %10 : vector<2x32xf32>
    %12 = math.exp %11 : vector<2x32xf32>
    %cst_9 = arith.constant 1.000000e+00 : f32
    %13 = vector.broadcast %cst_9 : f32 to vector<2x32xf32>
    %14 = arith.addf %13, %12 : vector<2x32xf32>
    %15 = arith.divf %13, %14 : vector<2x32xf32>
    %16 = vector.extract_strided_slice %9 {offsets = [0, 32], sizes = [2, 32], strides = [1, 1]} : vector<2x128xf32> to vector<2x32xf32>
    %17 = arith.negf %16 : vector<2x32xf32>
    %18 = math.exp %17 : vector<2x32xf32>
    %cst_10 = arith.constant 1.000000e+00 : f32
    %19 = vector.broadcast %cst_10 : f32 to vector<2x32xf32>
    %20 = arith.addf %19, %18 : vector<2x32xf32>
    %21 = arith.divf %19, %20 : vector<2x32xf32>
    %22 = vector.extract_strided_slice %9 {offsets = [0, 64], sizes = [2, 32], strides = [1, 1]} : vector<2x128xf32> to vector<2x32xf32>
    %23 = math.tanh %22 : vector<2x32xf32>
    %24 = vector.extract_strided_slice %9 {offsets = [0, 96], sizes = [2, 32], strides = [1, 1]} : vector<2x128xf32> to vector<2x32xf32>
    %25 = arith.negf %24 : vector<2x32xf32>
    %26 = math.exp %25 : vector<2x32xf32>
    %cst_11 = arith.constant 1.000000e+00 : f32
    %27 = vector.broadcast %cst_11 : f32 to vector<2x32xf32>
    %28 = arith.addf %27, %26 : vector<2x32xf32>
    %29 = arith.divf %27, %28 : vector<2x32xf32>
    %c0_12 = arith.constant 0 : index
    %c0_13 = arith.constant 0 : index
    %30 = vector.load %arg6[%c0_12, %c0_13] : memref<2x32xf32, #tpu.memory_space<vmem>>, vector<2x32xf32>
    %31 = arith.mulf %21, %30 : vector<2x32xf32>
    %32 = arith.mulf %15, %23 : vector<2x32xf32>
    %33 = arith.addf %31, %32 : vector<2x32xf32>
    %34 = math.tanh %33 : vector<2x32xf32>
    %35 = arith.mulf %29, %34 : vector<2x32xf32>
    %c0_14 = arith.constant 0 : index
    %c0_15 = arith.constant 0 : index
    %36 = vector.load %arg6[%c0_14, %c0_15] : memref<2x32xf32, #tpu.memory_space<vmem>>, vector<2x32xf32>
    tpu.vector_store %arg6[%c0_14, %c0_15], %33 {strides = array<i32>} : memref<2x32xf32, #tpu.memory_space<vmem>>, vector<2x32xf32>,
    %c0_16 = arith.constant 0 : index
    %c0_17 = arith.constant 0 : index
    %37 = vector.load %arg5[%c0_16, %c0_17] : memref<2x32xf32, #tpu.memory_space<vmem>>, vector<2x32xf32>
    tpu.vector_store %arg5[%c0_16, %c0_17], %35 {strides = array<i32>} : memref<2x32xf32, #tpu.memory_space<vmem>>, vector<2x32xf32>,
    %c0_18 = arith.constant 0 : index
    %c0_19 = arith.constant 0 : index
    %c0_20 = arith.constant 0 : index
    %c0_21 = arith.constant 0 : index
    %38 = vector.load %arg4[%c0_18, %c0_19, %c0_20, %c0_21] : memref<1x1x2x32xf32, #tpu.memory_space<vmem>>, vector<1x1x2x32xf32>
    %39 = vector.shape_cast %38 : vector<1x1x2x32xf32> to vector<2x32xf32>
    %40 = vector.shape_cast %35 : vector<2x32xf32> to vector<1x1x2x32xf32>
    tpu.vector_store %arg4[%c0_18, %c0_19, %c0_20, %c0_21], %40 {strides = array<i32>} : memref<1x1x2x32xf32, #tpu.memory_space<vmem>>, vector<1x1x2x32xf32>,
    return
  }
  func.func @transform_0(%arg0: i32, %arg1: i32) -> (i32, i32, i32, i32) {
    %c3_i32 = arith.constant 3 : i32
    %0 = arith.muli %arg0, %c3_i32 : i32
    %c2_i32 = arith.constant 2 : i32
    %1 = arith.muli %c2_i32, %arg0 : i32
    %c1_i32 = arith.constant 1 : i32
    %2 = arith.subi %c1_i32, %1 : i32
    %3 = arith.muli %2, %arg1 : i32
    %4 = arith.addi %0, %3 : i32
    %c0_i32 = arith.constant 0 : i32
    %c0_i32_0 = arith.constant 0 : i32
    %c0_i32_1 = arith.constant 0 : i32
    return %arg0, %4, %c0_i32, %c0_i32_0 : i32, i32, i32, i32
  }
  func.func @transform_1(%arg0: i32, %arg1: i32) -> (i32, i32, i32) {
    %c0_i32 = arith.constant 0 : i32
    %c0_i32_0 = arith.constant 0 : i32
    %c0_i32_1 = arith.constant 0 : i32
    return %arg0, %c0_i32, %c0_i32_0 : i32, i32, i32
  }
  func.func @transform_2(%arg0: i32, %arg1: i32) -> (i32, i32, i32, i32) {
    %c3_i32 = arith.constant 3 : i32
    %0 = arith.muli %arg0, %c3_i32 : i32
    %c2_i32 = arith.constant 2 : i32
    %1 = arith.muli %c2_i32, %arg0 : i32
    %c1_i32 = arith.constant 1 : i32
    %2 = arith.subi %c1_i32, %1 : i32
    %3 = arith.muli %2, %arg1 : i32
    %4 = arith.addi %0, %3 : i32
    %c0_i32 = arith.constant 0 : i32
    %c0_i32_0 = arith.constant 0 : i32
    %c0_i32_1 = arith.constant 0 : i32
    return %arg0, %4, %c0_i32, %c0_i32_0 : i32, i32, i32, i32
  }
}

module attributes {stable_mosaic.version = 11 : i64} {
  func.func @_head_reduce_kernel(%arg0: memref<4x2x128xf32, #tpu.memory_space<vmem>>, %arg1: memref<2x128xf32, #tpu.memory_space<vmem>>) attributes {dimension_semantics = [], scalar_prefetch = 0 : i64, scratch_operands = 0 : i64, tpu.core_type = #tpu.core_type<tc>} {
    %c0 = arith.constant 0 : index
    %c0_0 = arith.constant 0 : index
    %c0_1 = arith.constant 0 : index
    %0 = vector.load %arg0[%c0, %c0_0, %c0_1] : memref<4x2x128xf32, #tpu.memory_space<vmem>>, vector<4x2x128xf32>
    %cst = arith.constant dense<0xFF800000> : vector<4x128xf32>
    %1 = vector.multi_reduction <maximumf>, %0, %cst [1] : vector<4x2x128xf32> to vector<4x128xf32>
    %2 = vector.shape_cast %1 : vector<4x128xf32> to vector<4x1x128xf32>
    %3 = vector.broadcast %2 : vector<4x1x128xf32> to vector<4x2x128xf32>
    %4 = arith.subf %0, %3 : vector<4x2x128xf32>
    %5 = math.exp %4 : vector<4x2x128xf32>
    %cst_2 = arith.constant dense<0.000000e+00> : vector<4x128xf32>
    %6 = vector.multi_reduction <add>, %5, %cst_2 [1] : vector<4x2x128xf32> to vector<4x128xf32>
    %7 = vector.shape_cast %6 : vector<4x128xf32> to vector<4x1x128xf32>
    %8 = vector.broadcast %7 : vector<4x1x128xf32> to vector<4x2x128xf32>
    %9 = arith.divf %5, %8 : vector<4x2x128xf32>
    %cst_3 = arith.constant dense<0.000000e+00> : vector<2x128xf32>
    %10 = vector.multi_reduction <add>, %9, %cst_3 [0] : vector<4x2x128xf32> to vector<2x128xf32>
    %cst_4 = arith.constant 4.000000e+00 : f32
    %11 = vector.broadcast %cst_4 : f32 to vector<2x128xf32>
    %12 = arith.divf %10, %11 : vector<2x128xf32>
    %13 = math.log %12 : vector<2x128xf32>
    %c0_5 = arith.constant 0 : index
    %c0_6 = arith.constant 0 : index
    %14 = vector.load %arg1[%c0_5, %c0_6] : memref<2x128xf32, #tpu.memory_space<vmem>>, vector<2x128xf32>
    tpu.vector_store %arg1[%c0_5, %c0_6], %13 {strides = array<i32>} : memref<2x128xf32, #tpu.memory_space<vmem>>, vector<2x128xf32>,
    return
  }
}

module attributes {stable_mosaic.version = 11 : i64} {
  func.func @_gemm_bias_kernel(%arg0: i32, %arg1: memref<8x64xf32, #tpu.memory_space<vmem>>, %arg2: memref<64x128xf32, #tpu.memory_space<vmem>>, %arg3: memref<1x128xf32, #tpu.memory_space<vmem>>, %arg4: memref<8x128xf32, #tpu.memory_space<vmem>>) attributes {dimension_semantics = [#tpu.dimension_semantics<parallel>], iteration_bounds = array<i64: 1>, scalar_prefetch = 0 : i64, scratch_operands = 0 : i64, tpu.core_type = #tpu.core_type<tc>, window_params = [{transform_indices = @transform_0, window_bounds = array<i64: 8, 64>}, {pipeline_mode = #tpu.pipeline_mode<synchronous>, transform_indices = @transform_1, window_bounds = array<i64: 64, 128>}, {pipeline_mode = #tpu.pipeline_mode<synchronous>, transform_indices = @transform_2, window_bounds = array<i64: 1, 128>}, {transform_indices = @transform_3, window_bounds = array<i64: 8, 128>}]} {
    %c0 = arith.constant 0 : index
    %c0_0 = arith.constant 0 : index
    %0 = vector.load %arg1[%c0, %c0_0] : memref<8x64xf32, #tpu.memory_space<vmem>>, vector<8x64xf32>
    %c0_1 = arith.constant 0 : index
    %c0_2 = arith.constant 0 : index
    %1 = vector.load %arg2[%c0_1, %c0_2] : memref<64x128xf32, #tpu.memory_space<vmem>>, vector<64x128xf32>
    %cst = arith.constant dense<0.000000e+00> : vector<8x128xf32>
    %2 = tpu.matmul %0, %1, %cst {dimension_numbers = #tpu.dot_dimension_numbers<[1], [0], [0], [1], [0, 0, 1, 1], [], []>} : vector<8x64xf32>, vector<64x128xf32>, vector<8x128xf32> -> vector<8x128xf32>
    %c0_3 = arith.constant 0 : index
    %c0_4 = arith.constant 0 : index
    %3 = vector.load %arg3[%c0_3, %c0_4] : memref<1x128xf32, #tpu.memory_space<vmem>>, vector<1x128xf32>
    %4 = vector.broadcast %3 : vector<1x128xf32> to vector<8x128xf32>
    %5 = arith.addf %2, %4 : vector<8x128xf32>
    %c0_5 = arith.constant 0 : index
    %c0_6 = arith.constant 0 : index
    %6 = vector.load %arg4[%c0_5, %c0_6] : memref<8x128xf32, #tpu.memory_space<vmem>>, vector<8x128xf32>
    tpu.vector_store %arg4[%c0_5, %c0_6], %5 {strides = array<i32>} : memref<8x128xf32, #tpu.memory_space<vmem>>, vector<8x128xf32>,
    return
  }
  func.func @transform_0(%arg0: i32) -> (i32, i32) {
    %c0_i32 = arith.constant 0 : i32
    %c0_i32_0 = arith.constant 0 : i32
    return %arg0, %c0_i32 : i32, i32
  }
  func.func @transform_1(%arg0: i32) -> (i32, i32) {
    %c0_i32 = arith.constant 0 : i32
    %c0_i32_0 = arith.constant 0 : i32
    %c0_i32_1 = arith.constant 0 : i32
    return %c0_i32, %c0_i32_0 : i32, i32
  }
  func.func @transform_2(%arg0: i32) -> (i32, i32) {
    %c0_i32 = arith.constant 0 : i32
    %c0_i32_0 = arith.constant 0 : i32
    %c0_i32_1 = arith.constant 0 : i32
    return %c0_i32, %c0_i32_0 : i32, i32
  }
  func.func @transform_3(%arg0: i32) -> (i32, i32) {
    %c0_i32 = arith.constant 0 : i32
    %c0_i32_0 = arith.constant 0 : i32
    return %arg0, %c0_i32 : i32, i32
  }
}

</mosaic_0001>

<bundles_post_ra>
// kernel: lrcn_forward.11
= control target key start
LH: loop header
LB: loop body
LE: loop exit
PB: predicated region body
PF: predicated region fallthrough
CT: control target
= control target key end

     0   :  { %s829_s12 = smov 0   ;;  %s1102_s0 = inlined_call_operand.vmem [shape: f32[512,147], index: 0, kind: input, shape index: {}]   ;;  %s1103_s1 = inlined_call_operand.vmem [shape: f32[147,128], index: 1, kind: input, shape index: {}]   ;;  %s1104_s2 = inlined_call_operand.vmem [shape: f32[1,128], index: 2, kind: input, shape index: {}]   ;;  %s1105_s3 = inlined_call_operand.vmem [shape: f32[512,128], index: 3, kind: output, shape index: {}]  }
   0x1 LB: > { %s711_s13 = sadd.s32 4294967295, %s807_s12   ;;  %p715_p0 = scmp.ge.s32.totalorder %s807_s12, 1  ;;  %s807_s12 = sphi %s829_s12, %s13_s12  }
   0x2   : > { %p139_p1 = scmp.lt.s32.totalorder %s807_s12, 3 }
   0x4   : > { %p140_p2 = pnand %p715_p0, %p139_p1 }
   0x5   : > { %s716_s20 = sshll.u32 (!%p140_p2), %s711_s13, 5 }
   0x6   : > { %143 = sbr.rel (%p140_p2) target bundleno = 303 (0x12f), region = 32  ;;  %p165_p3 = scmp.lt.s32.totalorder (!%p140_p2), %s716_s20, 63 }
   0xb   : > { %v256_v0 = vld [vmem:[%s1103_s1 + $0x78] sm:$0xff]  ;;  %v255_v1 = vld [vmem:[%s1103_s1 + $0x70] sm:$0xff]  ;;  %vm361_vm0 = vcmask 1042432   ;;  %v851_v3 = vld [vmem:[%s1103_s1 + $0x88] sm:$0xff]  ;;  %s1107_s20 = smov (!%p165_p3, %s716_s20), 63  ;;  %vm264_vm1 = vcmask 154624  }
   0xc   : > { %v846_v2 = vld [vmem:[%s1103_s1 + $0x90] sm:$0x7]  ;;  %365 = vmatpush.msra.mxu0 %v256_v0  ;;  %757 = vmatpush.msra.mxu2 %v256_v0  ;;  %v254_v4 = vld [vmem:[%s1103_s1 + $0x68] sm:$0xff]  ;;  %v861_v5 = vld [vmem:[%s1103_s1 + $0x80] sm:$0xff]  ;;  %s756_s29 = sshll.u32 %s1107_s20, 4  ;;  %s720_s8 = sshll.u32 %s1107_s20, 3 }
   0xd   : > { %758 = vmatpush.msra.mxu3 %v256_v0  ;;  %721 = vmatpush.msk.msra.mxu1 %vm361_vm0, %v846_v2  ;;  %v253_v6 = vld [vmem:[%s1103_s1 + $0x60] sm:$0xff]  ;;  %s874_s5 = scalar_lea.vmem %s1102_s0, %s756_s29  ;;  %v252_v7 = vld [vmem:[%s1103_s1 + $0x58] sm:$0xff]  ;;  %v251_v9 = vld [vmem:[%s1103_s1 + $0x50] sm:$0xff]  ;;  %s1022_s11 = scalar_lea.vmem %s1105_s3, %s720_s8 }
   0xe   : > { %366 = vmatpush.msra.mxu0 %v255_v1  ;;  %759 = vmatpush.msra.mxu2 %v255_v1  ;;  %v178_v8 = vld [vmem:[%s874_s5 + $0x8] sm:$0xff]  ;;  %v249_v11 = vld [vmem:[%s1103_s1 + $0x40] sm:$0xff]  ;;  %v180_v12 = vld [vmem:[%s874_s5 + $0x18] sm:$0xff] }
   0xf   : > { %760 = vmatpush.msra.mxu3 %v255_v1  ;;  %492 = vmatpush.msra.mxu1 %v851_v3  ;;  %v250_v10 = vld [vmem:[%s1103_s1 + $0x48] sm:$0xff]  ;;  %v248_v13 = vld [vmem:[%s1103_s1 + $0x38] sm:$0xff]  ;;  %v247_v14 = vld [vmem:[%s1103_s1 + $0x30] sm:$0xff] }
  0x10   : > { %367 = vmatpush.msra.mxu0 %v254_v4  ;;  %761 = vmatpush.msra.mxu2 %v254_v4  ;;  %v246_v15 = vld [vmem:[%s1103_s1 + $0x28] sm:$0xff]  ;;  %v245_v16 = vld [vmem:[%s1103_s1 + $0x20] sm:$0xff]  ;;  %v244_v18 = vld [vmem:[%s1103_s1 + $0x18] sm:$0xff] }
  0x11   : > { %762 = vmatpush.msra.mxu3 %v254_v4  ;;  %493 = vmatpush.msra.mxu1 %v861_v5  ;;  %v182_v17 = vld [vmem:[%s874_s5 + $0x28] sm:$0xff]  ;;  %v243_v19 = vld [vmem:[%s1103_s1 + $0x10] sm:$0xff]  ;;  %v241_v21 = vld [vmem:[%s1103_s1] sm:$0xff] }
  0x12   : > { %368 = vmatpush.msra.mxu0 %v253_v6  ;;  %763 = vmatpush.msra.mxu2 %v253_v6  ;;  %v242_v20 = vld [vmem:[%s1103_s1 + $0x8] sm:$0xff]  ;;  %v177_v22 = vld [vmem:[%s874_s5] sm:$0xff]  ;;  %v207_v23 = vld [vmem:[%s874_s5 + $0xf0] sm:$0xff] }
  0x13   : > { %764 = vmatpush.msra.mxu3 %v253_v6  ;;  %722 = vmatmul.msk.f32.vlgmr.msra.gmra.mxu1 %vm264_vm1, %v178_v8  ;;  %v239_v24 = vld [vmem:[%s874_s5 + $0x1f0] sm:$0xff]  ;;  %v184_v25 = vld [vmem:[%s874_s5 + $0x38] sm:$0xff]  ;;  %v209_v27 = vld [vmem:[%s874_s5 + $0x100] sm:$0xff] }
  0x14   : > { %369 = vmatpush.msra.mxu0 %v252_v7  ;;  %765 = vmatpush.msra.mxu2 %v252_v7  ;;  %v179_v26 = vld [vmem:[%s874_s5 + $0x10] sm:$0xff]  ;;  %v214_v28 = vld [vmem:[%s874_s5 + $0x128] sm:$0xff]  ;;  %v181_v30 = vld [vmem:[%s874_s5 + $0x20] sm:$0xff] }
  0x15   : > { %766 = vmatpush.msra.mxu3 %v252_v7  ;;  %v186_v29 = vld [vmem:[%s874_s5 + $0x48] sm:$0xff]  ;;  %v211_v31 = vld [vmem:[%s874_s5 + $0x110] sm:$0xff]  ;;  %v216_v32 = vld [vmem:[%s874_s5 + $0x138] sm:$0xff] }
  0x16   : > { %370 = vmatpush.msra.mxu0 %v251_v9  ;;  %767 = vmatpush.msra.mxu2 %v251_v9  ;;  %v188_v33 = vld [vmem:[%s874_s5 + $0x58] sm:$0xff]  ;;  %v183_v34 = vld [vmem:[%s874_s5 + $0x30] sm:$0xff]  ;;  %v213_v35 = vld [vmem:[%s874_s5 + $0x120] sm:$0xff] }
  0x17   : > { %768 = vmatpush.msra.mxu3 %v251_v9  ;;  %v218_v36 = vld [vmem:[%s874_s5 + $0x148] sm:$0xff]  ;;  %v185_v38 = vld [vmem:[%s874_s5 + $0x40] sm:$0xff]  ;;  %v215_v39 = vld [vmem:[%s874_s5 + $0x130] sm:$0xff] }
  0x18   : > { %371 = vmatpush.msra.mxu0 %v250_v10  ;;  %769 = vmatpush.msra.mxu2 %v250_v10  ;;  %v190_v37 = vld [vmem:[%s874_s5 + $0x68] sm:$0xff]  ;;  %v220_v40 = vld [vmem:[%s874_s5 + $0x158] sm:$0xff]  ;;  %v187_v42 = vld [vmem:[%s874_s5 + $0x50] sm:$0xff] }
  0x19   : > { %770 = vmatpush.msra.mxu3 %v250_v10  ;;  %v192_v41 = vld [vmem:[%s874_s5 + $0x78] sm:$0xff]  ;;  %v217_v43 = vld [vmem:[%s874_s5 + $0x140] sm:$0xff]  ;;  %v222_v44 = vld [vmem:[%s874_s5 + $0x168] sm:$0xff] }
  0x1a   : > { %372 = vmatpush.msra.mxu0 %v249_v11  ;;  %771 = vmatpush.msra.mxu2 %v249_v11  ;;  %v194_v45 = vld [vmem:[%s874_s5 + $0x88] sm:$0xff]  ;;  %v189_v46 = vld [vmem:[%s874_s5 + $0x60] sm:$0xff]  ;;  %v219_v47 = vld [vmem:[%s874_s5 + $0x150] sm:$0xff] }
  0x1b   : > { %772 = vmatpush.msra.mxu3 %v249_v11  ;;  %723 = vmatmul.msk.f32.gmra.mxu1 %vm264_vm1, %v180_v12  ;;  %v224_v48 = vld [vmem:[%s874_s5 + $0x178] sm:$0xff]  ;;  %v191_v50 = vld [vmem:[%s874_s5 + $0x70] sm:$0xff]  ;;  %v221_v51 = vld [vmem:[%s874_s5 + $0x160] sm:$0xff] }
  0x1c   : > { %373 = vmatpush.msra.mxu0 %v248_v13  ;;  %773 = vmatpush.msra.mxu2 %v248_v13  ;;  %v196_v49 = vld [vmem:[%s874_s5 + $0x98] sm:$0xff]  ;;  %v226_v52 = vld [vmem:[%s874_s5 + $0x188] sm:$0xff]  ;;  %v193_v54 = vld [vmem:[%s874_s5 + $0x80] sm:$0xff] }
  0x1d   : > { %774 = vmatpush.msra.mxu3 %v248_v13  ;;  %v198_v53 = vld [vmem:[%s874_s5 + $0xa8] sm:$0xff]  ;;  %v223_v55 = vld [vmem:[%s874_s5 + $0x170] sm:$0xff]  ;;  %v228_v56 = vld [vmem:[%s874_s5 + $0x198] sm:$0xff] }
  0x1e   : > { %374 = vmatpush.msra.mxu0 %v247_v14  ;;  %775 = vmatpush.msra.mxu2 %v247_v14  ;;  %v200_v57 = vld [vmem:[%s874_s5 + $0xb8] sm:$0xff]  ;;  %v195_v58 = vld [vmem:[%s874_s5 + $0x90] sm:$0xff]  ;;  %v225_v59 = vld [vmem:[%s874_s5 + $0x180] sm:$0xff] }
  0x1f   : > { %776 = vmatpush.msra.mxu3 %v247_v14  ;;  %v230_v60 = vld [vmem:[%s874_s5 + $0x1a8] sm:$0xff]  ;;  %v197_v62 = vld [vmem:[%s874_s5 + $0xa0] sm:$0xff]  ;;  %v227_v63 = vld [vmem:[%s874_s5 + $0x190] sm:$0xff] }
  0x20   : > { %375 = vmatpush.msra.mxu0 %v246_v15  ;;  %777 = vmatpush.msra.mxu2 %v246_v15  ;;  %v202_v61 = vld [vmem:[%s874_s5 + $0xc8] sm:$0xff]  ;;  %v232_v0 = vld [vmem:[%s874_s5 + $0x1b8] sm:$0xff]  ;;  %v201_v6 = vld [vmem:[%s874_s5 + $0xc0] sm:$0xff] }
  0x21   : > { %778 = vmatpush.msra.mxu3 %v246_v15  ;;  %v204_v1 = vld [vmem:[%s874_s5 + $0xd8] sm:$0xff]  ;;  %v234_v4 = vld [vmem:[%s874_s5 + $0x1c8] sm:$0xff]  ;;  %v231_v7 = vld [vmem:[%s874_s5 + $0x1b0] sm:$0xff] }
  0x22   : > { %376 = vmatpush.msra.mxu0 %v245_v16  ;;  %779 = vmatpush.msra.mxu2 %v245_v16  ;;  %v236_v8 = vld [vmem:[%s874_s5 + $0x1d8] sm:$0xff]  ;;  %v203_v11 = vld [vmem:[%s874_s5 + $0xd0] sm:$0xff]  ;;  %v233_v12 = vld [vmem:[%s874_s5 + $0x1c0] sm:$0xff] }
  0x23   : > { %780 = vmatpush.msra.mxu3 %v245_v16  ;;  %724 = vmatmul.msk.f32.gmra.mxu1 %vm264_vm1, %v182_v17  ;;  %v208_v9 = vld [vmem:[%s874_s5 + $0xf8] sm:$0xff]  ;;  %v238_v13 = vld [vmem:[%s874_s5 + $0x1e8] sm:$0xff]  ;;  %v205_v16 = vld [vmem:[%s874_s5 + $0xe0] sm:$0xff] }
  0x24   : > { %377 = vmatpush.msra.mxu0 %v244_v18  ;;  %781 = vmatpush.msra.mxu2 %v244_v18  ;;  %v210_v14 = vld [vmem:[%s874_s5 + $0x108] sm:$0xff]  ;;  %v235_v17 = vld [vmem:[%s874_s5 + $0x1d0] sm:$0xff] }
  0x25   : > { %782 = vmatpush.msra.mxu3 %v244_v18  ;;  %v240_v18 = vld [vmem:[%s874_s5 + $0x1f8] sm:$0xff] }
  0x26   : > { %378 = vmatpush.msra.mxu0 %v243_v19  ;;  %783 = vmatpush.msra.mxu2 %v243_v19 }
  0x27   : > { %784 = vmatpush.msra.mxu3 %v243_v19  ;;  %v212_v19 = vld [vmem:[%s874_s5 + $0x118] sm:$0xff] }
  0x28   : > { %379 = vmatpush.msra.mxu0 %v242_v20  ;;  %785 = vmatpush.msra.mxu2 %v242_v20 }
  0x29   : > { %786 = vmatpush.msra.mxu3 %v242_v20 }
  0x2a   : > { %380 = vmatpush.msra.mxu0 %v241_v21  ;;  %787 = vmatpush.msra.mxu2 %v241_v21 }
  0x2b   : > { %788 = vmatpush.msra.mxu3 %v241_v21  ;;  %381 = vmatmul.f32.vlgmr.msra.gmra.mxu0 %v177_v22  ;;  %v237_v21 = vld [vmem:[%s874_s5 + $0x1e0] sm:$0xff] }
  0x2c   : > { %426 = vmatmul.f32.vlgmr.msra.gmra.mxu2 %v207_v23  ;;  %474 = vmatmul.f32.vlgmr.msra.gmra.mxu3 %v239_v24  ;;  %v1015_v22 = vld [vmem:[%s1104_s2] ss:$0 sm:$0xff] }
  0x2d   : > { %725 = vmatmul.msk.f32.gmra.mxu1 %vm264_vm1, %v184_v25  ;;  %789 = vmatpush.msk.msrb.mxu3 %vm361_vm0, %v846_v2  ;;  %v199_v2 = vld [vmem:[%s874_s5 + $0xb0] sm:$0xff] }
  0x2f   : > { %790 = vmatpush.msrb.mxu3 %v851_v3  ;;  %v229_v3 = vld [vmem:[%s874_s5 + $0x1a0] sm:$0xff] }
  0x31   : > { %791 = vmatpush.msrb.mxu3 %v861_v5  ;;  %v206_v5 = vld [vmem:[%s874_s5 + $0xe8] sm:$0xff] }
  0x33   : > { %384 = vmatmul.f32.gmra.mxu0 %v179_v26 }
  0x34   : > { %429 = vmatmul.f32.gmra.mxu2 %v209_v27  ;;  %740 = vmatmul.msk.f32.vlgmr.msrb.gmra.mxu3 %vm264_vm1, %v214_v28 }
  0x35   : > { %726 = vmatmul.msk.f32.gmra.mxu1 %vm264_vm1, %v186_v29 }
  0x3b   : > { %387 = vmatmul.f32.gmra.mxu0 %v181_v30 }
  0x3c   : > { %432 = vmatmul.f32.gmra.mxu2 %v211_v31  ;;  %741 = vmatmul.msk.f32.gmra.mxu3 %vm264_vm1, %v216_v32 }
  0x3d   : > { %727 = vmatmul.msk.f32.gmra.mxu1 %vm264_vm1, %v188_v33 }
  0x43   : > { %390 = vmatmul.f32.gmra.mxu0 %v183_v34 }
  0x44   : > { %435 = vmatmul.f32.gmra.mxu2 %v213_v35  ;;  %742 = vmatmul.msk.f32.gmra.mxu3 %vm264_vm1, %v218_v36 }
  0x45   : > { %728 = vmatmul.msk.f32.gmra.mxu1 %vm264_vm1, %v190_v37 }
  0x4b   : > { %393 = vmatmul.f32.gmra.mxu0 %v185_v38 }
  0x4c   : > { %438 = vmatmul.f32.gmra.mxu2 %v215_v39  ;;  %743 = vmatmul.msk.f32.gmra.mxu3 %vm264_vm1, %v220_v40 }
  0x4d   : > { %729 = vmatmul.msk.f32.gmra.mxu1 %vm264_vm1, %v192_v41 }
  0x53   : > { %396 = vmatmul.f32.gmra.mxu0 %v187_v42 }
  0x54   : > { %441 = vmatmul.f32.gmra.mxu2 %v217_v43  ;;  %744 = vmatmul.msk.f32.gmra.mxu3 %vm264_vm1, %v222_v44 }
  0x55   : > { %730 = vmatmul.msk.f32.gmra.mxu1 %vm264_vm1, %v194_v45 }
  0x5b   : > { %399 = vmatmul.f32.gmra.mxu0 %v189_v46 }
  0x5c   : > { %444 = vmatmul.f32.gmra.mxu2 %v219_v47  ;;  %745 = vmatmul.msk.f32.gmra.mxu3 %vm264_vm1, %v224_v48 }
  0x5d   : > { %731 = vmatmul.msk.f32.gmra.mxu1 %vm264_vm1, %v196_v49 }
  0x63   : > { %402 = vmatmul.f32.gmra.mxu0 %v191_v50 }
  0x64   : > { %447 = vmatmul.f32.gmra.mxu2 %v221_v51  ;;  %746 = vmatmul.msk.f32.gmra.mxu3 %vm264_vm1, %v226_v52 }
  0x65   : > { %732 = vmatmul.msk.f32.gmra.mxu1 %vm264_vm1, %v198_v53 }
  0x6b   : > { %405 = vmatmul.f32.gmra.mxu0 %v193_v54 }
  0x6c   : > { %450 = vmatmul.f32.gmra.mxu2 %v223_v55  ;;  %747 = vmatmul.msk.f32.gmra.mxu3 %vm264_vm1, %v228_v56 }
  0x6d   : > { %733 = vmatmul.msk.f32.gmra.mxu1 %vm264_vm1, %v200_v57 }
  0x73   : > { %408 = vmatmul.f32.gmra.mxu0 %v195_v58 }
  0x74   : > { %453 = vmatmul.f32.gmra.mxu2 %v225_v59  ;;  %748 = vmatmul.msk.f32.gmra.mxu3 %vm264_vm1, %v230_v60 }
  0x75   : > { %734 = vmatmul.msk.f32.gmra.mxu1 %vm264_vm1, %v202_v61 }
  0x7b   : > { %411 = vmatmul.f32.gmra.mxu0 %v197_v62 }
  0x7c   : > { %456 = vmatmul.f32.gmra.mxu2 %v227_v63  ;;  %749 = vmatmul.msk.f32.gmra.mxu3 %vm264_vm1, %v232_v0 }
  0x7d   : > { %735 = vmatmul.msk.f32.gmra.mxu1 %vm264_vm1, %v204_v1 }
  0x83   : > { %414 = vmatmul.f32.gmra.mxu0 %v199_v2 }
  0x84   : > { %459 = vmatmul.f32.gmra.mxu2 %v229_v3  ;;  %750 = vmatmul.msk.f32.gmra.mxu3 %vm264_vm1, %v234_v4 }
  0x85   : > { %736 = vmatmul.msk.f32.gmra.mxu1 %vm264_vm1, %v206_v5 }
  0x8b   : > { %417 = vmatmul.f32.gmra.mxu0 %v201_v6 }
  0x8c   : > { %462 = vmatmul.f32.gmra.mxu2 %v231_v7  ;;  %751 = vmatmul.msk.f32.gmra.mxu3 %vm264_vm1, %v236_v8 }
  0x8d   : > { %737 = vmatmul.msk.f32.gmra.mxu1 %vm264_vm1, %v208_v9 }
  0x90   : > { %v495_v10 = vpop.f32.mrf.mxu1 }
  0x93   : > { %420 = vmatmul.f32.gmra.mxu0 %v203_v11 }
  0x94   : > { %465 = vmatmul.f32.gmra.mxu2 %v233_v12  ;;  %752 = vmatmul.msk.f32.gmra.mxu3 %vm264_vm1, %v238_v13 }
  0x95   : > { %738 = vmatmul.msk.f32.gmra.mxu1 %vm264_vm1, %v210_v14 }
  0x98   : > { %v498_v15 = vpop.f32.mrf.mxu1 }
  0x9b   : > { %423 = vmatmul.f32.gmra.mxu0 %v205_v16 }
  0x9c   : > { %468 = vmatmul.f32.gmra.mxu2 %v235_v17  ;;  %753 = vmatmul.msk.f32.gmra.mxu3 %vm264_vm1, %v240_v18 }
  0x9d   : > { %739 = vmatmul.msk.f32.gmra.mxu1 %vm264_vm1, %v212_v19 }
  0xa0   : > { %v501_v20 = vpop.f32.mrf.mxu1 }
  0xa4   : > { %471 = vmatmul.f32.gmra.mxu2 %v237_v21 }
  0xa8   : > { %v382_v23 = vpop.f32.mrf.mxu0 }
  0xa9   : > { %v383_v24 = vadd.f32 %v1015_v22, %v382_v23 }
  0xaa   : > { %v504_v25 = vpop.f32.mrf.mxu1 }
  0xab   : > { %v496_v26 = vadd.f32 %v495_v10, %v383_v24 }
  0xad   : > { %v591_v27 = vmax.f32 %v496_v26, 0.0 }
  0xaf   : > { %623 = vst [vmem:[%s1022_s11] sm:$0xff] %v591_v27  ;;  %v1025_v28 = vpop.f32.mrf.mxu2  ;;  %v1027_v29 = vpop.f32.mrf.mxu3 }
  0xb0   : > { %v385_v30 = vpop.f32.mrf.mxu0 }
  0xb1   : > { %v386_v31 = vadd.f32 %v1015_v22, %v385_v30 }
  0xb2   : > { %v507_v32 = vpop.f32.mrf.mxu1 }
  0xb3   : > { %v499_v33 = vadd.f32 %v498_v15, %v386_v31 }
  0xb5   : > { %v592_v34 = vmax.f32 %v499_v33, 0.0 }
  0xb7   : > { %624 = vst [vmem:[%s1022_s11 + $0x8] sm:$0xff] %v592_v34  ;;  %v1031_v35 = vpop.f32.mrf.mxu2  ;;  %v549_v36 = vpop.f32.mrf.mxu3 }
  0xb8   : > { %v388_v37 = vpop.f32.mrf.mxu0 }
  0xb9   : > { %v389_v38 = vadd.f32 %v1015_v22, %v388_v37 }
  0xba   : > { %v510_v39 = vpop.f32.mrf.mxu1 }
  0xbb   : > { %v502_v40 = vadd.f32 %v501_v20, %v389_v38 }
  0xbd   : > { %v593_v41 = vmax.f32 %v502_v40, 0.0 }
  0xbf   : > { %625 = vst [vmem:[%s1022_s11 + $0x10] sm:$0xff] %v593_v41  ;;  %v1035_v42 = vpop.f32.mrf.mxu2  ;;  %v552_v43 = vpop.f32.mrf.mxu3 }
  0xc0   : > { %v391_v44 = vpop.f32.mrf.mxu0 }
  0xc1   : > { %v392_v45 = vadd.f32 %v1015_v22, %v391_v44 }
  0xc2   : > { %v513_v46 = vpop.f32.mrf.mxu1 }
  0xc3   : > { %v505_v47 = vadd.f32 %v504_v25, %v392_v45 }
  0xc5   : > { %v594_v48 = vmax.f32 %v505_v47, 0.0 }
  0xc7   : > { %626 = vst [vmem:[%s1022_s11 + $0x18] sm:$0xff] %v594_v48  ;;  %v436_v49 = vpop.f32.mrf.mxu2  ;;  %v555_v50 = vpop.f32.mrf.mxu3 }
  0xc8   : > { %v437_v51 = vadd.f32 %v1015_v22, %v436_v49  ;;  %v394_v52 = vpop.f32.mrf.mxu0 }
  0xc9   : > { %v395_v53 = vadd.f32 %v1015_v22, %v394_v52 }
  0xca   : > { %v550_v54 = vadd.f32 %v549_v36, %v437_v51  ;;  %v516_v55 = vpop.f32.mrf.mxu1 }
  0xcb   : > { %v508_v56 = vadd.f32 %v507_v32, %v395_v53 }
  0xcc   : > { %v609_v57 = vmax.f32 %v550_v54, 0.0 }
  0xcd   : > { %v595_v58 = vmax.f32 %v508_v56, 0.0 }
  0xce   : > { %641 = vst [vmem:[%s1022_s11 + $0x90] sm:$0xff] %v609_v57 }
  0xcf   : > { %627 = vst [vmem:[%s1022_s11 + $0x20] sm:$0xff] %v595_v58  ;;  %v439_v59 = vpop.f32.mrf.mxu2  ;;  %v558_v60 = vpop.f32.mrf.mxu3 }
  0xd0   : > { %v440_v61 = vadd.f32 %v1015_v22, %v439_v59  ;;  %v397_v62 = vpop.f32.mrf.mxu0 }
  0xd1   : > { %v398_v63 = vadd.f32 %v1015_v22, %v397_v62 }
  0xd2   : > { %v553_v0 = vadd.f32 %v552_v43, %v440_v61  ;;  %v519_v1 = vpop.f32.mrf.mxu1 }
  0xd3   : > { %v511_v2 = vadd.f32 %v510_v39, %v398_v63 }
  0xd4   : > { %v610_v3 = vmax.f32 %v553_v0, 0.0 }
  0xd5   : > { %v596_v4 = vmax.f32 %v511_v2, 0.0 }
  0xd6   : > { %642 = vst [vmem:[%s1022_s11 + $0x98] sm:$0xff] %v610_v3 }
  0xd7   : > { %628 = vst [vmem:[%s1022_s11 + $0x28] sm:$0xff] %v596_v4  ;;  %v442_v5 = vpop.f32.mrf.mxu2  ;;  %v561_v6 = vpop.f32.mrf.mxu3 }
  0xd8   : > { %v443_v7 = vadd.f32 %v1015_v22, %v442_v5  ;;  %v400_v8 = vpop.f32.mrf.mxu0 }
  0xd9   : > { %v401_v9 = vadd.f32 %v1015_v22, %v400_v8 }
  0xda   : > { %v556_v10 = vadd.f32 %v555_v50, %v443_v7  ;;  %v522_v11 = vpop.f32.mrf.mxu1 }
  0xdb   : > { %v514_v12 = vadd.f32 %v513_v46, %v401_v9 }
  0xdc   : > { %v611_v13 = vmax.f32 %v556_v10, 0.0  ;;  %v428_v10 = vadd.f32 %v1015_v22, %v1025_v28 }
  0xdd   : > { %v597_v14 = vmax.f32 %v514_v12, 0.0 }
  0xde   : > { %643 = vst [vmem:[%s1022_s11 + $0xa0] sm:$0xff] %v611_v13 }
  0xdf   : > { %629 = vst [vmem:[%s1022_s11 + $0x30] sm:$0xff] %v597_v14  ;;  %v445_v15 = vpop.f32.mrf.mxu2  ;;  %v564_v16 = vpop.f32.mrf.mxu3 }
  0xe0   : > { %v446_v17 = vadd.f32 %v1015_v22, %v445_v15  ;;  %v403_v18 = vpop.f32.mrf.mxu0 }
  0xe1   : > { %v404_v19 = vadd.f32 %v1015_v22, %v403_v18 }
  0xe2   : > { %v559_v20 = vadd.f32 %v558_v60, %v446_v17  ;;  %v525_v21 = vpop.f32.mrf.mxu1 }
  0xe3   : > { %v517_v23 = vadd.f32 %v516_v55, %v404_v19 }
  0xe4   : > { %v612_v24 = vmax.f32 %v559_v20, 0.0 }
  0xe5   : > { %v598_v25 = vmax.f32 %v517_v23, 0.0  ;;  %v431_v23 = vadd.f32 %v1015_v22, %v1031_v35 }
  0xe6   : > { %644 = vst [vmem:[%s1022_s11 + $0xa8] sm:$0xff] %v612_v24 }
  0xe7   : > { %630 = vst [vmem:[%s1022_s11 + $0x38] sm:$0xff] %v598_v25  ;;  %v448_v26 = vpop.f32.mrf.mxu2  ;;  %v567_v27 = vpop.f32.mrf.mxu3 }
  0xe8   : > { %v449_v30 = vadd.f32 %v1015_v22, %v448_v26  ;;  %v406_v31 = vpop.f32.mrf.mxu0 }
  0xe9   : > { %v407_v32 = vadd.f32 %v1015_v22, %v406_v31 }
  0xea   : > { %v562_v33 = vadd.f32 %v561_v6, %v449_v30  ;;  %v528_v34 = vpop.f32.mrf.mxu1 }
  0xeb   : > { %v520_v36 = vadd.f32 %v519_v1, %v407_v32 }
  0xec   : > { %v613_v37 = vmax.f32 %v562_v33, 0.0 }
  0xed   : > { %v599_v38 = vmax.f32 %v520_v36, 0.0 }
  0xee   : > { %645 = vst [vmem:[%s1022_s11 + $0xb0] sm:$0xff] %v613_v37 }
  0xef   : > { %631 = vst [vmem:[%s1022_s11 + $0x40] sm:$0xff] %v599_v38  ;;  %v451_v39 = vpop.f32.mrf.mxu2  ;;  %v570_v40 = vpop.f32.mrf.mxu3  ;;  %v434_v38 = vadd.f32 %v1015_v22, %v1035_v42 }
  0xf0   : > { %v452_v41 = vadd.f32 %v1015_v22, %v451_v39  ;;  %v409_v43 = vpop.f32.mrf.mxu0 }
  0xf1   : > { %v410_v44 = vadd.f32 %v1015_v22, %v409_v43 }
  0xf2   : > { %v565_v45 = vadd.f32 %v564_v16, %v452_v41  ;;  %v531_v46 = vpop.f32.mrf.mxu1 }
  0xf3   : > { %v523_v47 = vadd.f32 %v522_v11, %v410_v44 }
  0xf4   : > { %v614_v48 = vmax.f32 %v565_v45, 0.0 }
  0xf5   : > { %v600_v49 = vmax.f32 %v523_v47, 0.0 }
  0xf6   : > { %646 = vst [vmem:[%s1022_s11 + $0xb8] sm:$0xff] %v614_v48  ;;  %v476_v48 = vadd.f32 %v1015_v22, %v1027_v29 }
  0xf7   : > { %632 = vst [vmem:[%s1022_s11 + $0x48] sm:$0xff] %v600_v49  ;;  %v454_v50 = vpop.f32.mrf.mxu2  ;;  %v573_v51 = vpop.f32.mrf.mxu3 }
  0xf8   : > { %v455_v52 = vadd.f32 %v1015_v22, %v454_v50  ;;  %v412_v53 = vpop.f32.mrf.mxu0 }
  0xf9   : > { %v413_v54 = vadd.f32 %v1015_v22, %v412_v53 }
  0xfa   : > { %v568_v55 = vadd.f32 %v567_v27, %v455_v52  ;;  %v534_v56 = vpop.f32.mrf.mxu1 }
  0xfb   : > { %v526_v57 = vadd.f32 %v525_v21, %v413_v54 }
  0xfc   : > { %v615_v58 = vmax.f32 %v568_v55, 0.0 }
  0xfd   : > { %v601_v59 = vmax.f32 %v526_v57, 0.0 }
  0xfe   : > { %647 = vst [vmem:[%s1022_s11 + $0xc0] sm:$0xff] %v615_v58 }
  0xff   : > { %633 = vst [vmem:[%s1022_s11 + $0x50] sm:$0xff] %v601_v59  ;;  %v457_v60 = vpop.f32.mrf.mxu2  ;;  %v576_v61 = vpop.f32.mrf.mxu3 }
 0x100   : > { %v458_v62 = vadd.f32 %v1015_v22, %v457_v60  ;;  %v415_v63 = vpop.f32.mrf.mxu0 }
 0x101   : > { %v416_v0 = vadd.f32 %v1015_v22, %v415_v63 }
 0x102   : > { %v571_v1 = vadd.f32 %v570_v40, %v458_v62  ;;  %v537_v2 = vpop.f32.mrf.mxu1 }
 0x103   : > { %v529_v3 = vadd.f32 %v528_v34, %v416_v0 }
 0x104   : > { %v616_v4 = vmax.f32 %v571_v1, 0.0 }
 0x105   : > { %v602_v5 = vmax.f32 %v529_v3, 0.0 }
 0x106   : > { %648 = vst [vmem:[%s1022_s11 + $0xc8] sm:$0xff] %v616_v4 }
 0x107   : > { %634 = vst [vmem:[%s1022_s11 + $0x58] sm:$0xff] %v602_v5  ;;  %v460_v6 = vpop.f32.mrf.mxu2  ;;  %v579_v7 = vpop.f32.mrf.mxu3 }
 0x108   : > { %v461_v8 = vadd.f32 %v1015_v22, %v460_v6  ;;  %v418_v9 = vpop.f32.mrf.mxu0 }
 0x109   : > { %v419_v11 = vadd.f32 %v1015_v22, %v418_v9 }
 0x10a   : > { %v574_v12 = vadd.f32 %v573_v51, %v461_v8  ;;  %v540_v13 = vpop.f32.mrf.mxu1 }
 0x10b   : > { %v532_v14 = vadd.f32 %v531_v46, %v419_v11  ;;  %v541_v15 = vadd.f32 %v540_v13, %v428_v10 }
 0x10c   : > { %v617_v16 = vmax.f32 %v574_v12, 0.0 }
 0x10d   : > { %v603_v17 = vmax.f32 %v532_v14, 0.0  ;;  %v606_v18 = vmax.f32 %v541_v15, 0.0 }
 0x10e   : > { %649 = vst [vmem:[%s1022_s11 + $0xd0] sm:$0xff] %v617_v16 }
 0x10f   : > { %635 = vst [vmem:[%s1022_s11 + $0x60] sm:$0xff] %v603_v17  ;;  %v463_v19 = vpop.f32.mrf.mxu2  ;;  %v582_v20 = vpop.f32.mrf.mxu3 }
 0x110   : > { %638 = vst [vmem:[%s1022_s11 + $0x78] sm:$0xff] %v606_v18  ;;  %v464_v21 = vadd.f32 %v1015_v22, %v463_v19  ;;  %v421_v28 = vpop.f32.mrf.mxu0 }
 0x111   : > { %v422_v24 = vadd.f32 %v1015_v22, %v421_v28 }
 0x112   : > { %v577_v25 = vadd.f32 %v576_v61, %v464_v21  ;;  %v543_v26 = vpop.f32.mrf.mxu1 }
 0x113   : > { %v535_v27 = vadd.f32 %v534_v56, %v422_v24  ;;  %v544_v30 = vadd.f32 %v543_v26, %v431_v23 }
 0x114   : > { %v618_v31 = vmax.f32 %v577_v25, 0.0 }
 0x115   : > { %v604_v32 = vmax.f32 %v535_v27, 0.0  ;;  %v607_v33 = vmax.f32 %v544_v30, 0.0 }
 0x116   : > { %650 = vst [vmem:[%s1022_s11 + $0xd8] sm:$0xff] %v618_v31 }
 0x117   : > { %636 = vst [vmem:[%s1022_s11 + $0x68] sm:$0xff] %v604_v32  ;;  %v466_v34 = vpop.f32.mrf.mxu2  ;;  %v585_v36 = vpop.f32.mrf.mxu3 }
 0x118   : > { %639 = vst [vmem:[%s1022_s11 + $0x80] sm:$0xff] %v607_v33  ;;  %v467_v37 = vadd.f32 %v1015_v22, %v466_v34  ;;  %v424_v35 = vpop.f32.mrf.mxu0 }
 0x119   : > { %v425_v39 = vadd.f32 %v1015_v22, %v424_v35 }
 0x11a   : > { %v580_v40 = vadd.f32 %v579_v7, %v467_v37  ;;  %v546_v41 = vpop.f32.mrf.mxu1 }
 0x11b   : > { %v538_v43 = vadd.f32 %v537_v2, %v425_v39  ;;  %v547_v44 = vadd.f32 %v546_v41, %v434_v38 }
 0x11c   : > { %v619_v45 = vmax.f32 %v580_v40, 0.0 }
 0x11d   : > { %v605_v46 = vmax.f32 %v538_v43, 0.0  ;;  %v608_v47 = vmax.f32 %v547_v44, 0.0 }
 0x11e   : > { %651 = vst [vmem:[%s1022_s11 + $0xe0] sm:$0xff] %v619_v45 }
 0x11f   : > { %637 = vst [vmem:[%s1022_s11 + $0x70] sm:$0xff] %v605_v46  ;;  %v469_v49 = vpop.f32.mrf.mxu2  ;;  %v588_v50 = vpop.f32.mrf.mxu3 }
 0x120   : > { %640 = vst [vmem:[%s1022_s11 + $0x88] sm:$0xff] %v608_v47  ;;  %v470_v42 = vadd.f32 %v1015_v22, %v469_v49  ;;  %v589_v51 = vadd.f32 %v588_v50, %v476_v48 }
 0x122   : > { %v583_v52 = vadd.f32 %v582_v20, %v470_v42  ;;  %v622_v53 = vmax.f32 %v589_v51, 0.0 }
 0x124   : > { %v620_v54 = vmax.f32 %v583_v52, 0.0  ;;  %654 = vst [vmem:[%s1022_s11 + $0xf8] sm:$0xff] %v622_v53 }
 0x126   : > { %652 = vst [vmem:[%s1022_s11 + $0xe8] sm:$0xff] %v620_v54 }
 0x127   : > { %v472_v55 = vpop.f32.mrf.mxu2 }
 0x128   : > { %v473_v56 = vadd.f32 %v1015_v22, %v472_v55 }
 0x12a   : > { %v586_v57 = vadd.f32 %v585_v36, %v473_v56 }
 0x12c   : > { %v621_v58 = vmax.f32 %v586_v57, 0.0 }
 0x12e   : > { %653 = vst [vmem:[%s1022_s11 + $0xf0] sm:$0xff] %v621_v58 }
 0x12f PF: > { %s13_s12 = sadd.s32 1, %s807_s12  }
 0x130   : > { %p10_p4 = scmp.ge.s32.totalorder %s13_s12, 4  }
 0x132   :  { %12 = sbr.rel (!%p10_p4) target bundleno = 1 (0x1), region = 62 }

// kernel: lrcn_forward.13
= control target key start
LH: loop header
LB: loop body
LE: loop exit
PB: predicated region body
PF: predicated region fallthrough
CT: control target
= control target key end

     0   :  { %s319_s12 = smov 0   ;;  %s391_s0 = inlined_call_operand.vmem [shape: f32[8,16,128], index: 0, kind: input, shape index: {}]   ;;  %s392_s1 = inlined_call_operand.vmem [shape: f32[128,128], index: 1, kind: input, shape index: {}]   ;;  %s393_s2 = inlined_call_operand.vmem [shape: f32[1,128], index: 2, kind: input, shape index: {}]   ;;  %s394_s3 = inlined_call_operand.vmem [shape: f32[8,1,128], index: 3, kind: output, shape index: {}]  }
   0x1 LB: > { %s269_s13 = sadd.s32 4294967295, %s296_s12   ;;  %p273_p0 = scmp.ge.s32.totalorder %s296_s12, 1  ;;  %s296_s12 = sphi %s319_s12, %s13_s12  }
   0x2   : > { %p137_p1 = scmp.lt.s32.totalorder %s296_s12, 9 }
   0x4   : > { %p138_p2 = pnand %p273_p0, %p137_p1 }
   0x5   : > { %p159_p3 = scmp.lt.s32.totalorder (!%p138_p2), %s269_s13, 7 }
   0x6   : > { %141 = sbr.rel (%p138_p2) target bundleno = 172 (0xac), region = 32 }
   0xb   : > { %v199_v0 = vld [vmem:[%s392_s1 + $0x78] sm:$0xff]  ;;  %v198_v1 = vld [vmem:[%s392_s1 + $0x70] sm:$0xff]  ;;  %v298_v2 = vmov 16.0   ;;  %v197_v3 = vld [vmem:[%s392_s1 + $0x68] sm:$0xff]  ;;  %s396_s13 = smov (!%p159_p3, %s269_s13), 7 }
   0xc   : > { %201 = vmatpush.msra.mxu0 %v199_v0  ;;  %288 = vrcp.f32 %v298_v2  ;;  %v196_v4 = vld [vmem:[%s392_s1 + $0x60] sm:$0xff]  ;;  %s278_s22 = sshll.u32 %s396_s13, 4  ;;  %v195_v5 = vld [vmem:[%s392_s1 + $0x58] sm:$0xff]  ;;  %v194_v10 = vld [vmem:[%s392_s1 + $0x50] sm:$0xff]  ;;  %s166_s29 = scalar_lea.vmem %s394_s3, %s396_s13 }
   0xd   : > { %s163_s25 = scalar_lea.vmem %s391_s0, %s278_s22  ;;  %v193_v13 = vld [vmem:[%s392_s1 + $0x48] sm:$0xff]  ;;  %v192_v15 = vld [vmem:[%s392_s1 + $0x40] sm:$0xff]  ;;  %v191_v18 = vld [vmem:[%s392_s1 + $0x38] sm:$0xff] }
   0xe   : > { %202 = vmatpush.msra.mxu0 %v198_v1  ;;  %v167_v6 = vld [vmem:[%s163_s25] sm:$0xff]  ;;  %v168_v7 = vld [vmem:[%s163_s25 + $0x8] sm:$0xff]  ;;  %v190_v19 = vld [vmem:[%s392_s1 + $0x30] sm:$0xff] }
   0xf   : > { %v169_v9 = vadd.f32 %v168_v7, %v167_v6  ;;  %v189_v22 = vld [vmem:[%s392_s1 + $0x28] sm:$0xff]  ;;  %v188_v23 = vld [vmem:[%s392_s1 + $0x20] sm:$0xff]  ;;  %v187_v26 = vld [vmem:[%s392_s1 + $0x18] sm:$0xff] }
  0x10   : > { %203 = vmatpush.msra.mxu0 %v197_v3  ;;  %v186_v27 = vld [vmem:[%s392_s1 + $0x10] sm:$0xff]  ;;  %v185_v30 = vld [vmem:[%s392_s1 + $0x8] sm:$0xff]  ;;  %v184_v31 = vld [vmem:[%s392_s1] sm:$0xff] }
  0x11   : > { %v170_v11 = vrot.slane %v169_v9, 4  ;;  %v200_v33 = vld [vmem:[%s393_s2] sm:$0x1] }
  0x12   : > { %v289_v8 = vpop.eup %288  ;;  %204 = vmatpush.msra.mxu0 %v196_v4 }
  0x13   : > { %v177_v12 = vmul.f32 16.0, %v289_v8  ;;  %v171_v14 = vadd.f32 %v170_v11, %v169_v9  ;;  %vm181_vm0 = vweird.f32 %v289_v8 }
  0x14   : > { %205 = vmatpush.msra.mxu0 %v195_v5 }
  0x15   : > { %v172_v16 = vrot.slane %v171_v14, 2  ;;  %v178_v17 = vsub.f32 1.0, %v177_v12 }
  0x16   : > { %206 = vmatpush.msra.mxu0 %v194_v10 }
  0x17   : > { %v173_v20 = vadd.f32 %v172_v16, %v171_v14  ;;  %v179_v21 = vmul.f32 %v289_v8, %v178_v17 }
  0x18   : > { %207 = vmatpush.msra.mxu0 %v193_v13 }
  0x19   : > { %v174_v24 = vrot.slane %v173_v20, 1  ;;  %v180_v25 = vadd.f32 %v289_v8, %v179_v21 }
  0x1a   : > { %208 = vmatpush.msra.mxu0 %v192_v15 }
  0x1b   : > { %v175_v28 = vadd.f32 %v174_v24, %v173_v20  ;;  %v182_v29 = vsel %vm181_vm0, %v289_v8, %v180_v25 }
  0x1c   : > { %209 = vmatpush.msra.mxu0 %v191_v18 }
  0x1d   : > { %v183_v32 = vmul.f32 %v182_v29, %v175_v28 }
  0x1e   : > { %210 = vmatpush.msra.mxu0 %v190_v19 }
  0x20   : > { %211 = vmatpush.msra.mxu0 %v189_v22 }
  0x22   : > { %212 = vmatpush.msra.mxu0 %v188_v23 }
  0x24   : > { %213 = vmatpush.msra.mxu0 %v187_v26 }
  0x26   : > { %214 = vmatpush.msra.mxu0 %v186_v27 }
  0x28   : > { %215 = vmatpush.msra.mxu0 %v185_v30 }
  0x2a   : > { %216 = vmatpush.msra.mxu0 %v184_v31 }
  0x2b   : > { %217 = vmatmul.f32.vlgmr.msra.gmra.mxu0 %v183_v32 }
  0xa8   : > { %v218_v34 = vpop.f32.mrf.mxu0 }
  0xa9   : > { %v219_v35 = vadd.f32 %v218_v34, %v200_v33 }
  0xab   : > { %221 = vst [vmem:[%s166_s29] sm:$0x1] %v219_v35 }
  0xac PF: > { %s13_s12 = sadd.s32 1, %s296_s12  }
  0xad   : > { %p10_p4 = scmp.ge.s32.totalorder %s13_s12, 10  }
  0xaf   :  { %12 = sbr.rel (!%p10_p4) target bundleno = 1 (0x1), region = 62 }

// kernel: lrcn_forward.12
= control target key start
LH: loop header
LB: loop body
LE: loop exit
PB: predicated region body
PF: predicated region fallthrough
CT: control target
= control target key end

     0   :  { %s2037_s1 = inlined_call_operand.vmem [shape: f32[1152,128], index: 1, kind: input, shape index: {}]   ;;  %s2038_s0 = inlined_call_operand.vmem [shape: f32[128,1152], index: 0, kind: input, shape index: {}]   ;;  %s2039_s2 = inlined_call_operand.vmem [shape: f32[1,128], index: 2, kind: input, shape index: {}]   ;;  %s2040_s3 = inlined_call_operand.vmem [shape: f32[128,128], index: 3, kind: output, shape index: {}]  }
   0x1   :  { %v173_v0 = vld [vmem:[%s2037_s1 + $0x78] sm:$0xff]  ;;  %v172_v1 = vld [vmem:[%s2037_s1 + $0x70] sm:$0xff]  ;;  %v171_v2 = vld [vmem:[%s2037_s1 + $0x68] sm:$0xff] }
   0x2   :  { %927 = vmatpush.msra.mxu1 %v173_v0  ;;  %928 = vmatpush.msra.mxu2 %v173_v0  ;;  %v170_v3 = vld [vmem:[%s2037_s1 + $0x60] sm:$0xff]  ;;  %v169_v4 = vld [vmem:[%s2037_s1 + $0x58] sm:$0xff]  ;;  %v168_v5 = vld [vmem:[%s2037_s1 + $0x50] sm:$0xff] }
   0x3   :  { %929 = vmatpush.msra.mxu3 %v173_v0  ;;  %306 = vmatpush.msra.mxu0 %v173_v0  ;;  %v167_v6 = vld [vmem:[%s2037_s1 + $0x48] sm:$0xff]  ;;  %v166_v7 = vld [vmem:[%s2037_s1 + $0x40] sm:$0xff]  ;;  %v165_v8 = vld [vmem:[%s2037_s1 + $0x38] sm:$0xff] }
   0x4   :  { %930 = vmatpush.msra.mxu1 %v172_v1  ;;  %931 = vmatpush.msra.mxu2 %v172_v1  ;;  %v164_v9 = vld [vmem:[%s2037_s1 + $0x30] sm:$0xff]  ;;  %v163_v10 = vld [vmem:[%s2037_s1 + $0x28] sm:$0xff]  ;;  %v162_v11 = vld [vmem:[%s2037_s1 + $0x20] sm:$0xff] }
   0x5   :  { %932 = vmatpush.msra.mxu3 %v172_v1  ;;  %307 = vmatpush.msra.mxu0 %v172_v1  ;;  %v161_v12 = vld [vmem:[%s2037_s1 + $0x18] sm:$0xff]  ;;  %v160_v13 = vld [vmem:[%s2037_s1 + $0x10] sm:$0xff]  ;;  %v159_v14 = vld [vmem:[%s2037_s1 + $0x8] sm:$0xff] }
   0x6   :  { %933 = vmatpush.msra.mxu1 %v171_v2  ;;  %934 = vmatpush.msra.mxu2 %v171_v2  ;;  %v158_v15 = vld [vmem:[%s2037_s1] sm:$0xff]  ;;  %v205_v18 = vld [vmem:[%s2037_s1 + $0x178] sm:$0xff]  ;;  %v204_v21 = vld [vmem:[%s2037_s1 + $0x170] sm:$0xff] }
   0x7   :  { %935 = vmatpush.msra.mxu3 %v171_v2  ;;  %308 = vmatpush.msra.mxu0 %v171_v2  ;;  %v50_v16 = vld [vmem:[%s2038_s0 + $0x120] sm:$0xff]  ;;  %v189_v19 = vld [vmem:[%s2037_s1 + $0xf8] sm:$0xff]  ;;  %v188_v23 = vld [vmem:[%s2037_s1 + $0xf0] sm:$0xff] }
   0x8   :  { %936 = vmatpush.msra.mxu1 %v170_v3  ;;  %937 = vmatpush.msra.mxu2 %v170_v3  ;;  %v86_v17 = vld [vmem:[%s2038_s0 + $0x240] sm:$0xff]  ;;  %v221_v22 = vld [vmem:[%s2037_s1 + $0x1f8] sm:$0xff]  ;;  %v203_v24 = vld [vmem:[%s2037_s1 + $0x168] sm:$0xff] }
   0x9   :  { %938 = vmatpush.msra.mxu3 %v170_v3  ;;  %309 = vmatpush.msra.mxu0 %v170_v3  ;;  %v122_v20 = vld [vmem:[%s2038_s0 + $0x360] sm:$0xff]  ;;  %v220_v25 = vld [vmem:[%s2037_s1 + $0x1f0] sm:$0xff]  ;;  %v187_v26 = vld [vmem:[%s2037_s1 + $0xe8] sm:$0xff] }
   0xa   :  { %939 = vmatpush.msra.mxu1 %v169_v4  ;;  %940 = vmatpush.msra.mxu2 %v169_v4  ;;  %v14_v27 = vld [vmem:[%s2038_s0] sm:$0xff]  ;;  %v219_v29 = vld [vmem:[%s2037_s1 + $0x1e8] sm:$0xff]  ;;  %v201_v33 = vld [vmem:[%s2037_s1 + $0x158] sm:$0xff] }
   0xb   :  { %941 = vmatpush.msra.mxu3 %v169_v4  ;;  %310 = vmatpush.msra.mxu0 %v169_v4  ;;  %v202_v28 = vld [vmem:[%s2037_s1 + $0x160] sm:$0xff]  ;;  %v95_v31 = vld [vmem:[%s2038_s0 + $0x288] sm:$0xff]  ;;  %v185_v35 = vld [vmem:[%s2037_s1 + $0xd8] sm:$0xff] }
   0xc   :  { %942 = vmatpush.msra.mxu1 %v168_v5  ;;  %943 = vmatpush.msra.mxu2 %v168_v5  ;;  %v186_v30 = vld [vmem:[%s2037_s1 + $0xe0] sm:$0xff]  ;;  %v59_v32 = vld [vmem:[%s2038_s0 + $0x168] sm:$0xff]  ;;  %v200_v37 = vld [vmem:[%s2037_s1 + $0x150] sm:$0xff] }
   0xd   :  { %944 = vmatpush.msra.mxu3 %v168_v5  ;;  %311 = vmatpush.msra.mxu0 %v168_v5  ;;  %v218_v34 = vld [vmem:[%s2037_s1 + $0x1e0] sm:$0xff]  ;;  %v131_v36 = vld [vmem:[%s2038_s0 + $0x3a8] sm:$0xff]  ;;  %v217_v38 = vld [vmem:[%s2037_s1 + $0x1d8] sm:$0xff] }
   0xe   :  { %945 = vmatpush.msra.mxu1 %v167_v6  ;;  %946 = vmatpush.msra.mxu2 %v167_v6  ;;  %v237_v39 = vld [vmem:[%s2037_s1 + $0x278] sm:$0xff]  ;;  %v184_v40 = vld [vmem:[%s2037_s1 + $0xd0] sm:$0xff]  ;;  %v199_v41 = vld [vmem:[%s2037_s1 + $0x148] sm:$0xff] }
   0xf   :  { %947 = vmatpush.msra.mxu3 %v167_v6  ;;  %312 = vmatpush.msra.mxu0 %v167_v6  ;;  %v216_v42 = vld [vmem:[%s2037_s1 + $0x1d0] sm:$0xff]  ;;  %v183_v44 = vld [vmem:[%s2037_s1 + $0xc8] sm:$0xff]  ;;  %v198_v45 = vld [vmem:[%s2037_s1 + $0x140] sm:$0xff] }
  0x10   :  { %948 = vmatpush.msra.mxu1 %v166_v7  ;;  %949 = vmatpush.msra.mxu2 %v166_v7  ;;  %v236_v43 = vld [vmem:[%s2037_s1 + $0x270] sm:$0xff]  ;;  %v215_v46 = vld [vmem:[%s2037_s1 + $0x1c8] sm:$0xff]  ;;  %v182_v48 = vld [vmem:[%s2037_s1 + $0xc0] sm:$0xff] }
  0x11   :  { %950 = vmatpush.msra.mxu3 %v166_v7  ;;  %313 = vmatpush.msra.mxu0 %v166_v7  ;;  %v235_v47 = vld [vmem:[%s2037_s1 + $0x268] sm:$0xff]  ;;  %v104_v49 = vld [vmem:[%s2038_s0 + $0x2d0] sm:$0xff]  ;;  %v197_v51 = vld [vmem:[%s2037_s1 + $0x138] sm:$0xff] }
  0x12   :  { %951 = vmatpush.msra.mxu1 %v165_v8  ;;  %952 = vmatpush.msra.mxu2 %v165_v8  ;;  %v68_v50 = vld [vmem:[%s2038_s0 + $0x1b0] sm:$0xff]  ;;  %v214_v52 = vld [vmem:[%s2037_s1 + $0x1c0] sm:$0xff]  ;;  %v181_v54 = vld [vmem:[%s2037_s1 + $0xb8] sm:$0xff] }
  0x13   :  { %953 = vmatpush.msra.mxu3 %v165_v8  ;;  %314 = vmatpush.msra.mxu0 %v165_v8  ;;  %v234_v53 = vld [vmem:[%s2037_s1 + $0x260] sm:$0xff]  ;;  %v23_v55 = vld [vmem:[%s2038_s0 + $0x48] sm:$0xff]  ;;  %v140_v56 = vld [vmem:[%s2038_s0 + $0x3f0] sm:$0xff] }
  0x14   :  { %954 = vmatpush.msra.mxu1 %v164_v9  ;;  %955 = vmatpush.msra.mxu2 %v164_v9  ;;  %v196_v57 = vld [vmem:[%s2037_s1 + $0x130] sm:$0xff]  ;;  %v213_v58 = vld [vmem:[%s2037_s1 + $0x1b8] sm:$0xff]  ;;  %v195_v61 = vld [vmem:[%s2037_s1 + $0x128] sm:$0xff] }
  0x15   :  { %956 = vmatpush.msra.mxu3 %v164_v9  ;;  %315 = vmatpush.msra.mxu0 %v164_v9  ;;  %v233_v59 = vld [vmem:[%s2037_s1 + $0x258] sm:$0xff]  ;;  %v180_v60 = vld [vmem:[%s2037_s1 + $0xb0] sm:$0xff]  ;;  %v179_v0 = vld [vmem:[%s2037_s1 + $0xa8] sm:$0xff] }
  0x16   :  { %957 = vmatpush.msra.mxu1 %v163_v10  ;;  %958 = vmatpush.msra.mxu2 %v163_v10  ;;  %v212_v62 = vld [vmem:[%s2037_s1 + $0x1b0] sm:$0xff]  ;;  %v194_v1 = vld [vmem:[%s2037_s1 + $0x120] sm:$0xff]  ;;  %v211_v2 = vld [vmem:[%s2037_s1 + $0x1a8] sm:$0xff] }
  0x17   :  { %959 = vmatpush.msra.mxu3 %v163_v10  ;;  %316 = vmatpush.msra.mxu0 %v163_v10  ;;  %v232_v63 = vld [vmem:[%s2037_s1 + $0x250] sm:$0xff]  ;;  %v231_v3 = vld [vmem:[%s2037_s1 + $0x248] sm:$0xff]  ;;  %v178_v4 = vld [vmem:[%s2037_s1 + $0xa0] sm:$0xff] }
  0x18   :  { %960 = vmatpush.msra.mxu1 %v162_v11  ;;  %961 = vmatpush.msra.mxu2 %v162_v11  ;;  %v113_v5 = vld [vmem:[%s2038_s0 + $0x318] sm:$0xff]  ;;  %v210_v8 = vld [vmem:[%s2037_s1 + $0x1a0] sm:$0xff] }
  0x19   :  { %962 = vmatpush.msra.mxu3 %v162_v11  ;;  %317 = vmatpush.msra.mxu0 %v162_v11  ;;  %v77_v6 = vld [vmem:[%s2038_s0 + $0x1f8] sm:$0xff]  ;;  %v230_v9 = vld [vmem:[%s2037_s1 + $0x240] sm:$0xff]  ;;  %v32_v11 = vld [vmem:[%s2038_s0 + $0x90] sm:$0xff] }
  0x1a   :  { %963 = vmatpush.msra.mxu1 %v161_v12  ;;  %964 = vmatpush.msra.mxu2 %v161_v12  ;;  %v193_v7 = vld [vmem:[%s2037_s1 + $0x118] sm:$0xff] }
  0x1b   :  { %965 = vmatpush.msra.mxu3 %v161_v12  ;;  %318 = vmatpush.msra.mxu0 %v161_v12  ;;  %v177_v10 = vld [vmem:[%s2037_s1 + $0x98] sm:$0xff] }
  0x1c   :  { %966 = vmatpush.msra.mxu1 %v160_v13  ;;  %967 = vmatpush.msra.mxu2 %v160_v13  ;;  %v149_v12 = vld [vmem:[%s2038_s0 + $0x438] sm:$0xff] }
  0x1d   :  { %968 = vmatpush.msra.mxu3 %v160_v13  ;;  %319 = vmatpush.msra.mxu0 %v160_v13  ;;  %v192_v13 = vld [vmem:[%s2037_s1 + $0x110] sm:$0xff] }
  0x1e   :  { %969 = vmatpush.msra.mxu1 %v159_v14  ;;  %970 = vmatpush.msra.mxu2 %v159_v14 }
  0x1f   :  { %971 = vmatpush.msra.mxu3 %v159_v14  ;;  %320 = vmatpush.msra.mxu0 %v159_v14  ;;  %v209_v14 = vld [vmem:[%s2037_s1 + $0x198] sm:$0xff] }
  0x20   :  { %972 = vmatpush.msra.mxu1 %v158_v15  ;;  %973 = vmatpush.msra.mxu2 %v158_v15 }
  0x21   :  { %334 = vmatmul.f32.vlgmr.msra.gmra.mxu1 %v50_v16  ;;  %346 = vmatmul.f32.vlgmr.msra.gmra.mxu2 %v86_v17  ;;  %v176_v16 = vld [vmem:[%s2037_s1 + $0x90] sm:$0xff]  ;;  %v191_v17 = vld [vmem:[%s2037_s1 + $0x108] sm:$0xff] }
  0x22   :  { %436 = vmatpush.msrb.mxu2 %v205_v18  ;;  %974 = vmatpush.msra.mxu3 %v158_v15  ;;  %v208_v18 = vld [vmem:[%s2037_s1 + $0x190] sm:$0xff] }
  0x23   :  { %371 = vmatpush.msrb.mxu1 %v189_v19  ;;  %358 = vmatmul.f32.vlgmr.msra.gmra.mxu3 %v122_v20  ;;  %v228_v19 = vld [vmem:[%s2037_s1 + $0x230] sm:$0xff]  ;;  %v175_v20 = vld [vmem:[%s2037_s1 + $0x88] sm:$0xff] }
  0x24   :  { %437 = vmatpush.msrb.mxu2 %v204_v21  ;;  %501 = vmatpush.msrb.mxu3 %v221_v22  ;;  %v190_v21 = vld [vmem:[%s2037_s1 + $0x100] sm:$0xff]  ;;  %v207_v22 = vld [vmem:[%s2037_s1 + $0x188] sm:$0xff] }
  0x25   :  { %372 = vmatpush.msrb.mxu1 %v188_v23  ;;  %321 = vmatpush.msra.mxu0 %v158_v15  ;;  %v229_v15 = vld [vmem:[%s2037_s1 + $0x238] sm:$0xff]  ;;  %v227_v23 = vld [vmem:[%s2037_s1 + $0x228] sm:$0xff] }
  0x26   :  { %438 = vmatpush.msrb.mxu2 %v203_v24  ;;  %502 = vmatpush.msrb.mxu3 %v220_v25  ;;  %v174_v24 = vld [vmem:[%s2037_s1 + $0x80] sm:$0xff]  ;;  %v16_v25 = vld [vmem:[%s2038_s0 + $0x10] sm:$0xff] }
  0x27   :  { %373 = vmatpush.msrb.mxu1 %v187_v26  ;;  %322 = vmatmul.f32.vlgmr.msra.gmra.mxu0 %v14_v27  ;;  %v15_v26 = vld [vmem:[%s2038_s0 + $0x8] sm:$0xff]  ;;  %v206_v27 = vld [vmem:[%s2037_s1 + $0x180] sm:$0xff] }
  0x28   :  { %439 = vmatpush.msrb.mxu2 %v202_v28  ;;  %503 = vmatpush.msrb.mxu3 %v219_v29  ;;  %v226_v28 = vld [vmem:[%s2037_s1 + $0x220] sm:$0xff]  ;;  %v269_v29 = vld [vmem:[%s2037_s1 + $0x378] sm:$0xff] }
  0x29   :  { %374 = vmatpush.msrb.mxu1 %v186_v30  ;;  %349 = vmatmul.f32.gmra.mxu2 %v95_v31  ;;  %v41_v30 = vld [vmem:[%s2038_s0 + $0xd8] sm:$0xff] }
  0x2a   :  { %337 = vmatmul.f32.gmra.mxu1 %v59_v32  ;;  %440 = vmatpush.msrb.mxu2 %v201_v33  ;;  %v17_v31 = vld [vmem:[%s2038_s0 + $0x18] sm:$0xff] }
  0x2b   :  { %504 = vmatpush.msrb.mxu3 %v218_v34  ;;  %375 = vmatpush.msrb.mxu1 %v185_v35  ;;  %v225_v32 = vld [vmem:[%s2037_s1 + $0x218] sm:$0xff]  ;;  %v268_v35 = vld [vmem:[%s2037_s1 + $0x370] sm:$0xff] }
  0x2c   :  { %361 = vmatmul.f32.gmra.mxu3 %v131_v36  ;;  %441 = vmatpush.msrb.mxu2 %v200_v37  ;;  %v285_v33 = vld [vmem:[%s2037_s1 + $0x3f8] sm:$0xff]  ;;  %v224_v36 = vld [vmem:[%s2037_s1 + $0x210] sm:$0xff] }
  0x2d   :  { %505 = vmatpush.msrb.mxu3 %v217_v38  ;;  %566 = vmatpush.msrb.mxu0 %v237_v39  ;;  %v253_v34 = vld [vmem:[%s2037_s1 + $0x2f8] sm:$0xff]  ;;  %v284_v37 = vld [vmem:[%s2037_s1 + $0x3f0] sm:$0xff]  ;;  %v267_v39 = vld [vmem:[%s2037_s1 + $0x368] sm:$0xff] }
  0x2e   :  { %376 = vmatpush.msrb.mxu1 %v184_v40  ;;  %442 = vmatpush.msrb.mxu2 %v199_v41  ;;  %v252_v38 = vld [vmem:[%s2037_s1 + $0x2f0] sm:$0xff]  ;;  %v223_v40 = vld [vmem:[%s2037_s1 + $0x208] sm:$0xff]  ;;  %v25_v41 = vld [vmem:[%s2038_s0 + $0x58] sm:$0xff] }
  0x2f   :  { %506 = vmatpush.msrb.mxu3 %v216_v42  ;;  %567 = vmatpush.msrb.mxu0 %v236_v43  ;;  %v24_v42 = vld [vmem:[%s2038_s0 + $0x50] sm:$0xff]  ;;  %v283_v43 = vld [vmem:[%s2037_s1 + $0x3e8] sm:$0xff] }
  0x30   :  { %377 = vmatpush.msrb.mxu1 %v183_v44  ;;  %443 = vmatpush.msrb.mxu2 %v198_v45  ;;  %v222_v44 = vld [vmem:[%s2037_s1 + $0x200] sm:$0xff]  ;;  %v251_v45 = vld [vmem:[%s2037_s1 + $0x2e8] sm:$0xff] }
  0x31   :  { %507 = vmatpush.msrb.mxu3 %v215_v46  ;;  %568 = vmatpush.msrb.mxu0 %v235_v47  ;;  %v26_v46 = vld [vmem:[%s2038_s0 + $0x60] sm:$0xff] }
  0x32   :  { %378 = vmatpush.msrb.mxu1 %v182_v48  ;;  %352 = vmatmul.f32.gmra.mxu2 %v104_v49  ;;  %v18_v47 = vld [vmem:[%s2038_s0 + $0x20] sm:$0xff]  ;;  %v301_v48 = vld [vmem:[%s2037_s1 + $0x478] sm:$0xff] }
  0x33   :  { %340 = vmatmul.f32.gmra.mxu1 %v68_v50  ;;  %444 = vmatpush.msrb.mxu2 %v197_v51  ;;  %v266_v49 = vld [vmem:[%s2037_s1 + $0x360] sm:$0xff] }
  0x34   :  { %508 = vmatpush.msrb.mxu3 %v214_v52  ;;  %569 = vmatpush.msrb.mxu0 %v234_v53  ;;  %v282_v50 = vld [vmem:[%s2037_s1 + $0x3e0] sm:$0xff]  ;;  %v300_v52 = vld [vmem:[%s2037_s1 + $0x470] sm:$0xff]  ;;  %v265_v53 = vld [vmem:[%s2037_s1 + $0x358] sm:$0xff] }
  0x35   :  { %379 = vmatpush.msrb.mxu1 %v181_v54  ;;  %325 = vmatmul.f32.gmra.mxu0 %v23_v55  ;;  %v250_v51 = vld [vmem:[%s2037_s1 + $0x2e0] sm:$0xff]  ;;  %v281_v54 = vld [vmem:[%s2037_s1 + $0x3d8] sm:$0xff] }
  0x36   :  { %364 = vmatmul.f32.gmra.mxu3 %v140_v56  ;;  %445 = vmatpush.msrb.mxu2 %v196_v57  ;;  %v249_v55 = vld [vmem:[%s2037_s1 + $0x2d8] sm:$0xff]  ;;  %v34_v56 = vld [vmem:[%s2038_s0 + $0xa0] sm:$0xff]  ;;  %v299_v57 = vld [vmem:[%s2037_s1 + $0x468] sm:$0xff] }
  0x37   :  { %509 = vmatpush.msrb.mxu3 %v213_v58  ;;  %570 = vmatpush.msrb.mxu0 %v233_v59  ;;  %v33_v58 = vld [vmem:[%s2038_s0 + $0x98] sm:$0xff]  ;;  %v264_v59 = vld [vmem:[%s2037_s1 + $0x350] sm:$0xff] }
  0x38   :  { %380 = vmatpush.msrb.mxu1 %v180_v60  ;;  %446 = vmatpush.msrb.mxu2 %v195_v61  ;;  %v298_v60 = vld [vmem:[%s2037_s1 + $0x460] sm:$0xff]  ;;  %v280_v61 = vld [vmem:[%s2037_s1 + $0x3d0] sm:$0xff] }
  0x39   :  { %510 = vmatpush.msrb.mxu3 %v212_v62  ;;  %571 = vmatpush.msrb.mxu0 %v232_v63  ;;  %v35_v62 = vld [vmem:[%s2038_s0 + $0xa8] sm:$0xff] }
  0x3a   :  { %381 = vmatpush.msrb.mxu1 %v179_v0  ;;  %447 = vmatpush.msrb.mxu2 %v194_v1  ;;  %v27_v63 = vld [vmem:[%s2038_s0 + $0x68] sm:$0xff]  ;;  %v297_v0 = vld [vmem:[%s2037_s1 + $0x458] sm:$0xff]  ;;  %v248_v1 = vld [vmem:[%s2037_s1 + $0x2d0] sm:$0xff] }
  0x3b   :  { %511 = vmatpush.msrb.mxu3 %v211_v2  ;;  %572 = vmatpush.msrb.mxu0 %v231_v3  ;;  %v263_v2 = vld [vmem:[%s2037_s1 + $0x348] sm:$0xff] }
  0x3c   :  { %382 = vmatpush.msrb.mxu1 %v178_v4  ;;  %355 = vmatmul.f32.gmra.mxu2 %v113_v5  ;;  %v279_v3 = vld [vmem:[%s2037_s1 + $0x3c8] sm:$0xff]  ;;  %v296_v4 = vld [vmem:[%s2037_s1 + $0x450] sm:$0xff] }
  0x3d   :  { %343 = vmatmul.f32.gmra.mxu1 %v77_v6  ;;  %448 = vmatpush.msrb.mxu2 %v193_v7  ;;  %v247_v5 = vld [vmem:[%s2037_s1 + $0x2c8] sm:$0xff]  ;;  %v42_v7 = vld [vmem:[%s2038_s0 + $0xe0] sm:$0xff] }
  0x3e   :  { %512 = vmatpush.msrb.mxu3 %v210_v8  ;;  %573 = vmatpush.msrb.mxu0 %v230_v9  ;;  %v43_v6 = vld [vmem:[%s2038_s0 + $0xe8] sm:$0xff]  ;;  %v44_v8 = vld [vmem:[%s2038_s0 + $0xf0] sm:$0xff] }
  0x3f   :  { %383 = vmatpush.msrb.mxu1 %v177_v10  ;;  %328 = vmatmul.f32.gmra.mxu0 %v32_v11  ;;  %v36_v9 = vld [vmem:[%s2038_s0 + $0xb0] sm:$0xff]  ;;  %v262_v10 = vld [vmem:[%s2037_s1 + $0x340] sm:$0xff] }
  0x40   :  { %367 = vmatmul.f32.gmra.mxu3 %v149_v12  ;;  %449 = vmatpush.msrb.mxu2 %v192_v13  ;;  %v278_v11 = vld [vmem:[%s2037_s1 + $0x3c0] sm:$0xff]  ;;  %v295_v12 = vld [vmem:[%s2037_s1 + $0x448] sm:$0xff] }
  0x41   :  { %513 = vmatpush.msrb.mxu3 %v209_v14  ;;  %574 = vmatpush.msrb.mxu0 %v229_v15  ;;  %v246_v13 = vld [vmem:[%s2037_s1 + $0x2c0] sm:$0xff]  ;;  %v52_v14 = vld [vmem:[%s2038_s0 + $0x130] sm:$0xff]  ;;  %v51_v15 = vld [vmem:[%s2038_s0 + $0x128] sm:$0xff] }
  0x42   :  { %384 = vmatpush.msrb.mxu1 %v176_v16  ;;  %450 = vmatpush.msrb.mxu2 %v191_v17  ;;  %v53_v16 = vld [vmem:[%s2038_s0 + $0x138] sm:$0xff] }
  0x43   :  { %514 = vmatpush.msrb.mxu3 %v208_v18  ;;  %575 = vmatpush.msrb.mxu0 %v228_v19  ;;  %v45_v17 = vld [vmem:[%s2038_s0 + $0xf8] sm:$0xff] }
  0x44   :  { %385 = vmatpush.msrb.mxu1 %v175_v20  ;;  %451 = vmatpush.msrb.mxu2 %v190_v21  ;;  %v261_v18 = vld [vmem:[%s2037_s1 + $0x338] sm:$0xff]  ;;  %v294_v20 = vld [vmem:[%s2037_s1 + $0x440] sm:$0xff] }
  0x45   :  { %515 = vmatpush.msrb.mxu3 %v207_v22  ;;  %576 = vmatpush.msrb.mxu0 %v227_v23  ;;  %v277_v19 = vld [vmem:[%s2037_s1 + $0x3b8] sm:$0xff]  ;;  %v60_v23 = vld [vmem:[%s2038_s0 + $0x170] sm:$0xff] }
  0x46   :  { %386 = vmatpush.msrb.mxu1 %v174_v24  ;;  %452 = vmatmul.f32.vlgmr.msrb.gmra.mxu2 %v16_v25  ;;  %v245_v21 = vld [vmem:[%s2037_s1 + $0x2b8] sm:$0xff]  ;;  %v62_v24 = vld [vmem:[%s2038_s0 + $0x180] sm:$0xff] }
  0x47   :  { %387 = vmatmul.f32.vlgmr.msrb.gmra.mxu1 %v15_v26  ;;  %516 = vmatpush.msrb.mxu3 %v206_v27  ;;  %v61_v22 = vld [vmem:[%s2038_s0 + $0x178] sm:$0xff]  ;;  %v54_v25 = vld [vmem:[%s2038_s0 + $0x140] sm:$0xff]  ;;  %v260_v26 = vld [vmem:[%s2037_s1 + $0x330] sm:$0xff] }
  0x48   :  { %577 = vmatpush.msrb.mxu0 %v226_v28  ;;  %696 = vmatpush.msra.mxu2 %v269_v29  ;;  %v276_v27 = vld [vmem:[%s2037_s1 + $0x3b0] sm:$0xff]  ;;  %v293_v28 = vld [vmem:[%s2037_s1 + $0x438] sm:$0xff] }
  0x49   :  { %331 = vmatmul.f32.gmra.mxu0 %v41_v30  ;;  %517 = vmatmul.f32.vlgmr.msrb.gmra.mxu3 %v17_v31  ;;  %v244_v29 = vld [vmem:[%s2037_s1 + $0x2b0] sm:$0xff]  ;;  %v70_v30 = vld [vmem:[%s2038_s0 + $0x1c0] sm:$0xff]  ;;  %v69_v31 = vld [vmem:[%s2038_s0 + $0x1b8] sm:$0xff] }
  0x4a   :  { %578 = vmatpush.msrb.mxu0 %v225_v32  ;;  %761 = vmatpush.msra.mxu3 %v285_v33  ;;  %v71_v32 = vld [vmem:[%s2038_s0 + $0x1c8] sm:$0xff] }
  0x4b   :  { %631 = vmatpush.msra.mxu1 %v253_v34  ;;  %697 = vmatpush.msra.mxu2 %v268_v35  ;;  %v63_v33 = vld [vmem:[%s2038_s0 + $0x188] sm:$0xff] }
  0x4c   :  { %579 = vmatpush.msrb.mxu0 %v224_v36  ;;  %762 = vmatpush.msra.mxu3 %v284_v37  ;;  %v259_v34 = vld [vmem:[%s2037_s1 + $0x328] sm:$0xff]  ;;  %v292_v36 = vld [vmem:[%s2037_s1 + $0x430] sm:$0xff] }
  0x4d   :  { %632 = vmatpush.msra.mxu1 %v252_v38  ;;  %698 = vmatpush.msra.mxu2 %v267_v39  ;;  %v275_v35 = vld [vmem:[%s2037_s1 + $0x3a8] sm:$0xff]  ;;  %v78_v39 = vld [vmem:[%s2038_s0 + $0x200] sm:$0xff] }
  0x4e   :  { %580 = vmatpush.msrb.mxu0 %v223_v40  ;;  %455 = vmatmul.f32.gmra.mxu2 %v25_v41  ;;  %v243_v37 = vld [vmem:[%s2037_s1 + $0x2a8] sm:$0xff]  ;;  %v80_v40 = vld [vmem:[%s2038_s0 + $0x210] sm:$0xff] }
  0x4f   :  { %390 = vmatmul.f32.gmra.mxu1 %v24_v42  ;;  %763 = vmatpush.msra.mxu3 %v283_v43  ;;  %v79_v38 = vld [vmem:[%s2038_s0 + $0x208] sm:$0xff]  ;;  %v72_v41 = vld [vmem:[%s2038_s0 + $0x1d0] sm:$0xff]  ;;  %v258_v42 = vld [vmem:[%s2037_s1 + $0x320] sm:$0xff] }
  0x50   :  { %581 = vmatpush.msrb.mxu0 %v222_v44  ;;  %633 = vmatpush.msra.mxu1 %v251_v45  ;;  %v274_v43 = vld [vmem:[%s2037_s1 + $0x3a0] sm:$0xff]  ;;  %v291_v44 = vld [vmem:[%s2037_s1 + $0x428] sm:$0xff] }
  0x51   :  { %520 = vmatmul.f32.gmra.mxu3 %v26_v46  ;;  %582 = vmatmul.f32.vlgmr.msrb.gmra.mxu0 %v18_v47  ;;  %v242_v45 = vld [vmem:[%s2037_s1 + $0x2a0] sm:$0xff]  ;;  %v88_v46 = vld [vmem:[%s2038_s0 + $0x250] sm:$0xff]  ;;  %v87_v47 = vld [vmem:[%s2038_s0 + $0x248] sm:$0xff] }
  0x52   :  { %826 = vmatpush.msra.mxu0 %v301_v48  ;;  %699 = vmatpush.msra.mxu2 %v266_v49  ;;  %v89_v48 = vld [vmem:[%s2038_s0 + $0x258] sm:$0xff] }
  0x53   :  { %764 = vmatpush.msra.mxu3 %v282_v50  ;;  %634 = vmatpush.msra.mxu1 %v250_v51  ;;  %v81_v49 = vld [vmem:[%s2038_s0 + $0x218] sm:$0xff] }
  0x54   :  { %827 = vmatpush.msra.mxu0 %v300_v52  ;;  %700 = vmatpush.msra.mxu2 %v265_v53  ;;  %v257_v50 = vld [vmem:[%s2037_s1 + $0x318] sm:$0xff]  ;;  %v290_v52 = vld [vmem:[%s2037_s1 + $0x420] sm:$0xff] }
  0x55   :  { %765 = vmatpush.msra.mxu3 %v281_v54  ;;  %635 = vmatpush.msra.mxu1 %v249_v55  ;;  %v273_v51 = vld [vmem:[%s2037_s1 + $0x398] sm:$0xff]  ;;  %v96_v55 = vld [vmem:[%s2038_s0 + $0x290] sm:$0xff] }
  0x56   :  { %458 = vmatmul.f32.gmra.mxu2 %v34_v56  ;;  %828 = vmatpush.msra.mxu0 %v299_v57  ;;  %v241_v53 = vld [vmem:[%s2037_s1 + $0x298] sm:$0xff]  ;;  %v98_v56 = vld [vmem:[%s2038_s0 + $0x2a0] sm:$0xff] }
  0x57   :  { %393 = vmatmul.f32.gmra.mxu1 %v33_v58  ;;  %701 = vmatpush.msra.mxu2 %v264_v59  ;;  %v97_v54 = vld [vmem:[%s2038_s0 + $0x298] sm:$0xff]  ;;  %v90_v57 = vld [vmem:[%s2038_s0 + $0x260] sm:$0xff]  ;;  %v256_v58 = vld [vmem:[%s2037_s1 + $0x310] sm:$0xff] }
  0x58   :  { %829 = vmatpush.msra.mxu0 %v298_v60  ;;  %766 = vmatpush.msra.mxu3 %v280_v61  ;;  %v272_v59 = vld [vmem:[%s2037_s1 + $0x390] sm:$0xff]  ;;  %v289_v60 = vld [vmem:[%s2037_s1 + $0x418] sm:$0xff] }
  0x59   :  { %523 = vmatmul.f32.gmra.mxu3 %v35_v62  ;;  %585 = vmatmul.f32.gmra.mxu0 %v27_v63  ;;  %v240_v61 = vld [vmem:[%s2037_s1 + $0x290] sm:$0xff]  ;;  %v106_v62 = vld [vmem:[%s2038_s0 + $0x2e0] sm:$0xff]  ;;  %v105_v63 = vld [vmem:[%s2038_s0 + $0x2d8] sm:$0xff] }
  0x5a   :  { %830 = vmatpush.msra.mxu0 %v297_v0  ;;  %636 = vmatpush.msra.mxu1 %v248_v1  ;;  %v107_v0 = vld [vmem:[%s2038_s0 + $0x2e8] sm:$0xff] }
  0x5b   :  { %702 = vmatpush.msra.mxu2 %v263_v2  ;;  %767 = vmatpush.msra.mxu3 %v279_v3  ;;  %v99_v1 = vld [vmem:[%s2038_s0 + $0x2a8] sm:$0xff] }
  0x5c   :  { %831 = vmatpush.msra.mxu0 %v296_v4  ;;  %637 = vmatpush.msra.mxu1 %v247_v5  ;;  %v255_v2 = vld [vmem:[%s2037_s1 + $0x308] sm:$0xff]  ;;  %v288_v4 = vld [vmem:[%s2037_s1 + $0x410] sm:$0xff] }
  0x5d   :  { %703 = vmatpush.msra.mxu2 %v262_v10  ;;  %768 = vmatpush.msra.mxu3 %v278_v11  ;;  %v271_v3 = vld [vmem:[%s2037_s1 + $0x388] sm:$0xff]  ;;  %v254_v11 = vld [vmem:[%s2037_s1 + $0x300] sm:$0xff] }
  0x5e   :  { %461 = vmatmul.f32.gmra.mxu2 %v43_v6  ;;  %832 = vmatpush.msra.mxu0 %v295_v12  ;;  %v239_v5 = vld [vmem:[%s2037_s1 + $0x288] sm:$0xff]  ;;  %v270_v12 = vld [vmem:[%s2037_s1 + $0x380] sm:$0xff] }
  0x5f   :  { %396 = vmatmul.f32.gmra.mxu1 %v42_v7  ;;  %704 = vmatpush.msra.mxu2 %v261_v18  ;;  %v115_v6 = vld [vmem:[%s2038_s0 + $0x328] sm:$0xff]  ;;  %v114_v7 = vld [vmem:[%s2038_s0 + $0x320] sm:$0xff]  ;;  %v125_v18 = vld [vmem:[%s2038_s0 + $0x378] sm:$0xff] }
  0x60   :  { %638 = vmatpush.msra.mxu1 %v246_v13  ;;  %769 = vmatpush.msra.mxu3 %v277_v19  ;;  %v287_v13 = vld [vmem:[%s2037_s1 + $0x408] sm:$0xff]  ;;  %v117_v19 = vld [vmem:[%s2038_s0 + $0x338] sm:$0xff] }
  0x61   :  { %526 = vmatmul.f32.gmra.mxu3 %v44_v8  ;;  %588 = vmatmul.f32.gmra.mxu0 %v36_v9  ;;  %v116_v8 = vld [vmem:[%s2038_s0 + $0x330] sm:$0xff] }
  0x62   :  { %833 = vmatpush.msra.mxu0 %v294_v20  ;;  %639 = vmatpush.msra.mxu1 %v245_v21  ;;  %v108_v9 = vld [vmem:[%s2038_s0 + $0x2f0] sm:$0xff] }
  0x63   :  { %705 = vmatpush.msra.mxu2 %v260_v26  ;;  %770 = vmatpush.msra.mxu3 %v276_v27  ;;  %v134_v27 = vld [vmem:[%s2038_s0 + $0x3c0] sm:$0xff] }
  0x64   :  { %834 = vmatpush.msra.mxu0 %v293_v28  ;;  %640 = vmatpush.msra.mxu1 %v244_v29  ;;  %v126_v28 = vld [vmem:[%s2038_s0 + $0x380] sm:$0xff] }
  0x65   :  { %706 = vmatpush.msra.mxu2 %v259_v34  ;;  %771 = vmatpush.msra.mxu3 %v275_v35  ;;  %v141_v34 = vld [vmem:[%s2038_s0 + $0x3f8] sm:$0xff] }
  0x66   :  { %464 = vmatmul.f32.gmra.mxu2 %v52_v14  ;;  %835 = vmatpush.msra.mxu0 %v292_v36  ;;  %v238_v14 = vld [vmem:[%s2037_s1 + $0x280] sm:$0xff]  ;;  %v143_v36 = vld [vmem:[%s2038_s0 + $0x408] sm:$0xff] }
  0x67   :  { %399 = vmatmul.f32.gmra.mxu1 %v51_v15  ;;  %707 = vmatpush.msra.mxu2 %v258_v42  ;;  %v124_v15 = vld [vmem:[%s2038_s0 + $0x370] sm:$0xff]  ;;  %v151_v42 = vld [vmem:[%s2038_s0 + $0x448] sm:$0xff] }
  0x68   :  { %641 = vmatpush.msra.mxu1 %v243_v37  ;;  %772 = vmatpush.msra.mxu3 %v274_v43  ;;  %v135_v37 = vld [vmem:[%s2038_s0 + $0x3c8] sm:$0xff] }
  0x69   :  { %529 = vmatmul.f32.gmra.mxu3 %v53_v16  ;;  %591 = vmatmul.f32.gmra.mxu0 %v45_v17  ;;  %v123_v16 = vld [vmem:[%s2038_s0 + $0x368] sm:$0xff] }
  0x6a   :  { %836 = vmatpush.msra.mxu0 %v291_v44  ;;  %642 = vmatpush.msra.mxu1 %v242_v45  ;;  %v150_v44 = vld [vmem:[%s2038_s0 + $0x440] sm:$0xff]  ;;  %v152_v45 = vld [vmem:[%s2038_s0 + $0x450] sm:$0xff] }
  0x6b   :  { %708 = vmatpush.msra.mxu2 %v257_v50  ;;  %773 = vmatpush.msra.mxu3 %v273_v51  ;;  %v20_v50 = vld [vmem:[%s2038_s0 + $0x30] sm:$0xff] }
  0x6c   :  { %837 = vmatpush.msra.mxu0 %v290_v52  ;;  %643 = vmatpush.msra.mxu1 %v241_v53  ;;  %v19_v53 = vld [vmem:[%s2038_s0 + $0x28] sm:$0xff] }
  0x6d   :  { %709 = vmatpush.msra.mxu2 %v256_v58  ;;  %774 = vmatpush.msra.mxu3 %v272_v59 }
  0x6e   :  { %467 = vmatmul.f32.gmra.mxu2 %v61_v22  ;;  %838 = vmatpush.msra.mxu0 %v289_v60 }
  0x6f   :  { %402 = vmatmul.f32.gmra.mxu1 %v60_v23  ;;  %710 = vmatpush.msra.mxu2 %v255_v2  ;;  %v286_v23 = vld [vmem:[%s2037_s1 + $0x400] sm:$0xff] }
  0x70   :  { %644 = vmatpush.msra.mxu1 %v240_v61  ;;  %775 = vmatpush.msra.mxu3 %v271_v3  ;;  %v29_v61 = vld [vmem:[%s2038_s0 + $0x78] sm:$0xff] }
  0x71   :  { %532 = vmatmul.f32.gmra.mxu3 %v62_v24  ;;  %594 = vmatmul.f32.gmra.mxu0 %v54_v25  ;;  %v133_v24 = vld [vmem:[%s2038_s0 + $0x3b8] sm:$0xff]  ;;  %v132_v25 = vld [vmem:[%s2038_s0 + $0x3b0] sm:$0xff] }
  0x72   :  { %839 = vmatpush.msra.mxu0 %v288_v4  ;;  %645 = vmatpush.msra.mxu1 %v239_v5  ;;  %v30_v4 = vld [vmem:[%s2038_s0 + $0x80] sm:$0xff] }
  0x73   :  { %711 = vmatpush.msra.mxu2 %v254_v11  ;;  %776 = vmatpush.msra.mxu3 %v270_v12  ;;  %v22_v5 = vld [vmem:[%s2038_s0 + $0x40] sm:$0xff] }
  0x74   :  { %840 = vmatpush.msra.mxu0 %v287_v13  ;;  %646 = vmatpush.msra.mxu1 %v238_v14  ;;  %v37_v13 = vld [vmem:[%s2038_s0 + $0xb8] sm:$0xff] }
  0x76   :  { %470 = vmatmul.f32.gmra.mxu2 %v70_v30  ;;  %841 = vmatpush.msra.mxu0 %v286_v23 }
  0x77   :  { %405 = vmatmul.f32.gmra.mxu1 %v69_v31 }
  0x79   :  { %535 = vmatmul.f32.gmra.mxu3 %v71_v32  ;;  %597 = vmatmul.f32.gmra.mxu0 %v63_v33  ;;  %v142_v32 = vld [vmem:[%s2038_s0 + $0x400] sm:$0xff] }
  0x7a   :  { %v1661_v33 = vld [vmem:[%s2039_s2] ss:$0 sm:$0xff] }
  0x7e   :  { %473 = vmatmul.f32.gmra.mxu2 %v79_v38 }
  0x7f   :  { %408 = vmatmul.f32.gmra.mxu1 %v78_v39 }
  0x81   :  { %538 = vmatmul.f32.gmra.mxu3 %v80_v40  ;;  %600 = vmatmul.f32.gmra.mxu0 %v72_v41 }
  0x86   :  { %476 = vmatmul.f32.gmra.mxu2 %v88_v46  ;;  %v144_v46 = vld [vmem:[%s2038_s0 + $0x410] sm:$0xff] }
  0x87   :  { %411 = vmatmul.f32.gmra.mxu1 %v87_v47 }
  0x89   :  { %541 = vmatmul.f32.gmra.mxu3 %v89_v48  ;;  %603 = vmatmul.f32.gmra.mxu0 %v81_v49 }
  0x8e   :  { %479 = vmatmul.f32.gmra.mxu2 %v97_v54 }
  0x8f   :  { %414 = vmatmul.f32.gmra.mxu1 %v96_v55 }
  0x91   :  { %544 = vmatmul.f32.gmra.mxu3 %v98_v56  ;;  %606 = vmatmul.f32.gmra.mxu0 %v90_v57  ;;  %v153_v56 = vld [vmem:[%s2038_s0 + $0x458] sm:$0xff] }
  0x92   :  { %v21_v57 = vld [vmem:[%s2038_s0 + $0x38] sm:$0xff] }
  0x96   :  { %482 = vmatmul.f32.gmra.mxu2 %v106_v62 }
  0x97   :  { %417 = vmatmul.f32.gmra.mxu1 %v105_v63 }
  0x99   :  { %547 = vmatmul.f32.gmra.mxu3 %v107_v0  ;;  %609 = vmatmul.f32.gmra.mxu0 %v99_v1  ;;  %v28_v0 = vld [vmem:[%s2038_s0 + $0x70] sm:$0xff] }
  0x9e   :  { %485 = vmatmul.f32.gmra.mxu2 %v115_v6  ;;  %v1602_v10 = vpop.f32.mrf.mxu1 }
  0x9f   :  { %420 = vmatmul.f32.gmra.mxu1 %v114_v7 }
  0xa1   :  { %550 = vmatmul.f32.gmra.mxu3 %v116_v8  ;;  %612 = vmatmul.f32.gmra.mxu0 %v108_v9  ;;  %v38_v9 = vld [vmem:[%s2038_s0 + $0xc0] sm:$0xff] }
  0xa4   :  { %v1622_v17 = vpop.f32.mrf.mxu2  ;;  %v323_v22 = vpop.f32.mrf.mxu0 }
  0xa5   :  { %v324_v54 = vadd.f32 %v1661_v33, %v323_v22 }
  0xa6   :  { %488 = vmatmul.f32.gmra.mxu2 %v124_v15  ;;  %v1630_v20 = vpop.f32.mrf.mxu3 }
  0xa7   :  { %423 = vmatmul.f32.gmra.mxu1 %v123_v16  ;;  %v1632_v21 = vpop.f32.mrf.mxu1 }
  0xa9   :  { %553 = vmatmul.f32.gmra.mxu3 %v125_v18  ;;  %615 = vmatmul.f32.gmra.mxu0 %v117_v19  ;;  %v39_v18 = vld [vmem:[%s2038_s0 + $0xc8] sm:$0xff] }
  0xaa   :  { %v31_v19 = vld [vmem:[%s2038_s0 + $0x88] sm:$0xff] }
  0xac   :  { %v1643_v26 = vpop.f32.mrf.mxu2 }
  0xae   :  { %491 = vmatmul.f32.gmra.mxu2 %v133_v24 }
  0xaf   :  { %426 = vmatmul.f32.gmra.mxu1 %v132_v25  ;;  %v1651_v29 = vpop.f32.mrf.mxu3  ;;  %v47_v25 = vld [vmem:[%s2038_s0 + $0x108] sm:$0xff] }
  0xb0   :  { %v1653_v30 = vpop.f32.mrf.mxu1 }
  0xb1   :  { %556 = vmatmul.f32.gmra.mxu3 %v134_v27  ;;  %618 = vmatmul.f32.gmra.mxu0 %v126_v28 }
  0xb2   :  { %v326_v31 = vpop.f32.mrf.mxu0 }
  0xb3   :  { %v327_v2 = vadd.f32 %v1661_v33, %v326_v31  ;;  %v46_v31 = vld [vmem:[%s2038_s0 + $0x100] sm:$0xff] }
  0xb5   :  { %v353_v35 = vpop.f32.mrf.mxu2 }
  0xb6   :  { %494 = vmatmul.f32.gmra.mxu2 %v142_v32  ;;  %v1673_v38 = vadd.f32 %v1661_v33, %v353_v35 }
  0xb7   :  { %429 = vmatmul.f32.gmra.mxu1 %v141_v34 }
  0xb9   :  { %559 = vmatmul.f32.gmra.mxu3 %v143_v36  ;;  %621 = vmatmul.f32.gmra.mxu0 %v135_v37  ;;  %v365_v39 = vpop.f32.mrf.mxu3  ;;  %v48_v36 = vld [vmem:[%s2038_s0 + $0x110] sm:$0xff] }
  0xba   :  { %v1675_v40 = vpop.f32.mrf.mxu1  ;;  %v1678_v41 = vadd.f32 %v1661_v33, %v365_v39  ;;  %v40_v37 = vld [vmem:[%s2038_s0 + $0xd0] sm:$0xff] }
  0xbc   :  { %v329_v43 = vpop.f32.mrf.mxu0 }
  0xbd   :  { %v330_v15 = vadd.f32 %v1661_v33, %v329_v43 }
  0xbe   :  { %497 = vmatmul.f32.gmra.mxu2 %v151_v42 }
  0xbf   :  { %432 = vmatmul.f32.gmra.mxu1 %v150_v44  ;;  %v356_v47 = vpop.f32.mrf.mxu2  ;;  %v56_v44 = vld [vmem:[%s2038_s0 + $0x150] sm:$0xff] }
  0xc0   :  { %v1693_v48 = vadd.f32 %v1661_v33, %v356_v47  ;;  %v55_v47 = vld [vmem:[%s2038_s0 + $0x148] sm:$0xff] }
  0xc1   :  { %562 = vmatmul.f32.gmra.mxu3 %v152_v45  ;;  %624 = vmatmul.f32.gmra.mxu0 %v144_v46 }
  0xc3   :  { %v368_v49 = vpop.f32.mrf.mxu3 }
  0xc4   :  { %v1699_v51 = vadd.f32 %v1661_v33, %v368_v49  ;;  %v388_v52 = vpop.f32.mrf.mxu1 }
  0xc5   :  { %v389_v58 = vadd.f32 %v388_v52, %v324_v54  ;;  %v49_v54 = vld [vmem:[%s2038_s0 + $0x118] sm:$0xff] }
  0xc6   :  { %v332_v55 = vpop.f32.mrf.mxu0  ;;  %712 = vmatmul.f32.vlgmr.msra.gmra.mxu2 %v20_v50  ;;  %v336_v50 = vadd.f32 %v1661_v33, %v1602_v10  ;;  %v65_v10 = vld [vmem:[%s2038_s0 + $0x198] sm:$0xff] }
  0xc7   :  { %647 = vmatmul.f32.vlgmr.msra.gmra.mxu1 %v19_v53  ;;  %v333_v34 = vadd.f32 %v1661_v33, %v332_v55  ;;  %v57_v53 = vld [vmem:[%s2038_s0 + $0x158] sm:$0xff] }
  0xc9   :  { %627 = vmatmul.f32.gmra.mxu0 %v153_v56  ;;  %777 = vmatmul.f32.vlgmr.msra.gmra.mxu3 %v21_v57  ;;  %v453_v59 = vpop.f32.mrf.mxu2 }
  0xca   :  { %v454_v60 = vadd.f32 %v453_v59, %v389_v58 }
  0xcc   :  { %v391_v62 = vpop.f32.mrf.mxu1  ;;  %v518_v63 = vpop.f32.mrf.mxu3 }
  0xcd   :  { %v1717_v1 = vadd.f32 %v518_v63, %v454_v60  ;;  %v392_v6 = vadd.f32 %v391_v62, %v327_v2  ;;  %v64_v60 = vld [vmem:[%s2038_s0 + $0x190] sm:$0xff]  ;;  %v339_v62 = vadd.f32 %v1661_v33, %v1632_v21  ;;  %v58_v2 = vld [vmem:[%s2038_s0 + $0x160] sm:$0xff] }
  0xce   :  { %v1720_v3 = vpop.f32.mrf.mxu0  ;;  %715 = vmatmul.f32.gmra.mxu2 %v29_v61  ;;  %v74_v21 = vld [vmem:[%s2038_s0 + $0x1e0] sm:$0xff] }
  0xcf   :  { %650 = vmatmul.f32.gmra.mxu1 %v28_v0  ;;  %v66_v0 = vld [vmem:[%s2038_s0 + $0x1a0] sm:$0xff] }
  0xd1   :  { %780 = vmatmul.f32.gmra.mxu3 %v30_v4  ;;  %842 = vmatmul.f32.vlgmr.msra.gmra.mxu0 %v22_v5  ;;  %v456_v7 = vpop.f32.mrf.mxu2 }
  0xd2   :  { %v457_v8 = vadd.f32 %v456_v7, %v392_v6 }
  0xd4   :  { %v394_v11 = vpop.f32.mrf.mxu1  ;;  %v521_v12 = vpop.f32.mrf.mxu3 }
  0xd5   :  { %v1734_v14 = vadd.f32 %v521_v12, %v457_v8  ;;  %v395_v22 = vadd.f32 %v394_v11, %v330_v15  ;;  %v342_v12 = vadd.f32 %v1661_v33, %v1653_v30  ;;  %v75_v15 = vld [vmem:[%s2038_s0 + $0x1e8] sm:$0xff] }
  0xd6   :  { %v1737_v16 = vpop.f32.mrf.mxu0  ;;  %718 = vmatmul.f32.gmra.mxu2 %v38_v9  ;;  %v73_v9 = vld [vmem:[%s2038_s0 + $0x1d8] sm:$0xff]  ;;  %v83_v30 = vld [vmem:[%s2038_s0 + $0x228] sm:$0xff] }
  0xd7   :  { %653 = vmatmul.f32.gmra.mxu1 %v37_v13 }
  0xd9   :  { %783 = vmatmul.f32.gmra.mxu3 %v39_v18  ;;  %845 = vmatmul.f32.gmra.mxu0 %v31_v19  ;;  %v459_v23 = vpop.f32.mrf.mxu2  ;;  %v67_v18 = vld [vmem:[%s2038_s0 + $0x1a8] sm:$0xff] }
  0xda   :  { %v460_v24 = vadd.f32 %v459_v23, %v395_v22 }
  0xdc   :  { %v397_v27 = vpop.f32.mrf.mxu1  ;;  %v524_v28 = vpop.f32.mrf.mxu3 }
  0xdd   :  { %v1751_v32 = vadd.f32 %v524_v28, %v460_v24  ;;  %v398_v39 = vadd.f32 %v397_v27, %v333_v34  ;;  %v82_v27 = vld [vmem:[%s2038_s0 + $0x220] sm:$0xff] }
  0xde   :  { %v1754_v35 = vpop.f32.mrf.mxu0  ;;  %721 = vmatmul.f32.gmra.mxu2 %v47_v25 }
  0xdf   :  { %656 = vmatmul.f32.gmra.mxu1 %v46_v31  ;;  %v345_v31 = vadd.f32 %v1661_v33, %v1675_v40  ;;  %v348_v40 = vadd.f32 %v1661_v33, %v1622_v17  ;;  %v93_v17 = vld [vmem:[%s2038_s0 + $0x278] sm:$0xff] }
  0xe1   :  { %786 = vmatmul.f32.gmra.mxu3 %v48_v36  ;;  %848 = vmatmul.f32.gmra.mxu0 %v40_v37  ;;  %v462_v42 = vpop.f32.mrf.mxu2  ;;  %v84_v36 = vld [vmem:[%s2038_s0 + $0x230] sm:$0xff] }
  0xe2   :  { %v463_v43 = vadd.f32 %v462_v42, %v398_v39  ;;  %v76_v37 = vld [vmem:[%s2038_s0 + $0x1f0] sm:$0xff] }
  0xe4   :  { %v400_v45 = vpop.f32.mrf.mxu1  ;;  %v527_v46 = vpop.f32.mrf.mxu3 }
  0xe5   :  { %v1768_v49 = vadd.f32 %v527_v46, %v463_v43  ;;  %v401_v55 = vadd.f32 %v400_v45, %v336_v50 }
  0xe6   :  { %v1772_v52 = vpop.f32.mrf.mxu0  ;;  %724 = vmatmul.f32.gmra.mxu2 %v56_v44  ;;  %v92_v44 = vld [vmem:[%s2038_s0 + $0x270] sm:$0xff] }
  0xe7   :  { %659 = vmatmul.f32.gmra.mxu1 %v55_v47  ;;  %v91_v47 = vld [vmem:[%s2038_s0 + $0x268] sm:$0xff] }
  0xe9   :  { %789 = vmatmul.f32.gmra.mxu3 %v57_v53  ;;  %851 = vmatmul.f32.gmra.mxu0 %v49_v54  ;;  %v465_v56 = vpop.f32.mrf.mxu2 }
  0xea   :  { %v466_v57 = vadd.f32 %v465_v56, %v401_v55  ;;  %v85_v55 = vld [vmem:[%s2038_s0 + $0x238] sm:$0xff] }
  0xec   :  { %v403_v58 = vpop.f32.mrf.mxu1  ;;  %v530_v59 = vpop.f32.mrf.mxu3 }
  0xed   :  { %v1786_v61 = vadd.f32 %v530_v59, %v466_v57  ;;  %v404_v4 = vadd.f32 %v403_v58, %v339_v62  ;;  %v101_v58 = vld [vmem:[%s2038_s0 + $0x2b8] sm:$0xff]  ;;  %v100_v62 = vld [vmem:[%s2038_s0 + $0x2b0] sm:$0xff] }
  0xee   :  { %v1790_v63 = vpop.f32.mrf.mxu0  ;;  %727 = vmatmul.f32.gmra.mxu2 %v65_v10  ;;  %v351_v10 = vadd.f32 %v1661_v33, %v1643_v26  ;;  %v94_v26 = vld [vmem:[%s2038_s0 + $0x280] sm:$0xff] }
  0xef   :  { %662 = vmatmul.f32.gmra.mxu1 %v64_v60 }
  0xf1   :  { %792 = vmatmul.f32.gmra.mxu3 %v66_v0  ;;  %854 = vmatmul.f32.gmra.mxu0 %v58_v2  ;;  %v468_v5 = vpop.f32.mrf.mxu2 }
  0xf2   :  { %v469_v6 = vadd.f32 %v468_v5, %v404_v4  ;;  %v102_v5 = vld [vmem:[%s2038_s0 + $0x2c0] sm:$0xff] }
  0xf4   :  { %v406_v7 = vpop.f32.mrf.mxu1  ;;  %v533_v8 = vpop.f32.mrf.mxu3 }
  0xf5   :  { %v1804_v11 = vadd.f32 %v533_v8, %v469_v6  ;;  %v407_v19 = vadd.f32 %v406_v7, %v342_v12  ;;  %v110_v8 = vld [vmem:[%s2038_s0 + $0x300] sm:$0xff] }
  0xf6   :  { %v1808_v13 = vpop.f32.mrf.mxu0  ;;  %730 = vmatmul.f32.gmra.mxu2 %v74_v21 }
  0xf7   :  { %665 = vmatmul.f32.gmra.mxu1 %v73_v9 }
  0xf9   :  { %795 = vmatmul.f32.gmra.mxu3 %v75_v15  ;;  %857 = vmatmul.f32.gmra.mxu0 %v67_v18  ;;  %v471_v22 = vpop.f32.mrf.mxu2  ;;  %v109_v15 = vld [vmem:[%s2038_s0 + $0x2f8] sm:$0xff] }
  0xfa   :  { %v472_v23 = vadd.f32 %v471_v22, %v407_v19 }
  0xfc   :  { %v409_v24 = vpop.f32.mrf.mxu1  ;;  %v536_v25 = vpop.f32.mrf.mxu3 }
  0xfd   :  { %v1822_v28 = vadd.f32 %v536_v25, %v472_v23  ;;  %v410_v39 = vadd.f32 %v409_v24, %v345_v31  ;;  %v111_v23 = vld [vmem:[%s2038_s0 + $0x308] sm:$0xff] }
  0xfe   :  { %v1826_v34 = vpop.f32.mrf.mxu0  ;;  %733 = vmatmul.f32.gmra.mxu2 %v83_v30  ;;  %v103_v30 = vld [vmem:[%s2038_s0 + $0x2c8] sm:$0xff] }
  0xff   :  { %668 = vmatmul.f32.gmra.mxu1 %v82_v27 }
 0x101   :  { %798 = vmatmul.f32.gmra.mxu3 %v84_v36  ;;  %860 = vmatmul.f32.gmra.mxu0 %v76_v37  ;;  %v474_v42 = vpop.f32.mrf.mxu2  ;;  %v118_v37 = vld [vmem:[%s2038_s0 + $0x340] sm:$0xff] }
 0x102   :  { %v475_v43 = vadd.f32 %v474_v42, %v410_v39 }
 0x104   :  { %v412_v45 = vpop.f32.mrf.mxu1  ;;  %v539_v46 = vpop.f32.mrf.mxu3 }
 0x105   :  { %v413_v50 = vadd.f32 %v412_v45, %v348_v40  ;;  %v1842_v53 = vadd.f32 %v539_v46, %v475_v43  ;;  %v120_v40 = vld [vmem:[%s2038_s0 + $0x350] sm:$0xff] }
 0x106   :  { %v1844_v54 = vpop.f32.mrf.mxu0  ;;  %736 = vmatmul.f32.gmra.mxu2 %v92_v44  ;;  %v112_v44 = vld [vmem:[%s2038_s0 + $0x310] sm:$0xff] }
 0x107   :  { %671 = vmatmul.f32.gmra.mxu1 %v91_v47 }
 0x109   :  { %801 = vmatmul.f32.gmra.mxu3 %v93_v17  ;;  %863 = vmatmul.f32.gmra.mxu0 %v85_v55  ;;  %v477_v56 = vpop.f32.mrf.mxu2 }
 0x10a   :  { %v478_v57 = vadd.f32 %v477_v56, %v413_v50  ;;  %v128_v50 = vld [vmem:[%s2038_s0 + $0x390] sm:$0xff]  ;;  %v127_v56 = vld [vmem:[%s2038_s0 + $0x388] sm:$0xff] }
 0x10c   :  { %v415_v59 = vpop.f32.mrf.mxu1  ;;  %v542_v60 = vpop.f32.mrf.mxu3 }
 0x10d   :  { %v416_v0 = vadd.f32 %v415_v59, %v351_v10  ;;  %v543_v2 = vadd.f32 %v542_v60, %v478_v57  ;;  %v129_v59 = vld [vmem:[%s2038_s0 + $0x398] sm:$0xff] }
 0x10e   :  { %v607_v4 = vpop.f32.mrf.mxu0  ;;  %739 = vmatmul.f32.gmra.mxu2 %v101_v58 }
 0x10f   :  { %v1866_v6 = vadd.f32 %v607_v4, %v543_v2  ;;  %674 = vmatmul.f32.gmra.mxu1 %v100_v62  ;;  %v363_v2 = vadd.f32 %v1661_v33, %v1651_v29  ;;  %v137_v4 = vld [vmem:[%s2038_s0 + $0x3d8] sm:$0xff]  ;;  %v130_v29 = vld [vmem:[%s2038_s0 + $0x3a0] sm:$0xff] }
 0x111   :  { %804 = vmatmul.f32.gmra.mxu3 %v102_v5  ;;  %866 = vmatmul.f32.gmra.mxu0 %v94_v26  ;;  %v480_v21 = vpop.f32.mrf.mxu2 }
 0x112   :  { %v481_v7 = vadd.f32 %v480_v21, %v416_v0  ;;  %v136_v21 = vld [vmem:[%s2038_s0 + $0x3d0] sm:$0xff] }
 0x114   :  { %v418_v9 = vpop.f32.mrf.mxu1  ;;  %v545_v12 = vpop.f32.mrf.mxu3 }
 0x115   :  { %v419_v18 = vadd.f32 %v418_v9, %v1673_v38  ;;  %v546_v19 = vadd.f32 %v545_v12, %v481_v7  ;;  %v119_v38 = vld [vmem:[%s2038_s0 + $0x348] sm:$0xff]  ;;  %v138_v12 = vld [vmem:[%s2038_s0 + $0x3e0] sm:$0xff] }
 0x116   :  { %v610_v22 = vpop.f32.mrf.mxu0  ;;  %742 = vmatmul.f32.gmra.mxu2 %v110_v8 }
 0x117   :  { %v1881_v24 = vadd.f32 %v610_v22, %v546_v19  ;;  %677 = vmatmul.f32.gmra.mxu1 %v109_v15  ;;  %v146_v19 = vld [vmem:[%s2038_s0 + $0x420] sm:$0xff] }
 0x119   :  { %807 = vmatmul.f32.gmra.mxu3 %v111_v23  ;;  %869 = vmatmul.f32.gmra.mxu0 %v103_v30  ;;  %v483_v25 = vpop.f32.mrf.mxu2  ;;  %v145_v30 = vld [vmem:[%s2038_s0 + $0x418] sm:$0xff] }
 0x11a   :  { %v484_v27 = vadd.f32 %v483_v25, %v419_v18 }
 0x11c   :  { %v421_v31 = vpop.f32.mrf.mxu1  ;;  %v548_v36 = vpop.f32.mrf.mxu3 }
 0x11d   :  { %v422_v39 = vadd.f32 %v421_v31, %v1693_v48  ;;  %v549_v42 = vadd.f32 %v548_v36, %v484_v27  ;;  %v360_v48 = vadd.f32 %v1661_v33, %v1630_v20  ;;  %v121_v20 = vld [vmem:[%s2038_s0 + $0x358] sm:$0xff]  ;;  %v147_v31 = vld [vmem:[%s2038_s0 + $0x428] sm:$0xff] }
 0x11e   :  { %v613_v43 = vpop.f32.mrf.mxu0  ;;  %745 = vmatmul.f32.gmra.mxu2 %v119_v38  ;;  %v139_v36 = vld [vmem:[%s2038_s0 + $0x3e8] sm:$0xff] }
 0x11f   :  { %v1896_v45 = vadd.f32 %v613_v43, %v549_v42  ;;  %680 = vmatmul.f32.gmra.mxu1 %v118_v37 }
 0x121   :  { %810 = vmatmul.f32.gmra.mxu3 %v120_v40  ;;  %872 = vmatmul.f32.gmra.mxu0 %v112_v44  ;;  %v486_v46 = vpop.f32.mrf.mxu2  ;;  %v154_v44 = vld [vmem:[%s2038_s0 + $0x460] sm:$0xff] }
 0x122   :  { %v487_v47 = vadd.f32 %v486_v46, %v422_v39 }
 0x124   :  { %v424_v17 = vpop.f32.mrf.mxu1  ;;  %v551_v55 = vpop.f32.mrf.mxu3 }
 0x125   :  { %v425_v57 = vadd.f32 %v424_v17, %v360_v48  ;;  %v552_v10 = vadd.f32 %v551_v55, %v487_v47  ;;  %v148_v17 = vld [vmem:[%s2038_s0 + $0x430] sm:$0xff] }
 0x126   :  { %v616_v58 = vpop.f32.mrf.mxu0  ;;  %748 = vmatmul.f32.gmra.mxu2 %v128_v50  ;;  %v156_v50 = vld [vmem:[%s2038_s0 + $0x470] sm:$0xff] }
 0x127   :  { %v1912_v60 = vadd.f32 %v616_v58, %v552_v10  ;;  %683 = vmatmul.f32.gmra.mxu1 %v127_v56 }
 0x129   :  { %813 = vmatmul.f32.gmra.mxu3 %v129_v59  ;;  %875 = vmatmul.f32.gmra.mxu0 %v121_v20  ;;  %v489_v62 = vpop.f32.mrf.mxu2  ;;  %v584_v59 = vadd.f32 %v1720_v3, %v1717_v1 }
 0x12a   :  { %v490_v0 = vadd.f32 %v489_v62, %v425_v57  ;;  %v157_v62 = vld [vmem:[%s2038_s0 + $0x478] sm:$0xff] }
 0x12c   :  { %v427_v5 = vpop.f32.mrf.mxu1  ;;  %v554_v26 = vpop.f32.mrf.mxu3 }
 0x12d   :  { %v428_v7 = vadd.f32 %v427_v5, %v363_v2  ;;  %v555_v8 = vadd.f32 %v554_v26, %v490_v0 }
 0x12e   :  { %v619_v9 = vpop.f32.mrf.mxu0  ;;  %751 = vmatmul.f32.gmra.mxu2 %v137_v4 }
 0x12f   :  { %v1928_v33 = vadd.f32 %v619_v9, %v555_v8  ;;  %686 = vmatmul.f32.gmra.mxu1 %v136_v21  ;;  %v587_v8 = vadd.f32 %v1737_v16, %v1734_v14 }
 0x131   :  { %816 = vmatmul.f32.gmra.mxu3 %v138_v12  ;;  %878 = vmatmul.f32.gmra.mxu0 %v130_v29  ;;  %v492_v15 = vpop.f32.mrf.mxu2 }
 0x132   :  { %v493_v18 = vadd.f32 %v492_v15, %v428_v7 }
 0x134   :  { %v430_v22 = vpop.f32.mrf.mxu1  ;;  %v557_v23 = vpop.f32.mrf.mxu3 }
 0x135   :  { %v431_v25 = vadd.f32 %v430_v22, %v1678_v41  ;;  %v558_v27 = vadd.f32 %v557_v23, %v493_v18  ;;  %v155_v41 = vld [vmem:[%s2038_s0 + $0x468] sm:$0xff]  ;;  %v590_v23 = vadd.f32 %v1754_v35, %v1751_v32 }
 0x136   :  { %v622_v38 = vpop.f32.mrf.mxu0  ;;  %754 = vmatmul.f32.gmra.mxu2 %v146_v19 }
 0x137   :  { %v1943_v37 = vadd.f32 %v622_v38, %v558_v27  ;;  %689 = vmatmul.f32.gmra.mxu1 %v145_v30 }
 0x139   :  { %819 = vmatmul.f32.gmra.mxu3 %v147_v31  ;;  %881 = vmatmul.f32.gmra.mxu0 %v139_v36  ;;  %v495_v39 = vpop.f32.mrf.mxu2 }
 0x13a   :  { %v496_v42 = vadd.f32 %v495_v39, %v431_v25 }
 0x13c   :  { %v433_v43 = vpop.f32.mrf.mxu1  ;;  %v560_v40 = vpop.f32.mrf.mxu3 }
 0x13d   :  { %v434_v46 = vadd.f32 %v433_v43, %v1699_v51  ;;  %v561_v47 = vadd.f32 %v560_v40, %v496_v42  ;;  %v593_v42 = vadd.f32 %v1772_v52, %v1768_v49 }
 0x13e   :  { %v625_v48 = vpop.f32.mrf.mxu0  ;;  %757 = vmatmul.f32.gmra.mxu2 %v155_v41 }
 0x13f   :  { %v1958_v55 = vadd.f32 %v625_v48, %v561_v47  ;;  %692 = vmatmul.f32.gmra.mxu1 %v154_v44 }
 0x141   :  { %822 = vmatmul.f32.gmra.mxu3 %v156_v50  ;;  %884 = vmatmul.f32.gmra.mxu0 %v148_v17  ;;  %v498_v56 = vpop.f32.mrf.mxu2  ;;  %v596_v50 = vadd.f32 %v1790_v63, %v1786_v61 }
 0x142   :  { %v499_v57 = vadd.f32 %v498_v56, %v434_v46 }
 0x144   :  { %v563_v10 = vpop.f32.mrf.mxu3  ;;  %v648_v51 = vpop.f32.mrf.mxu1 }
 0x145   :  { %v564_v58 = vadd.f32 %v563_v10, %v499_v57  ;;  %v649_v2 = vadd.f32 %v648_v51, %v584_v59 }
 0x146   :  { %v628_v20 = vpop.f32.mrf.mxu0 }
 0x147   :  { %v1965_v0 = vadd.f32 %v628_v20, %v564_v58  ;;  %v599_v20 = vadd.f32 %v1808_v13, %v1804_v11 }
 0x149   :  { %887 = vmatmul.f32.gmra.mxu0 %v157_v62  ;;  %v713_v4 = vpop.f32.mrf.mxu2 }
 0x14a   :  { %v714_v5 = vadd.f32 %v713_v4, %v649_v2 }
 0x14c   :  { %v651_v26 = vpop.f32.mrf.mxu1  ;;  %v778_v21 = vpop.f32.mrf.mxu3 }
 0x14d   :  { %v779_v7 = vadd.f32 %v778_v21, %v714_v5  ;;  %v652_v1 = vadd.f32 %v651_v26, %v587_v8  ;;  %v602_v8 = vadd.f32 %v1826_v34, %v1822_v28 }
 0x14e   :  { %v843_v9 = vpop.f32.mrf.mxu0 }
 0x14f   :  { %v844_v12 = vadd.f32 %v843_v9, %v779_v7 }
 0x151   :  { %v891_v3 = vmax.f32 %v844_v12, 0.0  ;;  %v716_v29 = vpop.f32.mrf.mxu2 }
 0x152   :  { %v717_v15 = vadd.f32 %v716_v29, %v652_v1 }
 0x153   :  { %907 = vst [vmem:[%s2040_s3] sm:$0xff] %v891_v3 }
 0x154   :  { %v654_v18 = vpop.f32.mrf.mxu1  ;;  %v781_v19 = vpop.f32.mrf.mxu3 }
 0x155   :  { %v782_v22 = vadd.f32 %v781_v19, %v717_v15  ;;  %v655_v27 = vadd.f32 %v654_v18, %v590_v23  ;;  %v605_v19 = vadd.f32 %v1844_v54, %v1842_v53 }
 0x156   :  { %v846_v30 = vpop.f32.mrf.mxu0 }
 0x157   :  { %v847_v25 = vadd.f32 %v846_v30, %v782_v22 }
 0x159   :  { %v892_v14 = vmax.f32 %v847_v25, 0.0  ;;  %v719_v16 = vpop.f32.mrf.mxu2 }
 0x15a   :  { %v720_v38 = vadd.f32 %v719_v16, %v655_v27 }
 0x15b   :  { %908 = vst [vmem:[%s2040_s3 + $0x8] sm:$0xff] %v892_v14 }
 0x15c   :  { %v657_v31 = vpop.f32.mrf.mxu1  ;;  %v784_v36 = vpop.f32.mrf.mxu3 }
 0x15d   :  { %v785_v39 = vadd.f32 %v784_v36, %v720_v38  ;;  %v658_v40 = vadd.f32 %v657_v31, %v593_v42 }
 0x15e   :  { %v849_v41 = vpop.f32.mrf.mxu0 }
 0x15f   :  { %v850_v43 = vadd.f32 %v849_v41, %v785_v39 }
 0x161   :  { %v893_v32 = vmax.f32 %v850_v43, 0.0  ;;  %v722_v35 = vpop.f32.mrf.mxu2 }
 0x162   :  { %v723_v44 = vadd.f32 %v722_v35, %v658_v40 }
 0x163   :  { %909 = vst [vmem:[%s2040_s3 + $0x10] sm:$0xff] %v893_v32 }
 0x164   :  { %v660_v46 = vpop.f32.mrf.mxu1  ;;  %v787_v47 = vpop.f32.mrf.mxu3 }
 0x165   :  { %v788_v48 = vadd.f32 %v787_v47, %v723_v44  ;;  %v661_v57 = vadd.f32 %v660_v46, %v596_v50 }
 0x166   :  { %v852_v17 = vpop.f32.mrf.mxu0 }
 0x167   :  { %v853_v56 = vadd.f32 %v852_v17, %v788_v48 }
 0x169   :  { %v894_v49 = vmax.f32 %v853_v56, 0.0  ;;  %v725_v52 = vpop.f32.mrf.mxu2 }
 0x16a   :  { %v726_v10 = vadd.f32 %v725_v52, %v661_v57 }
 0x16b   :  { %910 = vst [vmem:[%s2040_s3 + $0x18] sm:$0xff] %v894_v49 }
 0x16c   :  { %v663_v51 = vpop.f32.mrf.mxu1  ;;  %v790_v58 = vpop.f32.mrf.mxu3 }
 0x16d   :  { %v791_v59 = vadd.f32 %v790_v58, %v726_v10  ;;  %v664_v4 = vadd.f32 %v663_v51, %v599_v20 }
 0x16e   :  { %v855_v62 = vpop.f32.mrf.mxu0 }
 0x16f   :  { %v856_v2 = vadd.f32 %v855_v62, %v791_v59 }
 0x171   :  { %v895_v61 = vmax.f32 %v856_v2, 0.0  ;;  %v728_v63 = vpop.f32.mrf.mxu2 }
 0x172   :  { %v729_v5 = vadd.f32 %v728_v63, %v664_v4 }
 0x173   :  { %911 = vst [vmem:[%s2040_s3 + $0x20] sm:$0xff] %v895_v61 }
 0x174   :  { %v666_v26 = vpop.f32.mrf.mxu1  ;;  %v793_v21 = vpop.f32.mrf.mxu3 }
 0x175   :  { %v794_v7 = vadd.f32 %v793_v21, %v729_v5  ;;  %v667_v1 = vadd.f32 %v666_v26, %v602_v8 }
 0x176   :  { %v858_v9 = vpop.f32.mrf.mxu0 }
 0x177   :  { %v859_v12 = vadd.f32 %v858_v9, %v794_v7 }
 0x179   :  { %v896_v11 = vmax.f32 %v859_v12, 0.0  ;;  %v731_v13 = vpop.f32.mrf.mxu2 }
 0x17a   :  { %v732_v3 = vadd.f32 %v731_v13, %v667_v1 }
 0x17b   :  { %912 = vst [vmem:[%s2040_s3 + $0x28] sm:$0xff] %v896_v11 }
 0x17c   :  { %v669_v29 = vpop.f32.mrf.mxu1  ;;  %v796_v15 = vpop.f32.mrf.mxu3 }
 0x17d   :  { %v797_v18 = vadd.f32 %v796_v15, %v732_v3  ;;  %v670_v30 = vadd.f32 %v669_v29, %v605_v19 }
 0x17e   :  { %v861_v22 = vpop.f32.mrf.mxu0 }
 0x17f   :  { %v862_v23 = vadd.f32 %v861_v22, %v797_v18 }
 0x181   :  { %v897_v28 = vmax.f32 %v862_v23, 0.0  ;;  %v734_v34 = vpop.f32.mrf.mxu2 }
 0x182   :  { %v735_v25 = vadd.f32 %v734_v34, %v670_v30 }
 0x183   :  { %913 = vst [vmem:[%s2040_s3 + $0x30] sm:$0xff] %v897_v28 }
 0x184   :  { %v672_v27 = vpop.f32.mrf.mxu1  ;;  %v799_v14 = vpop.f32.mrf.mxu3 }
 0x185   :  { %v800_v16 = vadd.f32 %v799_v14, %v735_v25  ;;  %v673_v36 = vadd.f32 %v672_v27, %v1866_v6 }
 0x186   :  { %v864_v38 = vpop.f32.mrf.mxu0 }
 0x187   :  { %v865_v31 = vadd.f32 %v864_v38, %v800_v16 }
 0x189   :  { %v898_v39 = vmax.f32 %v865_v31, 0.0  ;;  %v737_v42 = vpop.f32.mrf.mxu2 }
 0x18a   :  { %v738_v53 = vadd.f32 %v737_v42, %v673_v36 }
 0x18b   :  { %914 = vst [vmem:[%s2040_s3 + $0x38] sm:$0xff] %v898_v39 }
 0x18c   :  { %v675_v54 = vpop.f32.mrf.mxu1  ;;  %v802_v41 = vpop.f32.mrf.mxu3 }
 0x18d   :  { %v803_v43 = vadd.f32 %v802_v41, %v738_v53  ;;  %v676_v35 = vadd.f32 %v675_v54, %v1881_v24 }
 0x18e   :  { %v867_v40 = vpop.f32.mrf.mxu0 }
 0x18f   :  { %v868_v32 = vadd.f32 %v867_v40, %v803_v43 }
 0x191   :  { %v899_v44 = vmax.f32 %v868_v32, 0.0  ;;  %v740_v46 = vpop.f32.mrf.mxu2 }
 0x192   :  { %v741_v47 = vadd.f32 %v740_v46, %v676_v35 }
 0x193   :  { %915 = vst [vmem:[%s2040_s3 + $0x40] sm:$0xff] %v899_v44 }
 0x194   :  { %v678_v6 = vpop.f32.mrf.mxu1  ;;  %v805_v48 = vpop.f32.mrf.mxu3 }
 0x195   :  { %v806_v50 = vadd.f32 %v805_v48, %v741_v47  ;;  %v679_v57 = vadd.f32 %v678_v6, %v1896_v45 }
 0x196   :  { %v870_v17 = vpop.f32.mrf.mxu0 }
 0x197   :  { %v871_v56 = vadd.f32 %v870_v17, %v806_v50 }
 0x199   :  { %v900_v49 = vmax.f32 %v871_v56, 0.0  ;;  %v743_v52 = vpop.f32.mrf.mxu2 }
 0x19a   :  { %v744_v10 = vadd.f32 %v743_v52, %v679_v57 }
 0x19b   :  { %916 = vst [vmem:[%s2040_s3 + $0x48] sm:$0xff] %v900_v49 }
 0x19c   :  { %v681_v24 = vpop.f32.mrf.mxu1  ;;  %v808_v51 = vpop.f32.mrf.mxu3 }
 0x19d   :  { %v809_v58 = vadd.f32 %v808_v51, %v744_v10  ;;  %v682_v62 = vadd.f32 %v681_v24, %v1912_v60 }
 0x19e   :  { %v873_v59 = vpop.f32.mrf.mxu0 }
 0x19f   :  { %v874_v20 = vadd.f32 %v873_v59, %v809_v58 }
 0x1a1   :  { %v901_v2 = vmax.f32 %v874_v20, 0.0  ;;  %v746_v4 = vpop.f32.mrf.mxu2 }
 0x1a2   :  { %v747_v61 = vadd.f32 %v746_v4, %v682_v62 }
 0x1a3   :  { %917 = vst [vmem:[%s2040_s3 + $0x50] sm:$0xff] %v901_v2 }
 0x1a4   :  { %v684_v45 = vpop.f32.mrf.mxu1  ;;  %v811_v63 = vpop.f32.mrf.mxu3 }
 0x1a5   :  { %v812_v5 = vadd.f32 %v811_v63, %v747_v61  ;;  %v685_v7 = vadd.f32 %v684_v45, %v1928_v33 }
 0x1a6   :  { %v876_v26 = vpop.f32.mrf.mxu0 }
 0x1a7   :  { %v877_v21 = vadd.f32 %v876_v26, %v812_v5 }
 0x1a9   :  { %v902_v8 = vmax.f32 %v877_v21, 0.0  ;;  %v749_v9 = vpop.f32.mrf.mxu2 }
 0x1aa   :  { %v750_v12 = vadd.f32 %v749_v9, %v685_v7 }
 0x1ab   :  { %918 = vst [vmem:[%s2040_s3 + $0x58] sm:$0xff] %v902_v8 }
 0x1ac   :  { %v687_v60 = vpop.f32.mrf.mxu1  ;;  %v814_v1 = vpop.f32.mrf.mxu3 }
 0x1ad   :  { %v815_v11 = vadd.f32 %v814_v1, %v750_v12  ;;  %v688_v29 = vadd.f32 %v687_v60, %v1943_v37 }
 0x1ae   :  { %v879_v13 = vpop.f32.mrf.mxu0 }
 0x1af   :  { %v880_v3 = vadd.f32 %v879_v13, %v815_v11 }
 0x1b1   :  { %v903_v15 = vmax.f32 %v880_v3, 0.0  ;;  %v752_v18 = vpop.f32.mrf.mxu2 }
 0x1b2   :  { %v753_v19 = vadd.f32 %v752_v18, %v688_v29 }
 0x1b3   :  { %919 = vst [vmem:[%s2040_s3 + $0x60] sm:$0xff] %v903_v15 }
 0x1b4   :  { %v690_v33 = vpop.f32.mrf.mxu1  ;;  %v817_v22 = vpop.f32.mrf.mxu3 }
 0x1b5   :  { %v818_v23 = vadd.f32 %v817_v22, %v753_v19  ;;  %v691_v34 = vadd.f32 %v690_v33, %v1958_v55 }
 0x1b6   :  { %v882_v30 = vpop.f32.mrf.mxu0 }
 0x1b7   :  { %v883_v28 = vadd.f32 %v882_v30, %v818_v23 }
 0x1b9   :  { %v904_v25 = vmax.f32 %v883_v28, 0.0  ;;  %v755_v27 = vpop.f32.mrf.mxu2 }
 0x1ba   :  { %v756_v14 = vadd.f32 %v755_v27, %v691_v34 }
 0x1bb   :  { %920 = vst [vmem:[%s2040_s3 + $0x68] sm:$0xff] %v904_v25 }
 0x1bc   :  { %v820_v37 = vpop.f32.mrf.mxu3  ;;  %v693_v16 = vpop.f32.mrf.mxu1 }
 0x1bd   :  { %v821_v38 = vadd.f32 %v820_v37, %v756_v14  ;;  %v694_v39 = vadd.f32 %v693_v16, %v1965_v0 }
 0x1be   :  { %v885_v31 = vpop.f32.mrf.mxu0 }
 0x1bf   :  { %v886_v36 = vadd.f32 %v885_v31, %v821_v38 }
 0x1c1   :  { %v905_v42 = vmax.f32 %v886_v36, 0.0  ;;  %v758_v53 = vpop.f32.mrf.mxu2 }
 0x1c2   :  { %v759_v54 = vadd.f32 %v758_v53, %v694_v39 }
 0x1c3   :  { %921 = vst [vmem:[%s2040_s3 + $0x70] sm:$0xff] %v905_v42 }
 0x1c4   :  { %v823_v55 = vpop.f32.mrf.mxu3 }
 0x1c5   :  { %v824_v41 = vadd.f32 %v823_v55, %v759_v54 }
 0x1c6   :  { %v888_v43 = vpop.f32.mrf.mxu0 }
 0x1c7   :  { %v889_v40 = vadd.f32 %v888_v43, %v824_v41 }
 0x1c9   :  { %v906_v32 = vmax.f32 %v889_v40, 0.0 }
 0x1cb   :  { %922 = vst [vmem:[%s2040_s3 + $0x78] sm:$0xff] %v906_v32 }

// kernel: lrcn_forward.14
= control target key start
LH: loop header
LB: loop body
LE: loop exit
PB: predicated region body
PF: predicated region fallthrough
CT: control target
= control target key end

     0   :  { %s138_s1 = inlined_call_operand.vmem [shape: f32[128,128], index: 1, kind: input, shape index: {}]   ;;  %s139_s2 = inlined_call_operand.vmem [shape: f32[1,128], index: 2, kind: input, shape index: {}]   ;;  %s140_s0 = inlined_call_operand.vmem [shape: f32[8,128], index: 0, kind: input, shape index: {}]   ;;  %s141_s3 = inlined_call_operand.vmem [shape: f32[8,128], index: 3, kind: output, shape index: {}]  }
   0x1   :  { %v30_v0 = vld [vmem:[%s138_s1 + $0x78] sm:$0xff]  ;;  %v29_v1 = vld [vmem:[%s138_s1 + $0x70] sm:$0xff]  ;;  %v28_v2 = vld [vmem:[%s138_s1 + $0x68] sm:$0xff] }
   0x2   :  { %35 = vmatpush.msra.mxu0 %v30_v0  ;;  %v27_v3 = vld [vmem:[%s138_s1 + $0x60] sm:$0xff]  ;;  %v26_v4 = vld [vmem:[%s138_s1 + $0x58] sm:$0xff]  ;;  %v25_v5 = vld [vmem:[%s138_s1 + $0x50] sm:$0xff] }
   0x3   :  { %v24_v6 = vld [vmem:[%s138_s1 + $0x48] sm:$0xff]  ;;  %v23_v7 = vld [vmem:[%s138_s1 + $0x40] sm:$0xff]  ;;  %v22_v8 = vld [vmem:[%s138_s1 + $0x38] sm:$0xff] }
   0x4   :  { %36 = vmatpush.msra.mxu0 %v29_v1  ;;  %v21_v9 = vld [vmem:[%s138_s1 + $0x30] sm:$0xff]  ;;  %v20_v10 = vld [vmem:[%s138_s1 + $0x28] sm:$0xff]  ;;  %v19_v11 = vld [vmem:[%s138_s1 + $0x20] sm:$0xff] }
   0x5   :  { %v18_v12 = vld [vmem:[%s138_s1 + $0x18] sm:$0xff]  ;;  %v17_v13 = vld [vmem:[%s138_s1 + $0x10] sm:$0xff]  ;;  %v16_v14 = vld [vmem:[%s138_s1 + $0x8] sm:$0xff] }
   0x6   :  { %37 = vmatpush.msra.mxu0 %v28_v2  ;;  %v15_v15 = vld [vmem:[%s138_s1] sm:$0xff] }
   0x7   :  { %v14_v16 = vld [vmem:[%s140_s0] sm:$0xff] }
   0x8   :  { %38 = vmatpush.msra.mxu0 %v27_v3  ;;  %v60_v17 = vld [vmem:[%s139_s2] ss:$0 sm:$0xff] }
   0xa   :  { %39 = vmatpush.msra.mxu0 %v26_v4 }
   0xc   :  { %40 = vmatpush.msra.mxu0 %v25_v5 }
   0xe   :  { %41 = vmatpush.msra.mxu0 %v24_v6 }
  0x10   :  { %42 = vmatpush.msra.mxu0 %v23_v7 }
  0x12   :  { %43 = vmatpush.msra.mxu0 %v22_v8 }
  0x14   :  { %44 = vmatpush.msra.mxu0 %v21_v9 }
  0x16   :  { %45 = vmatpush.msra.mxu0 %v20_v10 }
  0x18   :  { %46 = vmatpush.msra.mxu0 %v19_v11 }
  0x1a   :  { %47 = vmatpush.msra.mxu0 %v18_v12 }
  0x1c   :  { %48 = vmatpush.msra.mxu0 %v17_v13 }
  0x1e   :  { %49 = vmatpush.msra.mxu0 %v16_v14 }
  0x20   :  { %50 = vmatpush.msra.mxu0 %v15_v15 }
  0x21   :  { %51 = vmatmul.f32.vlgmr.msra.gmra.mxu0 %v14_v16 }
  0x9e   :  { %v52_v18 = vpop.f32.mrf.mxu0 }
  0x9f   :  { %v53_v19 = vadd.f32 %v60_v17, %v52_v18 }
  0xa1   :  { %55 = vst [vmem:[%s141_s3] sm:$0xff] %v53_v19 }

// kernel: lrcn_forward.16
= control target key start
LH: loop header
LB: loop body
LE: loop exit
PB: predicated region body
PF: predicated region fallthrough
CT: control target
= control target key end

     0   :  { %s595_s9 = smov 0   ;;  %s597_s10 = smov 0   ;;  %s661_s0 = inlined_call_operand.vmem [shape: f32[2,4,2,128], index: 0, kind: input, shape index: {}]   ;;  %s662_s1 = inlined_call_operand.vmem [shape: f32[2,32,128], index: 1, kind: input, shape index: {}]   ;;  %s663_s2 = inlined_call_operand.vmem [shape: f32[2,4,2,32], index: 2, kind: output, shape index: {}]  }
   0x1   :  { %s599_s11 = smov 0   ;;  %s601_s12 = smov 0  }
   0x2   :  { %s603_s13 = smov 0  }
   0x3 LB: > { %s21_s14 = sadd.s32 1, %s566_s11  ;;  %s24_s15 = sadd.s32 1, %s570_s12  ;;  %s574_s13 = sphi %s603_s13, %s12_s13   ;;  %s570_s12 = sphi %s601_s12, %s667_s12   ;;  %s566_s11 = sphi %s599_s11, %s666_s11   ;;  %s562_s10 = sphi %s597_s10, %s665_s10   ;;  %s558_s9 = sphi %s595_s9, %s664_s9  }
   0x4   : > { %p22_p0 = scmp.ge.s32.totalorder %s21_s14, 4  ;;  %p469_p1 = scmp.ge.s32.totalorder %s574_s13, 1 }
   0x5   : > { %p171_p2 = scmp.lt.s32.totalorder %s574_s13, 9 }
   0x6   : > { %s669_s14 = smov (%p22_p0, %s21_s14), 0  ;;  %s671_s15 = smov (!%p22_p0, %s24_s15), %s570_s12 }
   0x7   : > { %p172_p3 = pnand %p469_p1, %p171_p2  ;;  %p26_p4 = scmp.ge.s32.totalorder %s671_s15, 2 }
   0x8   : > { %s214_s16 = smul.u32 (!%p172_p3), 3, %s562_s10  ;;  %s470_s17 = sshll.u32 (!%p172_p3), %s562_s10, 1 }
   0x9   : > { %s673_s15 = smov (%p26_p4, %s671_s15), 0  ;;  %175 = sbr.rel (%p172_p3) target bundleno = 619 (0x26b), region = 28 }
   0xa   : > { %s216_s18 = ssub.s32 (!%p172_p3), 1, %s470_s17  ;;  %p219_p5 = scmp.lt.s32.totalorder (!%p172_p3), %s562_s10, 1 }
   0xb   : > { %s217_s19 = smul.u32 (!%p172_p3), %s558_s9, %s216_s18  ;;  %p478_p7 = scmp.ne.s32.totalorder (!%p172_p3), %s558_s9, 0 }
   0xd   : > { %s218_s20 = sadd.s32 (!%p172_p3), %s217_s19, %s214_s16 }
   0xe   : > { %s675_s10 = smov (!%p219_p5, %s562_s10), 1  ;;  %p221_p6 = scmp.lt.s32.totalorder %s218_s20, 3 }
   0xf   : > { %s471_s21 = sshll.u32 %s675_s10, 2  ;;  %s483_s22 = sshll.u32 %s675_s10, 5 }
  0x10   : > { %s677_s20 = smov (!%p221_p6, %s218_s20), 3  ;;  %s236_s25 = scalar_lea.vmem %s662_s1, %s483_s22 }
  0x11   : > { %s224_s26 = sadd.s32 %s471_s21, %s677_s20  ;;  %258 = sbr.rel (%p478_p7) target bundleno = 25 (0x19), region = 32 }
  0x12   : > { %s472_s27 = sshll.u32 %s224_s26, 1 }
  0x13   : > { %s226_s30 = scalar_lea.vmem %s661_s0, %s472_s27  ;;  %s637_s5 = scalar_lea.vmem %s663_s2, %s472_s27 }
  0x16   : > { %vm259_vm0 = vcmask 254976   ;;  %v576_v0 = vmov 0.0  }
  0x17   : > { %260 = vst.msk [vmem:[#allocation2] sm:$0x3] %vm259_vm0, %v576_v0 }
  0x18   : > { %261 = vst.msk [vmem:[#allocation3] sm:$0x3] %vm259_vm0, %v576_v0 }
  0x19 PF: > { %v267_v1 = vld [vmem:[%s236_s25 + $0x18] sm:$0xff]  ;;  %v266_v2 = vld [vmem:[%s236_s25 + $0x10] sm:$0xff]  ;;  %v265_v3 = vld [vmem:[%s236_s25 + $0x8] sm:$0xff]  ;;  %vm268_vm1 = vcmask 261120   ;;  %s577_s6 = smov 64   ;;  %s578_s7 = smov 32  }
  0x1a   : > { %284 = vmatpush.msra.mxu0 %v267_v1  ;;  %v264_v4 = vld [vmem:[%s236_s25] sm:$0xff]  ;;  %s579_s8 = smov 96   ;;  %vm339_vm6 = vcmask 254976  }
  0x1b   : > { %v262_v6 = vld [vmem:[%s226_s30] sm:$0x3] }
  0x1c   : > { %285 = vmatpush.msra.mxu0 %v266_v2 }
  0x1e   : > { %286 = vmatpush.msra.mxu0 %v265_v3  ;;  %v263_v5 = vld [vmem:[#allocation2] sm:$0x3] }
  0x1f   : > { %v313_v10 = vld [vmem:[#allocation3] sm:$0x3] }
  0x20   : > { %287 = vmatpush.msra.mxu0 %v264_v4 }
  0x21   : > { %479 = vmatmul.msk.f32.vlgmr.msra.gmra.mxu0 %vm268_vm1, %v263_v5 }
  0x9e   : > { %v289_v7 = vpop.f32.mrf.mxu0 }
  0x9f   : > { %v292_v8 = vadd.f32 %v289_v7, %v262_v6 }
  0xa1   : > { %528 = vtanh.f32 %v292_v8  ;;  %v480_v11 = vmul.f32 -1.442695, %v292_v8 }
  0xa3   : > { %530 = vpow2.f32 %v480_v11 }
  0xa7   : > { %v529_v9 = vpop.eup %528 }
  0xa8   : > { %320 = vrot.lane.b32.xlu0 %v529_v9, %s577_s6 }
  0xa9   : > { %v531_v12 = vpop.eup %530 }
  0xaa   : > { %v296_v13 = vadd.f32 1.0, %v531_v12 }
  0xac   : > { %532 = vrcp.f32 %v296_v13  ;;  %v308_v19 = vand.u32 2147483648, %v296_v13  ;;  %vm302_vm3 = vweird.f32 %v296_v13  ;;  %v306_v20 = vand.u32 2147483647, %v296_v13 }
  0xae   : > { %v309_v22 = vor.u32 1.1754944e-38, %v308_v19  ;;  %vm307_vm5 = vcmp.eq.f32.partialorder %v306_v20, 8.507059e+37 }
  0xb0   : > { %315 = vrot.lane.b32.xlu0 %v313_v10, %s578_s7 }
  0xb2   : > { %v533_v14 = vpop.eup %532 }
  0xb3   : > { %v298_v15 = vmul.f32 %v533_v14, %v296_v13  ;;  %vm303_vm2 = vweird.f32 %v533_v14 }
  0xb4   : > { %vm304_vm4 = vmor %vm302_vm3, %vm303_vm2 }
  0xb5   : > { %v299_v16 = vsub.f32 1.0, %v298_v15 }
  0xb7   : > { %v300_v17 = vmul.f32 %v533_v14, %v299_v16 }
  0xb9   : > { %v301_v18 = vadd.f32 %v533_v14, %v300_v17 }
  0xbb   : > { %v305_v21 = vsel %vm304_vm4, %v533_v14, %v301_v18 }
  0xbc   : > { %v310_v24 = vsel %vm307_vm5, %v309_v22, %v305_v21 }
 0x11a   : > { %v321_v23 = vpop.permute.xlu0 %320 }
 0x11b   : > { %v323_v25 = vmul.f32 %v321_v23, %v310_v24 }
 0x11d   : > { %325 = vrot.lane.b32.xlu1 %v323_v25, %s578_s7 }
 0x122   : > { %v316_v26 = vpop.permute.xlu0 %315 }
 0x123   : > { %v318_v27 = vmul.f32 %v316_v26, %v310_v24 }
 0x18f   : > { %v326_v28 = vpop.permute.xlu1 %325 }
 0x190   : > { %v328_v29 = vadd.f32 %v326_v28, %v318_v27 }
 0x192   : > { %534 = vtanh.f32 %v328_v29  ;;  %336 = vrot.lane.b32.xlu2 %v328_v29, %s579_s8 }
 0x198   : > { %v535_v30 = vpop.eup %534 }
 0x199   : > { %331 = vrot.lane.b32.xlu1 %v535_v30, %s577_s6 }
 0x1ec   : > { %v337_v31 = vpop.permute.xlu2 %336 }
 0x1ed   : > { %340 = vst.msk [vmem:[#allocation3] sm:$0x3] %vm339_vm6, %v337_v31 }
 0x20b   : > { %v332_v32 = vpop.permute.xlu1 %331 }
 0x20c   : > { %v334_v33 = vmul.f32 %v332_v32, %v310_v24 }
 0x20e   : > { %342 = vrot.lane.b32.xlu2 %v334_v33, %s578_s7 }
 0x268   : > { %v343_v34 = vpop.permute.xlu2 %342 }
 0x269   : > { %345 = vst.msk [vmem:[#allocation2] sm:$0x3] %vm339_vm6, %v343_v34 }
 0x26a   : > { %346 = vst.msk [vmem:[%s637_s5] sm:$0x3] %vm339_vm6, %v343_v34 }
 0x26b PF: > { %s12_s13 = sadd.s32 1, %s574_s13   ;;  %s664_s9 = smov %s566_s11 }
 0x26c   : > { %p9_p8 = scmp.ge.s32.totalorder %s12_s13, 10   ;;  %s665_s10 = smov %s570_s12 }
 0x26d   : > { %s666_s11 = smov %s669_s14  ;;  %s667_s12 = smov %s673_s15 }
 0x26e   :  { %11 = sbr.rel (!%p9_p8) target bundleno = 3 (0x3), region = 65 }

// kernel: lrcn_forward.21
= control target key start
LH: loop header
LB: loop body
LE: loop exit
PB: predicated region body
PF: predicated region fallthrough
CT: control target
= control target key end

     0   :  { %6 = vsyncpa [#allocation3], 0  ;;  %vm13_vm0 = vcmask 1041408   ;;  %v224_v58 = vmov 4.0   ;;  %s314_s0 = inlined_call_operand.vmem [shape: f32[4,2,128], index: 0, kind: input, shape index: {}]   ;;  %s315_s1 = inlined_call_operand.hbm [shape: f32[2,128], index: 1, kind: output, shape index: {}]  }
   0x1   :  { %v9_v0 = vld [vmem:[%s314_s0] sm:$0x3]  ;;  %v10_v1 = vld [vmem:[%s314_s0 + $0x2] sm:$0x3]  ;;  %v11_v2 = vld [vmem:[%s314_s0 + $0x4] sm:$0x3] }
   0x2   :  { %v12_v3 = vld [vmem:[%s314_s0 + $0x6] sm:$0x3]  ;;  %v14_v4 = vsel %vm13_vm0, %v9_v0, -inf  ;;  %v21_v5 = vsel %vm13_vm0, %v10_v1, -inf  ;;  %v28_v6 = vsel %vm13_vm0, %v11_v2, -inf  ;;  %s225_s0 = smov [#allocation2]  }
   0x3   :  { %v35_v7 = vsel %vm13_vm0, %v12_v3, -inf  ;;  %v15_v8 = vrot.slane %v14_v4, 4  ;;  %v22_v9 = vrot.slane %v21_v5, 4  ;;  %v29_v10 = vrot.slane %v28_v6, 4  ;;  %s165_s14 = sshll.u32 %s225_s0, 4  ;;  %s167_s17 = sshll.u32 %s315_s1, 4  ;;  %s166_s14 = int_to_ptr.vmem [resolvable:$true] %s165_s14  ;;  %s168_s17 = int_to_ptr.hbm [resolvable:$true] %s167_s17 }
   0x4   :  { %v36_v11 = vrot.slane %v35_v7, 4 }
   0x5   :  { %v16_v12 = vmax.f32 %v14_v4, %v15_v8  ;;  %v23_v13 = vmax.f32 %v21_v5, %v22_v9  ;;  %v30_v14 = vmax.f32 %v28_v6, %v29_v10 }
   0x6   :  { %v37_v15 = vmax.f32 %v35_v7, %v36_v11 }
   0x7   :  { %v17_v16 = vrot.slane %v16_v12, 2  ;;  %v24_v17 = vrot.slane %v23_v13, 2  ;;  %v31_v18 = vrot.slane %v30_v14, 2 }
   0x8   :  { %v38_v19 = vrot.slane %v37_v15, 2 }
   0x9   :  { %v18_v20 = vmax.f32 %v16_v12, %v17_v16  ;;  %v25_v21 = vmax.f32 %v23_v13, %v24_v17  ;;  %v32_v22 = vmax.f32 %v30_v14, %v31_v18 }
   0xa   :  { %v39_v23 = vmax.f32 %v37_v15, %v38_v19 }
   0xb   :  { %v19_v24 = vrot.slane %v18_v20, 1  ;;  %v26_v25 = vrot.slane %v25_v21, 1  ;;  %v33_v26 = vrot.slane %v32_v22, 1 }
   0xc   :  { %v40_v27 = vrot.slane %v39_v23, 1 }
   0xd   :  { %v20_v28 = vmax.f32 %v18_v20, %v19_v24  ;;  %v27_v29 = vmax.f32 %v25_v21, %v26_v25  ;;  %v34_v30 = vmax.f32 %v32_v22, %v33_v26 }
   0xe   :  { %v41_v31 = vmax.f32 %v39_v23, %v40_v27 }
   0xf   :  { %v42_v32 = vsub.f32 %v9_v0, %v20_v28  ;;  %v43_v33 = vsub.f32 %v10_v1, %v27_v29  ;;  %v44_v34 = vsub.f32 %v11_v2, %v34_v30 }
  0x10   :  { %v45_v35 = vsub.f32 %v12_v3, %v41_v31 }
  0x11   :  { %v46_v36 = vmul.f32 1.442695, %v42_v32  ;;  %v48_v37 = vmul.f32 1.442695, %v43_v33  ;;  %v50_v38 = vmul.f32 1.442695, %v44_v34 }
  0x12   :  { %v52_v39 = vmul.f32 1.442695, %v45_v35 }
  0x13   :  { %178 = vpow2.f32 %v46_v36 }
  0x14   :  { %180 = vpow2.f32 %v48_v37 }
  0x15   :  { %182 = vpow2.f32 %v50_v38 }
  0x16   :  { %184 = vpow2.f32 %v52_v39 }
  0x17   :  { %186 = vrcp.f32 %v224_v58 }
  0x19   :  { %v252_v40 = vpop.eup %178 }
  0x1a   :  { %v254_v41 = vpop.eup %180  ;;  %v54_v42 = vsel %vm13_vm0, %v252_v40, 0.0 }
  0x1b   :  { %v258_v43 = vpop.eup %182  ;;  %v55_v44 = vrot.slane %v54_v42, 4  ;;  %v61_v45 = vsel %vm13_vm0, %v254_v41, 0.0 }
  0x1c   :  { %v262_v46 = vpop.eup %184  ;;  %v62_v47 = vrot.slane %v61_v45, 4  ;;  %v68_v48 = vsel %vm13_vm0, %v258_v43, 0.0 }
  0x1d   :  { %v56_v49 = vadd.f32 %v55_v44, %v54_v42  ;;  %v69_v50 = vrot.slane %v68_v48, 4  ;;  %v75_v51 = vsel %vm13_vm0, %v262_v46, 0.0  ;;  %v268_v5 = vpop.eup %186 }
  0x1e   :  { %v63_v52 = vadd.f32 %v62_v47, %v61_v45  ;;  %v76_v53 = vrot.slane %v75_v51, 4  ;;  %v150_v10 = vmul.f32 4.0, %v268_v5 }
  0x1f   :  { %v57_v54 = vrot.slane %v56_v49, 2  ;;  %v70_v55 = vadd.f32 %v69_v50, %v68_v48 }
  0x20   :  { %v64_v56 = vrot.slane %v63_v52, 2  ;;  %v77_v57 = vadd.f32 %v76_v53, %v75_v51  ;;  %v151_v15 = vsub.f32 1.0, %v150_v10 }
  0x21   :  { %v58_v59 = vadd.f32 %v57_v54, %v56_v49  ;;  %v71_v60 = vrot.slane %v70_v55, 2 }
  0x22   :  { %v65_v61 = vadd.f32 %v64_v56, %v63_v52  ;;  %v78_v62 = vrot.slane %v77_v57, 2  ;;  %v152_v48 = vmul.f32 %v268_v5, %v151_v15 }
  0x23   :  { %v59_v63 = vrot.slane %v58_v59, 1  ;;  %v72_v0 = vadd.f32 %v71_v60, %v70_v55 }
  0x24   :  { %v66_v1 = vrot.slane %v65_v61, 1  ;;  %v79_v2 = vadd.f32 %v78_v62, %v77_v57 }
  0x25   :  { %v60_v3 = vadd.f32 %v59_v63, %v58_v59  ;;  %v73_v4 = vrot.slane %v72_v0, 1 }
  0x26   :  { %v67_v6 = vadd.f32 %v66_v1, %v65_v61  ;;  %v80_v7 = vrot.slane %v79_v2, 1 }
  0x27   :  { %v74_v8 = vadd.f32 %v73_v4, %v72_v0  ;;  %188 = vrcp.f32 %v60_v3  ;;  %v91_v11 = vand.u32 2147483647, %v60_v3  ;;  %v93_v12 = vand.u32 2147483648, %v60_v3 }
  0x28   :  { %v81_v9 = vadd.f32 %v80_v7, %v79_v2  ;;  %190 = vrcp.f32 %v67_v6  ;;  %v108_v14 = vand.u32 2147483648, %v67_v6  ;;  %vm87_vm1 = vweird.f32 %v60_v3 }
  0x29   :  { %192 = vrcp.f32 %v74_v8  ;;  %vm271_vm2 = vcmp.eq.f32.partialorder %v91_v11, 8.507059e+37  ;;  %vm102_vm3 = vweird.f32 %v67_v6  ;;  %v94_v20 = vor.u32 1.1754944e-38, %v93_v12 }
  0x2a   :  { %194 = vrcp.f32 %v81_v9  ;;  %v106_v22 = vand.u32 2147483647, %v67_v6  ;;  %vm117_vm4 = vweird.f32 %v74_v8  ;;  %v121_v25 = vand.u32 2147483647, %v74_v8 }
  0x2b   :  { %v109_v28 = vor.u32 1.1754944e-38, %v108_v14  ;;  %v123_v29 = vand.u32 2147483648, %v74_v8  ;;  %vm132_vm9 = vweird.f32 %v81_v9  ;;  %v136_v35 = vand.u32 2147483647, %v81_v9 }
  0x2c   :  { %v138_v36 = vand.u32 2147483648, %v81_v9  ;;  %vm107_vm12 = vcmp.eq.f32.partialorder %v106_v22, 8.507059e+37  ;;  %vm122_vm14 = vcmp.eq.f32.partialorder %v121_v25, 8.507059e+37  ;;  %v153_v2 = vadd.f32 %v268_v5, %v152_v48 }
  0x2d   :  { %v189_v13 = vpop.eup %188  ;;  %v124_v47 = vor.u32 1.1754944e-38, %v123_v29 }
  0x2e   :  { %v191_v16 = vpop.eup %190  ;;  %v83_v17 = vmul.f32 %v189_v13, %v60_v3  ;;  %vm88_vm5 = vweird.f32 %v189_v13  ;;  %v139_v54 = vor.u32 1.1754944e-38, %v138_v36 }
  0x2f   :  { %v193_v19 = vpop.eup %192  ;;  %v98_v21 = vmul.f32 %v191_v16, %v67_v6  ;;  %vm103_vm6 = vweird.f32 %v191_v16  ;;  %vm276_vm8 = vmor %vm87_vm1, %vm88_vm5  ;;  %vm137_vm1 = vcmp.eq.f32.partialorder %v136_v35, 8.507059e+37 }
  0x30   :  { %v84_v23 = vsub.f32 1.0, %v83_v17  ;;  %v113_v24 = vmul.f32 %v193_v19, %v74_v8  ;;  %v195_v26 = vpop.eup %194  ;;  %vm118_vm7 = vweird.f32 %v193_v19  ;;  %vm281_vm10 = vmor %vm102_vm3, %vm103_vm6 }
  0x31   :  { %v99_v27 = vsub.f32 1.0, %v98_v21  ;;  %v128_v32 = vmul.f32 %v195_v26, %v81_v9  ;;  %vm133_vm11 = vweird.f32 %v195_v26  ;;  %vm286_vm13 = vmor %vm117_vm4, %vm118_vm7 }
  0x32   :  { %v85_v30 = vmul.f32 %v189_v13, %v84_v23  ;;  %v114_v31 = vsub.f32 1.0, %v113_v24  ;;  %vm134_vm15 = vmor %vm132_vm9, %vm133_vm11 }
  0x33   :  { %v100_v34 = vmul.f32 %v191_v16, %v99_v27  ;;  %v129_v42 = vsub.f32 1.0, %v128_v32 }
  0x34   :  { %v86_v37 = vadd.f32 %v189_v13, %v85_v30  ;;  %v115_v39 = vmul.f32 %v193_v19, %v114_v31 }
  0x35   :  { %v101_v44 = vadd.f32 %v191_v16, %v100_v34  ;;  %v130_v51 = vmul.f32 %v195_v26, %v129_v42 }
  0x36   :  { %v90_v49 = vsel %vm276_vm8, %v189_v13, %v86_v37  ;;  %v116_v50 = vadd.f32 %v193_v19, %v115_v39 }
  0x37   :  { %v95_v52 = vsel %vm271_vm2, %v94_v20, %v90_v49  ;;  %v105_v53 = vsel %vm281_vm10, %v191_v16, %v101_v44  ;;  %v131_v58 = vadd.f32 %v195_v26, %v130_v51  ;;  %vm154_vm2 = vweird.f32 %v268_v5 }
  0x38   :  { %v96_v55 = vmul.f32 %v252_v40, %v95_v52  ;;  %v110_v56 = vsel %vm107_vm12, %v109_v28, %v105_v53  ;;  %v120_v57 = vsel %vm286_vm13, %v193_v19, %v116_v50 }
  0x39   :  { %v111_v59 = vmul.f32 %v254_v41, %v110_v56  ;;  %v125_v60 = vsel %vm122_vm14, %v124_v47, %v120_v57  ;;  %v135_v62 = vsel %vm134_vm15, %v195_v26, %v131_v58 }
  0x3a   :  { %v126_v61 = vmul.f32 %v258_v43, %v125_v60  ;;  %v142_v63 = vsel %vm13_vm0, %v96_v55, 0.0  ;;  %v140_v0 = vsel %vm137_vm1, %v139_v54, %v135_v62  ;;  %v155_v43 = vsel %vm154_vm2, %v268_v5, %v153_v2 }
  0x3b   :  { %v143_v1 = vsel %vm13_vm0, %v111_v59, 0.0  ;;  %v141_v40 = vmul.f32 %v262_v46, %v140_v0 }
  0x3c   :  { %v144_v3 = vadd.f32 %v143_v1, %v142_v63  ;;  %v145_v4 = vsel %vm13_vm0, %v126_v61, 0.0 }
  0x3d   :  { %v147_v41 = vsel %vm13_vm0, %v141_v40, 0.0 }
  0x3e   :  { %v146_v6 = vadd.f32 %v145_v4, %v144_v3 }
  0x40   :  { %v148_v7 = vadd.f32 %v147_v41, %v146_v6 }
  0x42   :  { %v156_v8 = vmul.f32 %v155_v43, %v148_v7 }
  0x44   :  { %196 = vlog2.f32 %v156_v8 }
  0x4a   :  { %v197_v46 = vpop.eup %196 }
  0x4b   :  { %v158_v9 = vmul.f32 0.6931472, %v197_v46 }
  0x4d   :  { %159 = vst [vmem:[#allocation2] sm:$0x3] %v158_v9 }
  0x4e   :  { %170 = dma.vmem_to_hbm [thread:$0]  %s166_s14, 32, %s168_s17, [#allocation3]  }
  0x4f   :  { %222 = dma.done.wait [#allocation3], 32  }
  0x50   :  { %223 = vsyncadd [#allocation3], 4294967264 }
  0x51   :  { %175 = vsyncpa [#allocation3], 1 }

// kernel: lrcn_forward.17
= control target key start
LH: loop header
LB: loop body
LE: loop exit
PB: predicated region body
PF: predicated region fallthrough
CT: control target
= control target key end

     0   :  { %vm27_vm0 = vcmask 523264   ;;  %s111_s1 = inlined_call_operand.vmem [shape: f32[64,128], index: 1, kind: input, shape index: {}]   ;;  %s112_s2 = inlined_call_operand.vmem [shape: f32[1,128], index: 2, kind: input, shape index: {}]   ;;  %s113_s0 = inlined_call_operand.vmem [shape: f32[8,64], index: 0, kind: input, shape index: {}]   ;;  %s114_s3 = inlined_call_operand.vmem [shape: f32[8,128], index: 3, kind: output, shape index: {}]  }
   0x1   :  { %v22_v0 = vld [vmem:[%s111_s1 + $0x38] sm:$0xff]  ;;  %v21_v1 = vld [vmem:[%s111_s1 + $0x30] sm:$0xff]  ;;  %v20_v2 = vld [vmem:[%s111_s1 + $0x28] sm:$0xff] }
   0x2   :  { %39 = vmatpush.msra.mxu0 %v22_v0  ;;  %v19_v3 = vld [vmem:[%s111_s1 + $0x20] sm:$0xff]  ;;  %v18_v4 = vld [vmem:[%s111_s1 + $0x18] sm:$0xff]  ;;  %v17_v5 = vld [vmem:[%s111_s1 + $0x10] sm:$0xff] }
   0x3   :  { %v16_v6 = vld [vmem:[%s111_s1 + $0x8] sm:$0xff]  ;;  %v15_v7 = vld [vmem:[%s111_s1] sm:$0xff] }
   0x4   :  { %40 = vmatpush.msra.mxu0 %v21_v1  ;;  %v14_v8 = vld [vmem:[%s113_s0] sm:$0xff] }
   0x5   :  { %v57_v9 = vld [vmem:[%s112_s2] ss:$0 sm:$0xff] }
   0x6   :  { %41 = vmatpush.msra.mxu0 %v20_v2 }
   0x8   :  { %42 = vmatpush.msra.mxu0 %v19_v3 }
   0xa   :  { %43 = vmatpush.msra.mxu0 %v18_v4 }
   0xc   :  { %44 = vmatpush.msra.mxu0 %v17_v5 }
   0xe   :  { %45 = vmatpush.msra.mxu0 %v16_v6 }
  0x10   :  { %46 = vmatpush.msra.mxu0 %v15_v7 }
  0x11   :  { %56 = vmatmul.msk.f32.vlgmr.msra.gmra.mxu0 %vm27_vm0, %v14_v8 }
  0x8e   :  { %v48_v10 = vpop.f32.mrf.mxu0 }
  0x8f   :  { %v49_v11 = vadd.f32 %v57_v9, %v48_v10 }
  0x91   :  { %51 = vst [vmem:[%s114_s3] sm:$0xff] %v49_v11 }

</bundles_post_ra>
